<compile_context>
chip_gen: v7x
topology: tpu7x:2x2x1
jax: 0.10.0
libtpu: 0.0.40
codegen_flags: <defaults>
</compile_context>

<pallas_src>
import numpy as np
import jax
import jax.numpy as jnp
from jax.experimental import pallas as pl
from jax.experimental.pallas import tpu as pltpu

# --- module-consistent (small) sizes -------------------------------------------------
N = 128            # num_points (small stand-in for 1500); lane-dense for the NxN logits
D = 8              # feature dim of `data` (cols)
EMB = 2            # embedding dim d
K = 10             # num_neighbors (same as the module)
H1, C1 = 4, 10     # graph_conv1: heads=4, out_channels=10, concat -> 40
H2, C2 = 1, D      # graph_conv2: heads=1, out_channels=D

# --- lane-dense padded sizes ----------------------------------------------------------
E_PAD = 128        # padded embedding lanes (d -> 128); col EMB carries a constant 1
C1_PAD = 128       # per-head lane group, conv1 (cols: C1 feats | C1 ones | C1+1 src | C1+2 dst | C1+3 ones-for-conv2)
C2_PAD = 128       # lane group, conv2        (cols: C2 feats | C2 ones | C2+1 src | C2+2 dst)
HID = 256          # MLP hidden width (already a lane multiple)
NEG = 1e9          # additive mask magnitude for non-edges


def _vmem():
    return pl.BlockSpec(memory_space=pltpu.MemorySpace.VMEM)


# ----------------------------- fused forward kernel -----------------------------------
def lnle_fused_kernel(x_ref, adjb_ref,
                      w1_ref, b1_ref, w2_ref, b2_ref, w3_ref, b3_ref,
                      wg1_ref, bg1_ref, wg2_ref, bg2_ref,
                      o_ref, xw_scr, g1_scr):
    f32, bf16 = jnp.float32, jnp.bfloat16

    # ---------------- projection MLP: [D, 256, 256, d]  (lane-padded output) ----------
    h = jnp.dot(x_ref[...].astype(bf16), w1_ref[...], preferred_element_type=f32)
    h = jnp.maximum(h + b1_ref[...], 0.0)
    h = jnp.dot(h.astype(bf16), w2_ref[...], preferred_element_type=f32)
    h = jnp.maximum(h + b2_ref[...], 0.0)
    h = jnp.dot(h.astype(bf16), w3_ref[...], preferred_element_type=f32) + b3_ref[...]
    # h[:, EMB] == 1.0 exactly (b3 fold) -> becomes every head's softmax-denominator col.

    # --------- batched per-head conv1 projection: ONE wide MXU pass, staged in VMEM ---
    xw_scr[...] = jnp.dot(h.astype(bf16), wg1_ref[...], preferred_element_type=f32)

    def gat_head(xw_pack, c_real, bias_row):
        # xw_pack: (N, 128) f32, per-head packed columns:
        #   [0, c_real)  transformed features        c_real      constant 1 (denominator)
        #   c_real + 1   a_src = x_j . att_src       c_real + 2  a_dst = x_i . att_dst
        # NOTE(perf, minor): the five (N,1)->(1,N) a_src transposes could be batched by
        # co-locating all heads' attention columns in one lane group (single XLU pass).
        a_src = jnp.transpose(xw_pack[:, c_real + 1:c_real + 2])   # (1, N)
        a_dst = xw_pack[:, c_real + 2:c_real + 3]                  # (N, 1)
        z = a_dst + a_src                               # logits[i, j] = a_dst[i] + a_src[j]
        z = jnp.maximum(z, 0.2 * z)                     # LeakyReLU(0.2)
        z = z + adjb_ref[...]                           # 0 on edges/self-loops, -1e9 else
        z = z - jnp.max(z, axis=-1, keepdims=True)      # stable softmax (rows have self-loop)
        e = jnp.exp(z)
        # numerator (cols < c_real) and denominator (col c_real) in ONE MXU pass
        nd = jnp.dot(e.astype(bf16), xw_pack.astype(bf16), preferred_element_type=f32)
        inv = pl.reciprocal(nd[:, c_real:c_real + 1], approx=True)   # EUP, ~free slot
        return nd * inv + bias_row

    # ---------------- GATConv1 (d -> 10, heads=4, concat) + ReLU ----------------------
    # Static unroll; each finished head is stored straight into the lane-concat scratch
    # so only one head's (z, e, nd) working set is live at a time.
    for hh in range(H1):
        base = hh * C1_PAD
        out_h = gat_head(xw_scr[:, base:base + C1_PAD], C1, bg1_ref[hh:hh + 1, :])
        g1_scr[:, base:base + C1_PAD] = jnp.maximum(out_h, 0.0).astype(bf16)
        # bg1[0, C1+3] = 1  ->  g1_scr[:, C1+3] == 1 exactly (conv2 denominator source)

    # ---------------- GATConv2 (40 -> D, heads=1) + sigmoid * 256 ---------------------
    # concat(heads) @ W2 as ONE matmul with 512-deep contraction; pad/junk columns of g1
    # hit all-zero rows of the packed wg2 slab.
    xw2 = jnp.dot(g1_scr[...], wg2_ref[...], preferred_element_type=f32)   # (N, C2_PAD)
    out2 = gat_head(xw2, C2, bg2_ref[...])
    o_ref[...] = jax.nn.sigmoid(out2) * 256.0            # lane-dense (N, 128) store


# ----------------------------- wrapper -------------------------------------------------
def lnle_forward(x, adj_bias, params):
    mlp_p, gat1_p, gat2_p = params
    n, d_in = x.shape
    out_pad = pl.pallas_call(
        lnle_fused_kernel,
        out_shape=jax.ShapeDtypeStruct((n, C2_PAD), jnp.float32),
        in_specs=[_vmem()] * 12,
        out_specs=_vmem(),
        scratch_shapes=[pltpu.VMEM((n, H1 * C1_PAD), jnp.float32),    # batched xw_all
                        pltpu.VMEM((n, H1 * C1_PAD), jnp.bfloat16)],  # g1 lane-concat
    )(x, adj_bias, *mlp_p, *gat1_p, *gat2_p)
    return out_pad[:, :d_in]


# ---------------- graph construction (host-side glue) ---------------------------------
def build_adjacency_bias(data_np, k):
    # Brute-force exact k-NN stands in for sklearn's BallTree (same neighbor sets).
    n = data_np.shape[0]
    d2 = ((data_np[:, None, :] - data_np[None, :, :]) ** 2).sum(-1)
    idxs = np.argsort(d2, axis=1)[:, :k]          # column 0 is the point itself
    src = idxs[:, 1:].reshape(-1)                 # neighbor indices
    dst = np.repeat(np.arange(n), k - 1)          # center indices
    # Reference builds edge_index = (dst, src).  Under PyG's default source->target flow,
    # edge_index[0]=dst are message sources and edge_index[1]=src are targets, i.e.
    # aggregation happens at the neighbor nodes: adj[target, source] = 1.
    adj = np.zeros((n, n), dtype=np.float32)
    adj[src, dst] = 1.0
    np.fill_diagonal(adj, 1.0)                    # GATConv add_self_loops=True
    # Additive softmax mask built host-side (no in-kernel VPU work for the mask).
    return np.where(adj > 0, 0.0, -NEG).astype(np.float32)


# ---------------- deterministic, lane-packed parameter construction --------------------
def _uniform(key, shape, fan_in):
    s = 1.0 / np.sqrt(fan_in)
    return jax.random.uniform(key, shape, jnp.float32, -s, s)


def init_mlp(key):
    k1w, k1b, k2w, k2b, k3w, k3b = jax.random.split(key, 6)
    w1 = _uniform(k1w, (D, HID), D).astype(jnp.bfloat16)          # unpadded (8, 256)
    b1 = _uniform(k1b, (1, HID), D)
    w2 = _uniform(k2w, (HID, HID), HID).astype(jnp.bfloat16)
    b2 = _uniform(k2b, (1, HID), HID)
    w3 = jnp.zeros((HID, E_PAD), jnp.float32).at[:, :EMB].set(_uniform(k3w, (HID, EMB), HID))
    b3 = jnp.zeros((1, E_PAD), jnp.float32).at[:, :EMB].set(_uniform(k3b, (1, EMB), HID))
    b3 = b3.at[:, EMB].set(1.0)     # constant-1 lane of h -> folded denominator columns
    return (w1, b1, w2, b2, w3.astype(jnp.bfloat16), b3)


def init_gat1(key):
    kw, ks, kd = jax.random.split(key, 3)
    w = _uniform(kw, (H1, EMB, C1), EMB)            # per-head linear weight
    a_src = _uniform(ks, (H1, C1), EMB)
    a_dst = _uniform(kd, (H1, C1), EMB)
    pack = jnp.zeros((E_PAD, H1 * C1_PAD), jnp.float32)   # ONE wide slab, head hh -> lanes [hh*128, ...)
    for hh in range(H1):
        base = hh * C1_PAD
        pack = pack.at[:EMB, base:base + C1].set(w[hh])
        pack = pack.at[EMB, base + C1].set(1.0)                      # reads h's constant-1 lane
        # fold attention vectors into extra columns:  (x @ W_h) . a  ==  x @ (W_h a)
        pack = pack.at[:EMB, base + C1 + 1].set(w[hh] @ a_src[hh])
        pack = pack.at[:EMB, base + C1 + 2].set(w[hh] @ a_dst[hh])
    bias = jnp.zeros((8, C1_PAD), jnp.float32)       # PyG initializes bias to zeros; rows [0,H1) real
    bias = bias.at[0, C1 + 3].set(1.0)               # exact constant-1 column for conv2's denominator
    return pack.astype(jnp.bfloat16), bias


def init_gat2(key):
    kw, ks, kd = jax.random.split(key, 3)
    fan_in = H1 * C1
    w = _uniform(kw, (H1, C1, C2), fan_in)           # concat-input split into per-head row blocks
    a_src = _uniform(ks, (C2,), fan_in)
    a_dst = _uniform(kd, (C2,), fan_in)
    pack = jnp.zeros((H1 * C1_PAD, C2_PAD), jnp.float32)   # ONE slab, 512-deep contraction
    for hh in range(H1):
        base = hh * C1_PAD
        pack = pack.at[base:base + C1, :C2].set(w[hh])
        pack = pack.at[base:base + C1, C2 + 1].set(w[hh] @ a_src)
        pack = pack.at[base:base + C1, C2 + 2].set(w[hh] @ a_dst)
    pack = pack.at[C1 + 3, C2].set(1.0)              # picks up g1 head-0's exact constant-1 column
    bias = jnp.zeros((1, C2_PAD), jnp.float32)
    return pack.astype(jnp.bfloat16), bias


if __name__ == "__main__":
    key = jax.random.PRNGKey(0)
    k_data, k_mlp, k_g1, k_g2 = jax.random.split(key, 4)

    data = jax.random.normal(k_data, (N, D), jnp.float32)        # forward input x = data
    adj_bias = jnp.asarray(build_adjacency_bias(np.asarray(data), K))

    params = (init_mlp(k_mlp), init_gat1(k_g1), init_gat2(k_g2))
    # note: the module's self.reconstruction MLP is unused in the reference forward pass.

    out = jax.block_until_ready(jax.jit(lnle_forward)(data, adj_bias, params))
    assert out.shape == (N, D) and out.dtype == jnp.float32
    assert bool(jnp.all(jnp.isfinite(out)))
    assert bool(jnp.all(out >= 0.0)) and bool(jnp.all(out <= 256.0))   # sigmoid * 256 range
    print("KERNEL_OK")
</pallas_src>

<mosaic_0001>
module attributes {stable_mosaic.version = 11 : i64} {
  func.func @lnle_fused_kernel(%arg0: memref<128x8xf32, #tpu.memory_space<vmem>>, %arg1: memref<128x128xf32, #tpu.memory_space<vmem>>, %arg2: memref<8x256xbf16, #tpu.memory_space<vmem>>, %arg3: memref<1x256xf32, #tpu.memory_space<vmem>>, %arg4: memref<256x256xbf16, #tpu.memory_space<vmem>>, %arg5: memref<1x256xf32, #tpu.memory_space<vmem>>, %arg6: memref<256x128xbf16, #tpu.memory_space<vmem>>, %arg7: memref<1x128xf32, #tpu.memory_space<vmem>>, %arg8: memref<128x512xbf16, #tpu.memory_space<vmem>>, %arg9: memref<8x128xf32, #tpu.memory_space<vmem>>, %arg10: memref<512x128xbf16, #tpu.memory_space<vmem>>, %arg11: memref<1x128xf32, #tpu.memory_space<vmem>>, %arg12: memref<128x128xf32, #tpu.memory_space<vmem>>, %arg13: memref<128x512xf32, #tpu.memory_space<vmem>>, %arg14: memref<128x512xbf16, #tpu.memory_space<vmem>>) attributes {dimension_semantics = [], scalar_prefetch = 0 : i64, scratch_operands = 2 : i64, tpu.core_type = #tpu.core_type<tc>} {
    %c0 = arith.constant 0 : index
    %c0_0 = arith.constant 0 : index
    %0 = vector.load %arg0[%c0, %c0_0] : memref<128x8xf32, #tpu.memory_space<vmem>>, vector<128x8xf32>
    %1 = arith.truncf %0 : vector<128x8xf32> to vector<128x8xbf16>
    %c0_1 = arith.constant 0 : index
    %c0_2 = arith.constant 0 : index
    %2 = vector.load %arg2[%c0_1, %c0_2] : memref<8x256xbf16, #tpu.memory_space<vmem>>, vector<8x256xbf16>
    %cst = arith.constant dense<0.000000e+00> : vector<128x256xf32>
    %3 = tpu.matmul %1, %2, %cst {dimension_numbers = #tpu.dot_dimension_numbers<[1], [0], [0], [1], [0, 0, 1, 1], [], []>} : vector<128x8xbf16>, vector<8x256xbf16>, vector<128x256xf32> -> vector<128x256xf32>
    %c0_3 = arith.constant 0 : index
    %c0_4 = arith.constant 0 : index
    %4 = vector.load %arg3[%c0_3, %c0_4] : memref<1x256xf32, #tpu.memory_space<vmem>>, vector<1x256xf32>
    %5 = vector.broadcast %4 : vector<1x256xf32> to vector<128x256xf32>
    %6 = arith.addf %3, %5 : vector<128x256xf32>
    %cst_5 = arith.constant 0.000000e+00 : f32
    %7 = vector.broadcast %cst_5 : f32 to vector<128x256xf32>
    %8 = arith.maximumf %6, %7 : vector<128x256xf32>
    %9 = arith.truncf %8 : vector<128x256xf32> to vector<128x256xbf16>
    %c0_6 = arith.constant 0 : index
    %c0_7 = arith.constant 0 : index
    %10 = vector.load %arg4[%c0_6, %c0_7] : memref<256x256xbf16, #tpu.memory_space<vmem>>, vector<256x256xbf16>
    %cst_8 = arith.constant dense<0.000000e+00> : vector<128x256xf32>
    %11 = tpu.matmul %9, %10, %cst_8 {dimension_numbers = #tpu.dot_dimension_numbers<[1], [0], [0], [1], [0, 0, 1, 1], [], []>} : vector<128x256xbf16>, vector<256x256xbf16>, vector<128x256xf32> -> vector<128x256xf32>
    %c0_9 = arith.constant 0 : index
    %c0_10 = arith.constant 0 : index
    %12 = vector.load %arg5[%c0_9, %c0_10] : memref<1x256xf32, #tpu.memory_space<vmem>>, vector<1x256xf32>
    %13 = vector.broadcast %12 : vector<1x256xf32> to vector<128x256xf32>
    %14 = arith.addf %11, %13 : vector<128x256xf32>
    %cst_11 = arith.constant 0.000000e+00 : f32
    %15 = vector.broadcast %cst_11 : f32 to vector<128x256xf32>
    %16 = arith.maximumf %14, %15 : vector<128x256xf32>
    %17 = arith.truncf %16 : vector<128x256xf32> to vector<128x256xbf16>
    %c0_12 = arith.constant 0 : index
    %c0_13 = arith.constant 0 : index
    %18 = vector.load %arg6[%c0_12, %c0_13] : memref<256x128xbf16, #tpu.memory_space<vmem>>, vector<256x128xbf16>
    %cst_14 = arith.constant dense<0.000000e+00> : vector<128x128xf32>
    %19 = tpu.matmul %17, %18, %cst_14 {dimension_numbers = #tpu.dot_dimension_numbers<[1], [0], [0], [1], [0, 0, 1, 1], [], []>} : vector<128x256xbf16>, vector<256x128xbf16>, vector<128x128xf32> -> vector<128x128xf32>
    %c0_15 = arith.constant 0 : index
    %c0_16 = arith.constant 0 : index
    %20 = vector.load %arg7[%c0_15, %c0_16] : memref<1x128xf32, #tpu.memory_space<vmem>>, vector<1x128xf32>
    %21 = vector.broadcast %20 : vector<1x128xf32> to vector<128x128xf32>
    %22 = arith.addf %19, %21 : vector<128x128xf32>
    %23 = arith.truncf %22 : vector<128x128xf32> to vector<128x128xbf16>
    %c0_17 = arith.constant 0 : index
    %c0_18 = arith.constant 0 : index
    %24 = vector.load %arg8[%c0_17, %c0_18] : memref<128x512xbf16, #tpu.memory_space<vmem>>, vector<128x512xbf16>
    %cst_19 = arith.constant dense<0.000000e+00> : vector<128x512xf32>
    %25 = tpu.matmul %23, %24, %cst_19 {dimension_numbers = #tpu.dot_dimension_numbers<[1], [0], [0], [1], [0, 0, 1, 1], [], []>} : vector<128x128xbf16>, vector<128x512xbf16>, vector<128x512xf32> -> vector<128x512xf32>
    %c0_20 = arith.constant 0 : index
    %c0_21 = arith.constant 0 : index
    %26 = vector.load %arg13[%c0_20, %c0_21] : memref<128x512xf32, #tpu.memory_space<vmem>>, vector<128x512xf32>
    tpu.vector_store %arg13[%c0_20, %c0_21], %25 {strides = array<i32>} : memref<128x512xf32, #tpu.memory_space<vmem>>, vector<128x512xf32>,
    %c0_22 = arith.constant 0 : index
    %c0_23 = arith.constant 0 : index
    %27 = vector.load %arg13[%c0_22, %c0_23] : memref<128x512xf32, #tpu.memory_space<vmem>>, vector<128x128xf32>
    %c0_24 = arith.constant 0 : index
    %c0_25 = arith.constant 0 : index
    %28 = vector.load %arg9[%c0_24, %c0_25] : memref<8x128xf32, #tpu.memory_space<vmem>>, vector<1x128xf32>
    %29 = vector.extract_strided_slice %27 {offsets = [0, 11], sizes = [128, 1], strides = [1, 1]} : vector<128x128xf32> to vector<128x1xf32>
    %30 = tpu.transpose %29, [1, 0] : vector<128x1xf32> -> vector<1x128xf32>
    %31 = vector.extract_strided_slice %27 {offsets = [0, 12], sizes = [128, 1], strides = [1, 1]} : vector<128x128xf32> to vector<128x1xf32>
    %32 = vector.broadcast %31 : vector<128x1xf32> to vector<128x128xf32>
    %33 = vector.broadcast %30 : vector<1x128xf32> to vector<128x128xf32>
    %34 = arith.addf %32, %33 : vector<128x128xf32>
    %cst_26 = arith.constant 2.000000e-01 : f32
    %35 = vector.broadcast %cst_26 : f32 to vector<128x128xf32>
    %36 = arith.mulf %35, %34 : vector<128x128xf32>
    %37 = arith.maximumf %34, %36 : vector<128x128xf32>
    %c0_27 = arith.constant 0 : index
    %c0_28 = arith.constant 0 : index
    %38 = vector.load %arg1[%c0_27, %c0_28] : memref<128x128xf32, #tpu.memory_space<vmem>>, vector<128x128xf32>
    %39 = arith.addf %37, %38 : vector<128x128xf32>
    %cst_29 = arith.constant dense<0xFF800000> : vector<128xf32>
    %40 = vector.multi_reduction <maximumf>, %39, %cst_29 [1] : vector<128x128xf32> to vector<128xf32>
    %41 = vector.shape_cast %40 : vector<128xf32> to vector<128x1xf32>
    %42 = vector.broadcast %41 : vector<128x1xf32> to vector<128x128xf32>
    %43 = arith.subf %39, %42 : vector<128x128xf32>
    %44 = math.exp %43 : vector<128x128xf32>
    %45 = arith.truncf %44 : vector<128x128xf32> to vector<128x128xbf16>
    %46 = arith.truncf %27 : vector<128x128xf32> to vector<128x128xbf16>
    %cst_30 = arith.constant dense<0.000000e+00> : vector<128x128xf32>
    %47 = tpu.matmul %45, %46, %cst_30 {dimension_numbers = #tpu.dot_dimension_numbers<[1], [0], [0], [1], [0, 0, 1, 1], [], []>} : vector<128x128xbf16>, vector<128x128xbf16>, vector<128x128xf32> -> vector<128x128xf32>
    %48 = vector.extract_strided_slice %47 {offsets = [0, 10], sizes = [128, 1], strides = [1, 1]} : vector<128x128xf32> to vector<128x1xf32>
    %49 = tpu.reciprocal %48 {approx = true} : vector<128x1xf32> -> vector<128x1xf32>
    %50 = vector.broadcast %49 : vector<128x1xf32> to vector<128x128xf32>
    %51 = arith.mulf %47, %50 : vector<128x128xf32>
    %52 = vector.broadcast %28 : vector<1x128xf32> to vector<128x128xf32>
    %53 = arith.addf %51, %52 : vector<128x128xf32>
    %cst_31 = arith.constant 0.000000e+00 : f32
    %54 = vector.broadcast %cst_31 : f32 to vector<128x128xf32>
    %55 = arith.maximumf %53, %54 : vector<128x128xf32>
    %56 = arith.truncf %55 : vector<128x128xf32> to vector<128x128xbf16>
    %c0_32 = arith.constant 0 : index
    %c0_33 = arith.constant 0 : index
    %57 = vector.load %arg14[%c0_32, %c0_33] : memref<128x512xbf16, #tpu.memory_space<vmem>>, vector<128x128xbf16>
    tpu.vector_store %arg14[%c0_32, %c0_33], %56 {strides = array<i32>} : memref<128x512xbf16, #tpu.memory_space<vmem>>, vector<128x128xbf16>,
    %c0_34 = arith.constant 0 : index
    %c128 = arith.constant 128 : index
    %58 = vector.load %arg13[%c0_34, %c128] : memref<128x512xf32, #tpu.memory_space<vmem>>, vector<128x128xf32>
    %c1 = arith.constant 1 : index
    %c0_35 = arith.constant 0 : index
    %59 = vector.load %arg9[%c1, %c0_35] : memref<8x128xf32, #tpu.memory_space<vmem>>, vector<1x128xf32>
    %60 = vector.extract_strided_slice %58 {offsets = [0, 11], sizes = [128, 1], strides = [1, 1]} : vector<128x128xf32> to vector<128x1xf32>
    %61 = tpu.transpose %60, [1, 0] : vector<128x1xf32> -> vector<1x128xf32>
    %62 = vector.extract_strided_slice %58 {offsets = [0, 12], sizes = [128, 1], strides = [1, 1]} : vector<128x128xf32> to vector<128x1xf32>
    %63 = vector.broadcast %62 : vector<128x1xf32> to vector<128x128xf32>
    %64 = vector.broadcast %61 : vector<1x128xf32> to vector<128x128xf32>
    %65 = arith.addf %63, %64 : vector<128x128xf32>
    %cst_36 = arith.constant 2.000000e-01 : f32
    %66 = vector.broadcast %cst_36 : f32 to vector<128x128xf32>
    %67 = arith.mulf %66, %65 : vector<128x128xf32>
    %68 = arith.maximumf %65, %67 : vector<128x128xf32>
    %c0_37 = arith.constant 0 : index
    %c0_38 = arith.constant 0 : index
    %69 = vector.load %arg1[%c0_37, %c0_38] : memref<128x128xf32, #tpu.memory_space<vmem>>, vector<128x128xf32>
    %70 = arith.addf %68, %69 : vector<128x128xf32>
    %cst_39 = arith.constant dense<0xFF800000> : vector<128xf32>
    %71 = vector.multi_reduction <maximumf>, %70, %cst_39 [1] : vector<128x128xf32> to vector<128xf32>
    %72 = vector.shape_cast %71 : vector<128xf32> to vector<128x1xf32>
    %73 = vector.broadcast %72 : vector<128x1xf32> to vector<128x128xf32>
    %74 = arith.subf %70, %73 : vector<128x128xf32>
    %75 = math.exp %74 : vector<128x128xf32>
    %76 = arith.truncf %75 : vector<128x128xf32> to vector<128x128xbf16>
    %77 = arith.truncf %58 : vector<128x128xf32> to vector<128x128xbf16>
    %cst_40 = arith.constant dense<0.000000e+00> : vector<128x128xf32>
    %78 = tpu.matmul %76, %77, %cst_40 {dimension_numbers = #tpu.dot_dimension_numbers<[1], [0], [0], [1], [0, 0, 1, 1], [], []>} : vector<128x128xbf16>, vector<128x128xbf16>, vector<128x128xf32> -> vector<128x128xf32>
    %79 = vector.extract_strided_slice %78 {offsets = [0, 10], sizes = [128, 1], strides = [1, 1]} : vector<128x128xf32> to vector<128x1xf32>
    %80 = tpu.reciprocal %79 {approx = true} : vector<128x1xf32> -> vector<128x1xf32>
    %81 = vector.broadcast %80 : vector<128x1xf32> to vector<128x128xf32>
    %82 = arith.mulf %78, %81 : vector<128x128xf32>
    %83 = vector.broadcast %59 : vector<1x128xf32> to vector<128x128xf32>
    %84 = arith.addf %82, %83 : vector<128x128xf32>
    %cst_41 = arith.constant 0.000000e+00 : f32
    %85 = vector.broadcast %cst_41 : f32 to vector<128x128xf32>
    %86 = arith.maximumf %84, %85 : vector<128x128xf32>
    %87 = arith.truncf %86 : vector<128x128xf32> to vector<128x128xbf16>
    %c0_42 = arith.constant 0 : index
    %c128_43 = arith.constant 128 : index
    %88 = vector.load %arg14[%c0_42, %c128_43] : memref<128x512xbf16, #tpu.memory_space<vmem>>, vector<128x128xbf16>
    tpu.vector_store %arg14[%c0_42, %c128_43], %87 {strides = array<i32>} : memref<128x512xbf16, #tpu.memory_space<vmem>>, vector<128x128xbf16>,
    %c0_44 = arith.constant 0 : index
    %c256 = arith.constant 256 : index
    %89 = vector.load %arg13[%c0_44, %c256] : memref<128x512xf32, #tpu.memory_space<vmem>>, vector<128x128xf32>
    %c2 = arith.constant 2 : index
    %c0_45 = arith.constant 0 : index
    %90 = vector.load %arg9[%c2, %c0_45] : memref<8x128xf32, #tpu.memory_space<vmem>>, vector<1x128xf32>
    %91 = vector.extract_strided_slice %89 {offsets = [0, 11], sizes = [128, 1], strides = [1, 1]} : vector<128x128xf32> to vector<128x1xf32>
    %92 = tpu.transpose %91, [1, 0] : vector<128x1xf32> -> vector<1x128xf32>
    %93 = vector.extract_strided_slice %89 {offsets = [0, 12], sizes = [128, 1], strides = [1, 1]} : vector<128x128xf32> to vector<128x1xf32>
    %94 = vector.broadcast %93 : vector<128x1xf32> to vector<128x128xf32>
    %95 = vector.broadcast %92 : vector<1x128xf32> to vector<128x128xf32>
    %96 = arith.addf %94, %95 : vector<128x128xf32>
    %cst_46 = arith.constant 2.000000e-01 : f32
    %97 = vector.broadcast %cst_46 : f32 to vector<128x128xf32>
    %98 = arith.mulf %97, %96 : vector<128x128xf32>
    %99 = arith.maximumf %96, %98 : vector<128x128xf32>
    %c0_47 = arith.constant 0 : index
    %c0_48 = arith.constant 0 : index
    %100 = vector.load %arg1[%c0_47, %c0_48] : memref<128x128xf32, #tpu.memory_space<vmem>>, vector<128x128xf32>
    %101 = arith.addf %99, %100 : vector<128x128xf32>
    %cst_49 = arith.constant dense<0xFF800000> : vector<128xf32>
    %102 = vector.multi_reduction <maximumf>, %101, %cst_49 [1] : vector<128x128xf32> to vector<128xf32>
    %103 = vector.shape_cast %102 : vector<128xf32> to vector<128x1xf32>
    %104 = vector.broadcast %103 : vector<128x1xf32> to vector<128x128xf32>
    %105 = arith.subf %101, %104 : vector<128x128xf32>
    %106 = math.exp %105 : vector<128x128xf32>
    %107 = arith.truncf %106 : vector<128x128xf32> to vector<128x128xbf16>
    %108 = arith.truncf %89 : vector<128x128xf32> to vector<128x128xbf16>
    %cst_50 = arith.constant dense<0.000000e+00> : vector<128x128xf32>
    %109 = tpu.matmul %107, %108, %cst_50 {dimension_numbers = #tpu.dot_dimension_numbers<[1], [0], [0], [1], [0, 0, 1, 1], [], []>} : vector<128x128xbf16>, vector<128x128xbf16>, vector<128x128xf32> -> vector<128x128xf32>
    %110 = vector.extract_strided_slice %109 {offsets = [0, 10], sizes = [128, 1], strides = [1, 1]} : vector<128x128xf32> to vector<128x1xf32>
    %111 = tpu.reciprocal %110 {approx = true} : vector<128x1xf32> -> vector<128x1xf32>
    %112 = vector.broadcast %111 : vector<128x1xf32> to vector<128x128xf32>
    %113 = arith.mulf %109, %112 : vector<128x128xf32>
    %114 = vector.broadcast %90 : vector<1x128xf32> to vector<128x128xf32>
    %115 = arith.addf %113, %114 : vector<128x128xf32>
    %cst_51 = arith.constant 0.000000e+00 : f32
    %116 = vector.broadcast %cst_51 : f32 to vector<128x128xf32>
    %117 = arith.maximumf %115, %116 : vector<128x128xf32>
    %118 = arith.truncf %117 : vector<128x128xf32> to vector<128x128xbf16>
    %c0_52 = arith.constant 0 : index
    %c256_53 = arith.constant 256 : index
    %119 = vector.load %arg14[%c0_52, %c256_53] : memref<128x512xbf16, #tpu.memory_space<vmem>>, vector<128x128xbf16>
    tpu.vector_store %arg14[%c0_52, %c256_53], %118 {strides = array<i32>} : memref<128x512xbf16, #tpu.memory_space<vmem>>, vector<128x128xbf16>,
    %c0_54 = arith.constant 0 : index
    %c384 = arith.constant 384 : index
    %120 = vector.load %arg13[%c0_54, %c384] : memref<128x512xf32, #tpu.memory_space<vmem>>, vector<128x128xf32>
    %c3 = arith.constant 3 : index
    %c0_55 = arith.constant 0 : index
    %121 = vector.load %arg9[%c3, %c0_55] : memref<8x128xf32, #tpu.memory_space<vmem>>, vector<1x128xf32>
    %122 = vector.extract_strided_slice %120 {offsets = [0, 11], sizes = [128, 1], strides = [1, 1]} : vector<128x128xf32> to vector<128x1xf32>
    %123 = tpu.transpose %122, [1, 0] : vector<128x1xf32> -> vector<1x128xf32>
    %124 = vector.extract_strided_slice %120 {offsets = [0, 12], sizes = [128, 1], strides = [1, 1]} : vector<128x128xf32> to vector<128x1xf32>
    %125 = vector.broadcast %124 : vector<128x1xf32> to vector<128x128xf32>
    %126 = vector.broadcast %123 : vector<1x128xf32> to vector<128x128xf32>
    %127 = arith.addf %125, %126 : vector<128x128xf32>
    %cst_56 = arith.constant 2.000000e-01 : f32
    %128 = vector.broadcast %cst_56 : f32 to vector<128x128xf32>
    %129 = arith.mulf %128, %127 : vector<128x128xf32>
    %130 = arith.maximumf %127, %129 : vector<128x128xf32>
    %c0_57 = arith.constant 0 : index
    %c0_58 = arith.constant 0 : index
    %131 = vector.load %arg1[%c0_57, %c0_58] : memref<128x128xf32, #tpu.memory_space<vmem>>, vector<128x128xf32>
    %132 = arith.addf %130, %131 : vector<128x128xf32>
    %cst_59 = arith.constant dense<0xFF800000> : vector<128xf32>
    %133 = vector.multi_reduction <maximumf>, %132, %cst_59 [1] : vector<128x128xf32> to vector<128xf32>
    %134 = vector.shape_cast %133 : vector<128xf32> to vector<128x1xf32>
    %135 = vector.broadcast %134 : vector<128x1xf32> to vector<128x128xf32>
    %136 = arith.subf %132, %135 : vector<128x128xf32>
    %137 = math.exp %136 : vector<128x128xf32>
    %138 = arith.truncf %137 : vector<128x128xf32> to vector<128x128xbf16>
    %139 = arith.truncf %120 : vector<128x128xf32> to vector<128x128xbf16>
    %cst_60 = arith.constant dense<0.000000e+00> : vector<128x128xf32>
    %140 = tpu.matmul %138, %139, %cst_60 {dimension_numbers = #tpu.dot_dimension_numbers<[1], [0], [0], [1], [0, 0, 1, 1], [], []>} : vector<128x128xbf16>, vector<128x128xbf16>, vector<128x128xf32> -> vector<128x128xf32>
    %141 = vector.extract_strided_slice %140 {offsets = [0, 10], sizes = [128, 1], strides = [1, 1]} : vector<128x128xf32> to vector<128x1xf32>
    %142 = tpu.reciprocal %141 {approx = true} : vector<128x1xf32> -> vector<128x1xf32>
    %143 = vector.broadcast %142 : vector<128x1xf32> to vector<128x128xf32>
    %144 = arith.mulf %140, %143 : vector<128x128xf32>
    %145 = vector.broadcast %121 : vector<1x128xf32> to vector<128x128xf32>
    %146 = arith.addf %144, %145 : vector<128x128xf32>
    %cst_61 = arith.constant 0.000000e+00 : f32
    %147 = vector.broadcast %cst_61 : f32 to vector<128x128xf32>
    %148 = arith.maximumf %146, %147 : vector<128x128xf32>
    %149 = arith.truncf %148 : vector<128x128xf32> to vector<128x128xbf16>
    %c0_62 = arith.constant 0 : index
    %c384_63 = arith.constant 384 : index
    %150 = vector.load %arg14[%c0_62, %c384_63] : memref<128x512xbf16, #tpu.memory_space<vmem>>, vector<128x128xbf16>
    tpu.vector_store %arg14[%c0_62, %c384_63], %149 {strides = array<i32>} : memref<128x512xbf16, #tpu.memory_space<vmem>>, vector<128x128xbf16>,
    %c0_64 = arith.constant 0 : index
    %c0_65 = arith.constant 0 : index
    %151 = vector.load %arg14[%c0_64, %c0_65] : memref<128x512xbf16, #tpu.memory_space<vmem>>, vector<128x512xbf16>
    %c0_66 = arith.constant 0 : index
    %c0_67 = arith.constant 0 : index
    %152 = vector.load %arg10[%c0_66, %c0_67] : memref<512x128xbf16, #tpu.memory_space<vmem>>, vector<512x128xbf16>
    %cst_68 = arith.constant dense<0.000000e+00> : vector<128x128xf32>
    %153 = tpu.matmul %151, %152, %cst_68 {dimension_numbers = #tpu.dot_dimension_numbers<[1], [0], [0], [1], [0, 0, 1, 1], [], []>} : vector<128x512xbf16>, vector<512x128xbf16>, vector<128x128xf32> -> vector<128x128xf32>
    %c0_69 = arith.constant 0 : index
    %c0_70 = arith.constant 0 : index
    %154 = vector.load %arg11[%c0_69, %c0_70] : memref<1x128xf32, #tpu.memory_space<vmem>>, vector<1x128xf32>
    %155 = vector.extract_strided_slice %153 {offsets = [0, 9], sizes = [128, 1], strides = [1, 1]} : vector<128x128xf32> to vector<128x1xf32>
    %156 = tpu.transpose %155, [1, 0] : vector<128x1xf32> -> vector<1x128xf32>
    %157 = vector.extract_strided_slice %153 {offsets = [0, 10], sizes = [128, 1], strides = [1, 1]} : vector<128x128xf32> to vector<128x1xf32>
    %158 = vector.broadcast %157 : vector<128x1xf32> to vector<128x128xf32>
    %159 = vector.broadcast %156 : vector<1x128xf32> to vector<128x128xf32>
    %160 = arith.addf %158, %159 : vector<128x128xf32>
    %cst_71 = arith.constant 2.000000e-01 : f32
    %161 = vector.broadcast %cst_71 : f32 to vector<128x128xf32>
    %162 = arith.mulf %161, %160 : vector<128x128xf32>
    %163 = arith.maximumf %160, %162 : vector<128x128xf32>
    %c0_72 = arith.constant 0 : index
    %c0_73 = arith.constant 0 : index
    %164 = vector.load %arg1[%c0_72, %c0_73] : memref<128x128xf32, #tpu.memory_space<vmem>>, vector<128x128xf32>
    %165 = arith.addf %163, %164 : vector<128x128xf32>
    %cst_74 = arith.constant dense<0xFF800000> : vector<128xf32>
    %166 = vector.multi_reduction <maximumf>, %165, %cst_74 [1] : vector<128x128xf32> to vector<128xf32>
    %167 = vector.shape_cast %166 : vector<128xf32> to vector<128x1xf32>
    %168 = vector.broadcast %167 : vector<128x1xf32> to vector<128x128xf32>
    %169 = arith.subf %165, %168 : vector<128x128xf32>
    %170 = math.exp %169 : vector<128x128xf32>
    %171 = arith.truncf %170 : vector<128x128xf32> to vector<128x128xbf16>
    %172 = arith.truncf %153 : vector<128x128xf32> to vector<128x128xbf16>
    %cst_75 = arith.constant dense<0.000000e+00> : vector<128x128xf32>
    %173 = tpu.matmul %171, %172, %cst_75 {dimension_numbers = #tpu.dot_dimension_numbers<[1], [0], [0], [1], [0, 0, 1, 1], [], []>} : vector<128x128xbf16>, vector<128x128xbf16>, vector<128x128xf32> -> vector<128x128xf32>
    %174 = vector.extract_strided_slice %173 {offsets = [0, 8], sizes = [128, 1], strides = [1, 1]} : vector<128x128xf32> to vector<128x1xf32>
    %175 = tpu.reciprocal %174 {approx = true} : vector<128x1xf32> -> vector<128x1xf32>
    %176 = vector.broadcast %175 : vector<128x1xf32> to vector<128x128xf32>
    %177 = arith.mulf %173, %176 : vector<128x128xf32>
    %178 = vector.broadcast %154 : vector<1x128xf32> to vector<128x128xf32>
    %179 = arith.addf %177, %178 : vector<128x128xf32>
    %180 = arith.negf %179 : vector<128x128xf32>
    %181 = math.exp %180 : vector<128x128xf32>
    %cst_76 = arith.constant 1.000000e+00 : f32
    %182 = vector.broadcast %cst_76 : f32 to vector<128x128xf32>
    %183 = arith.addf %182, %181 : vector<128x128xf32>
    %184 = arith.divf %182, %183 : vector<128x128xf32>
    %cst_77 = arith.constant 2.560000e+02 : f32
    %185 = vector.broadcast %cst_77 : f32 to vector<128x128xf32>
    %186 = arith.mulf %184, %185 : vector<128x128xf32>
    %c0_78 = arith.constant 0 : index
    %c0_79 = arith.constant 0 : index
    %187 = vector.load %arg12[%c0_78, %c0_79] : memref<128x128xf32, #tpu.memory_space<vmem>>, vector<128x128xf32>
    tpu.vector_store %arg12[%c0_78, %c0_79], %186 {strides = array<i32>} : memref<128x128xf32, #tpu.memory_space<vmem>>, vector<128x128xf32>,
    return
  }
}

</mosaic_0001>

<bundles_post_ra>
// kernel: lnle_forward.1
= control target key start
LH: loop header
LB: loop body
LE: loop exit
PB: predicated region body
PF: predicated region fallthrough
CT: control target
= control target key end

     0   :  { %17 = vsyncpa [#allocation5], 0  ;;  %s8507_s0 = inlined_call_operand.vmem [shape: f32[128,8], index: 0, kind: input, shape index: {}]   ;;  %s8508_s1 = inlined_call_operand.vmem [shape: f32[128,128], index: 1, kind: input, shape index: {}]   ;;  %s8509_s2 = inlined_call_operand.vmem [shape: bf16[8,256], index: 2, kind: input, shape index: {}]   ;;  %s8510_s3 = inlined_call_operand.vmem [shape: f32[1,256], index: 3, kind: input, shape index: {}]   ;;  %s8511_s4 = inlined_call_operand.hbm [shape: bf16[256,256], index: 4, kind: input, shape index: {}]   ;;  %s8512_s5 = inlined_call_operand.vmem [shape: f32[1,256], index: 5, kind: input, shape index: {}]   ;;  %s8513_s6 = inlined_call_operand.hbm [shape: bf16[256,128], index: 6, kind: input, shape index: {}]   ;;  %s8514_s7 = inlined_call_operand.vmem [shape: f32[1,128], index: 7, kind: input, shape index: {}]   ;;  %s8515_s8 = inlined_call_operand.hbm [shape: bf16[128,512], index: 8, kind: input, shape index: {}]   ;;  %s8516_s9 = inlined_call_operand.vmem [shape: f32[8,128], index: 9, kind: input, shape index: {}]   ;;  %s8517_s10 = inlined_call_operand.hbm [shape: bf16[512,128], index: 10, kind: input, shape index: {}]   ;;  %s8518_s11 = inlined_call_operand.vmem [shape: f32[1,128], index: 11, kind: input, shape index: {}]   ;;  %s8519_s12 = inlined_call_operand.vmem [shape: f32[128,128], index: 12, kind: output, shape index: {}]  }
   0x1   :  { %18 = vsyncpa [#allocation7], 0 }
   0x2   :  { %19 = vsyncpa [#allocation10], 0  ;;  %s6319_s21 = smov [#allocation6]   ;;  %s6225_s25 = scalar_lea.hbm %s8513_s6, 2048 }
   0x3   :  { %s47_s22 = sshll.u32 %s6319_s21, 4  ;;  %p6226_p0 = scmp.ne.s32.totalorder %s8513_s6, %s6225_s25  ;;  %s48_s22 = int_to_ptr.vmem [resolvable:$true] %s47_s22 }
   0x4   :  { %p6229_p1 = scmp.lt.u32.totalorder %s6225_s25, %s8513_s6 }
   0x6   :  { %p6231_p2 = pnand %p6229_p1, %p6226_p0 }
   0x8   :  { %6234 = shalt.err (!%p6231_p2)
}
   0x9   :  { %s6235_s30 = scalar_lea.vmem %s48_s22, 2048  ;;  %p6240_p4 = scmp.lt.s32.totalorder %s48_s22, %s48_s22 }
   0xa   :  { %p6236_p3 = scmp.ne.s32.totalorder %s48_s22, %s6235_s30  ;;  %p6241_p5 = scmp.lt.s32.totalorder %s6235_s30, %s6235_s30 }
   0xc   :  { %p6242_p6 = por %p6241_p5, %p6240_p4 }
   0xe   :  { %p6243_p7 = pnand %p6242_p6, %p6236_p3 }
  0x10   :  { %6246 = shalt.err (!%p6243_p7)
}
  0x11   :  { %s6320_s13 = smov 64   ;;  %s6321_s14 = smov 4  }
  0x12   :  { %53 = dma.hbm_to_vmem [thread:$0]  %s8513_s6, 2048, %s48_s22, [#allocation7], %s6320_s13, %s6320_s13, %s6321_s14  }
  0x13   :  { %s6322_s17 = smov [#allocation4]   ;;  %s6247_s21 = scalar_lea.hbm %s8511_s4, 4096 }
  0x14   :  { %s33_s18 = sshll.u32 %s6322_s17, 4  ;;  %p6248_p8 = scmp.ne.s32.totalorder %s8511_s4, %s6247_s21  ;;  %s34_s18 = int_to_ptr.vmem [resolvable:$true] %s33_s18 }
  0x15   :  { %p6251_p9 = scmp.lt.u32.totalorder %s6247_s21, %s8511_s4 }
  0x17   :  { %p6253_p10 = pnand %p6251_p9, %p6248_p8 }
  0x19   :  { %6256 = shalt.err (!%p6253_p10)
}
  0x1a   :  { %s6257_s27 = scalar_lea.vmem %s34_s18, 4096  ;;  %p6262_p12 = scmp.lt.s32.totalorder %s34_s18, %s34_s18 }
  0x1b   :  { %p6258_p11 = scmp.ne.s32.totalorder %s34_s18, %s6257_s27  ;;  %p6263_p13 = scmp.lt.s32.totalorder %s6257_s27, %s6257_s27 }
  0x1d   :  { %p6264_p0 = por %p6263_p13, %p6262_p12 }
  0x1f   :  { %p6265_p1 = pnand %p6264_p0, %p6258_p11 }
  0x21   :  { %6268 = shalt.err (!%p6265_p1)
}
  0x22   :  { %s6323_s6 = smov 128   ;;  %s6324_s22 = smov 8  }
  0x23   :  { %39 = dma.hbm_to_vmem [thread:$0]  %s8511_s4, 4096, %s34_s18, [#allocation5], %s6323_s6, %s6323_s6, %s6324_s22  }
  0x24   :  { %s6325_s30 = smov [#allocation8]   ;;  %s6269_s19 = scalar_lea.hbm %s8515_s8, 4096 }
  0x25   :  { %s61_s15 = sshll.u32 %s6325_s30, 4  ;;  %p6270_p2 = scmp.ne.s32.totalorder %s8515_s8, %s6269_s19  ;;  %s62_s15 = int_to_ptr.vmem [resolvable:$true] %s61_s15 }
  0x26   :  { %p6273_p3 = scmp.lt.u32.totalorder %s6269_s19, %s8515_s8 }
  0x28   :  { %p6275_p4 = pnand %p6273_p3, %p6270_p2 }
  0x2a   :  { %6278 = shalt.err (!%p6275_p4)
}
  0x2b   :  { %s6279_s25 = scalar_lea.vmem %s62_s15, 4096  ;;  %p6284_p6 = scmp.lt.s32.totalorder %s62_s15, %s62_s15 }
  0x2c   :  { %p6280_p5 = scmp.ne.s32.totalorder %s62_s15, %s6279_s25  ;;  %p6285_p7 = scmp.lt.s32.totalorder %s6279_s25, %s6279_s25 }
  0x2e   :  { %p6286_p8 = por %p6285_p7, %p6284_p6 }
  0x30   :  { %p6287_p9 = pnand %p6286_p8, %p6280_p5 }
  0x32   :  { %6290 = shalt.err (!%p6287_p9)
}
  0x33   :  { %s6326_s4 = smov 256   ;;  %s6327_s18 = smov 16  }
  0x34   :  { %67 = dma.hbm_to_vmem [thread:$0]  %s8515_s8, 4096, %s62_s15, [#allocation7], %s6326_s4, %s6326_s4, %s6327_s18  }
  0x35   :  { %s6328_s6 = smov [#allocation9]   ;;  %s6291_s30 = scalar_lea.hbm %s8517_s10, 4096 }
  0x36   :  { %s75_s22 = sshll.u32 %s6328_s6, 4  ;;  %p6292_p10 = scmp.ne.s32.totalorder %s8517_s10, %s6291_s30  ;;  %s76_s22 = int_to_ptr.vmem [resolvable:$true] %s75_s22 }
  0x37   :  { %p6295_p11 = scmp.lt.u32.totalorder %s6291_s30, %s8517_s10 }
  0x39   :  { %p6297_p12 = pnand %p6295_p11, %p6292_p10 }
  0x3b   :  { %6300 = shalt.err (!%p6297_p12)
}
  0x3c   :  { %s6301_s21 = scalar_lea.vmem %s76_s22, 4096  ;;  %p6306_p0 = scmp.lt.s32.totalorder %s76_s22, %s76_s22 }
  0x3d   :  { %p6302_p13 = scmp.ne.s32.totalorder %s76_s22, %s6301_s21  ;;  %p6307_p1 = scmp.lt.s32.totalorder %s6301_s21, %s6301_s21 }
  0x3f   :  { %p6308_p2 = por %p6307_p1, %p6306_p0 }
  0x41   :  { %p6309_p3 = pnand %p6308_p2, %p6302_p13 }
  0x43   :  { %6312 = shalt.err (!%p6309_p3)
}
  0x44   :  { %81 = dma.hbm_to_vmem [thread:$0]  %s8517_s10, 4096, %s76_s22, [#allocation10], %s6320_s13, %s6320_s13, %s6321_s14  }
  0x45   :  { %6313 = dma.done.wait [#allocation5], 4096  }
  0x46   :  { %6314 = vsyncadd [#allocation5], 4294963200 }
  0x47   :  { %6315 = dma.done.wait [#allocation7], 6144  }
  0x48   :  { %6316 = vsyncadd [#allocation7], 4294961152 }
  0x49   :  { %6317 = dma.done.wait [#allocation10], 4096  }
  0x4a   :  { %6318 = vsyncadd [#allocation10], 4294963200  ;;  %v6329_v0 = vmov 0   ;;  %v121_v1 = vld [vmem:[%s8509_s2] sm:$0xff]  ;;  %vm164_vm0 = vcmask 1043456   ;;  %v98_v3 = vld [vmem:[%s8507_s0 + $0x8] sm:$0xff] }
  0x4b   :  { %203 = vmatprep.mubr.bf16.mxu0 %v6329_v0  ;;  %v97_v2 = vld [vmem:[%s8507_s0] sm:$0xff]  ;;  %v5081_v4 = vcombine.high %v121_v1, %v121_v1  ;;  %v5080_v5 = vcombine.low %v121_v1, %v121_v1  ;;  %vm139_vm1 = vcmask 64512   ;;  %v99_v8 = vld [vmem:[%s8507_s0 + $0x10] sm:$0xff]  ;;  %v100_v12 = vld [vmem:[%s8507_s0 + $0x18] sm:$0xff] }
  0x4c   :  { %v113_v7 = vpack.c.bf16 %v98_v3, %v97_v2  ;;  %v5697_v9 = vld [vmem:[#allocation4 + $0x4] ss:$8 sps:$4 sm:$0xff]   ;;  %v5699_v10 = vld [vmem:[#allocation4] ss:$8 sps:$4 sm:$0xff]   ;;  %v5700_v11 = vld [vmem:[#allocation4 + $0x14] ss:$8 sps:$4 sm:$0xff]   ;;  %v114_v15 = vpack.c.bf16 %v100_v12, %v99_v8  ;;  %v124_v12 = vlaneseq }
  0x4d   :  { %5082 = vmatprep.subr.msk.bf16.mxu0 %vm164_vm0, %v5081_v4  ;;  %v166_v6 = vsel %vm164_vm0, %v5080_v5, 0  ;;  %536 = vmatprep.subr.bf16.mxu1 %v5697_v9  ;;  %v5702_v13 = vld [vmem:[#allocation4 + $0x10] ss:$8 sps:$4 sm:$0xff]   ;;  %v5703_v14 = vld [vmem:[#allocation4 + $0x24] ss:$8 sps:$4 sm:$0xff]  }
  0x4e   :  { %172 = vmatpush1.bf16.msra.mxu0 %v166_v6  ;;  %537 = vmatpush1.bf16.msra.mxu1 %v5699_v10  ;;  %v5705_v16 = vld [vmem:[#allocation4 + $0x20] ss:$8 sps:$4 sm:$0xff]   ;;  %v5706_v17 = vld [vmem:[#allocation4 + $0x34] ss:$8 sps:$4 sm:$0xff]   ;;  %v5708_v20 = vld [vmem:[#allocation4 + $0x30] ss:$8 sps:$4 sm:$0xff]  }
  0x4f   :  { %538 = vmatprep.subr.bf16.mxu1 %v5700_v11  ;;  %v101_v18 = vld [vmem:[%s8507_s0 + $0x20] sm:$0xff]  ;;  %v102_v19 = vld [vmem:[%s8507_s0 + $0x28] sm:$0xff]  ;;  %v103_v24 = vld [vmem:[%s8507_s0 + $0x30] sm:$0xff] }
  0x50   :  { %v5709_v21 = vld [vmem:[#allocation4 + $0x44] ss:$8 sps:$4 sm:$0xff]   ;;  %v115_v22 = vpack.c.bf16 %v102_v19, %v101_v18  ;;  %v5711_v23 = vld [vmem:[#allocation4 + $0x40] ss:$8 sps:$4 sm:$0xff]   ;;  %v104_v25 = vld [vmem:[%s8507_s0 + $0x38] sm:$0xff] }
  0x51   :  { %5083 = vmatmul.mubr.msk.bf16.vlgmr.msra.gmra.mrb[0].mxu0 %vm139_vm1, %v113_v7  ;;  %v5712_v26 = vld [vmem:[#allocation4 + $0x54] ss:$8 sps:$4 sm:$0xff]   ;;  %v5714_v27 = vld [vmem:[#allocation4 + $0x50] ss:$8 sps:$4 sm:$0xff]   ;;  %v5715_v28 = vld [vmem:[#allocation4 + $0x64] ss:$8 sps:$4 sm:$0xff]   ;;  %v116_v29 = vpack.c.bf16 %v104_v25, %v103_v24 }
  0x52   :  { %213 = vmatprep.mubr.bf16.mxu0 %v6329_v0  ;;  %539 = vmatpush1.bf16.msra.mxu1 %v5702_v13  ;;  %v5717_v30 = vld [vmem:[#allocation4 + $0x60] ss:$8 sps:$4 sm:$0xff]   ;;  %v5718_v31 = vld [vmem:[#allocation4 + $0x74] ss:$8 sps:$4 sm:$0xff]   ;;  %v5720_v34 = vld [vmem:[#allocation4 + $0x70] ss:$8 sps:$4 sm:$0xff]  }
  0x53   :  { %540 = vmatprep.subr.bf16.mxu1 %v5703_v14  ;;  %v105_v32 = vld [vmem:[%s8507_s0 + $0x40] sm:$0xff]  ;;  %v106_v33 = vld [vmem:[%s8507_s0 + $0x48] sm:$0xff]  ;;  %v107_v39 = vld [vmem:[%s8507_s0 + $0x50] sm:$0xff]  ;;  %v6521_v13 = vshrl.u32 %v124_v12, 7 }
  0x54   :  { %v5721_v35 = vld [vmem:[#allocation4 + $0x84] ss:$8 sps:$4 sm:$0xff]   ;;  %v117_v36 = vpack.c.bf16 %v106_v33, %v105_v32  ;;  %v5723_v37 = vld [vmem:[#allocation4 + $0x80] ss:$8 sps:$4 sm:$0xff]   ;;  %v5724_v38 = vld [vmem:[#allocation4 + $0x94] ss:$8 sps:$4 sm:$0xff]  }
  0x55   :  { %v108_v40 = vld [vmem:[%s8507_s0 + $0x58] sm:$0xff]  ;;  %v5727_v42 = vld [vmem:[#allocation4 + $0xa4] ss:$8 sps:$4 sm:$0xff]   ;;  %v5729_v44 = vld [vmem:[#allocation4 + $0xa0] ss:$8 sps:$4 sm:$0xff]   ;;  %v6524_v14 = vsub.s32 0, %v6521_v13 }
  0x56   :  { %541 = vmatpush1.bf16.msra.mxu1 %v5705_v16  ;;  %v5726_v41 = vld [vmem:[#allocation4 + $0x90] ss:$8 sps:$4 sm:$0xff]   ;;  %v118_v43 = vpack.c.bf16 %v108_v40, %v107_v39  ;;  %v5730_v45 = vld [vmem:[#allocation4 + $0xb4] ss:$8 sps:$4 sm:$0xff]   ;;  %v110_v47 = vld [vmem:[%s8507_s0 + $0x68] sm:$0xff]  ;;  %v130_v16 = vsub.s32 1, %v6521_v13 }
  0x57   :  { %542 = vmatprep.subr.bf16.mxu1 %v5706_v17  ;;  %v109_v46 = vld [vmem:[%s8507_s0 + $0x60] sm:$0xff]  ;;  %v5733_v49 = vld [vmem:[#allocation4 + $0xc4] ss:$8 sps:$4 sm:$0xff]   ;;  %v5735_v51 = vld [vmem:[#allocation4 + $0xc0] ss:$8 sps:$4 sm:$0xff]   ;;  %8573 = vst [vmem:[#allocation14_spill] sm:$0xff] %v6524_v14 }
  0x58   :  { %v5732_v48 = vld [vmem:[#allocation4 + $0xb0] ss:$8 sps:$4 sm:$0xff]   ;;  %v119_v50 = vpack.c.bf16 %v110_v47, %v109_v46  ;;  %v5736_v52 = vld [vmem:[#allocation4 + $0xd4] ss:$8 sps:$4 sm:$0xff]   ;;  %v111_v53 = vld [vmem:[%s8507_s0 + $0x70] sm:$0xff] }
  0x59   :  { %5084 = vmatmul.mubr.msk.bf16.gmra.mrb[4].mxu0 %vm139_vm1, %v114_v15  ;;  %v112_v54 = vld [vmem:[%s8507_s0 + $0x78] sm:$0xff]  ;;  %v5739_v57 = vld [vmem:[#allocation4 + $0xe4] ss:$8 sps:$4 sm:$0xff]   ;;  %v5741_v58 = vld [vmem:[#allocation4 + $0xe0] ss:$8 sps:$4 sm:$0xff]  }
  0x5a   :  { %223 = vmatprep.mubr.bf16.mxu0 %v6329_v0  ;;  %543 = vmatpush1.bf16.msra.mxu1 %v5708_v20  ;;  %v120_v55 = vpack.c.bf16 %v112_v54, %v111_v53  ;;  %v5738_v56 = vld [vmem:[#allocation4 + $0xd0] ss:$8 sps:$4 sm:$0xff]   ;;  %v5742_v59 = vld [vmem:[#allocation4 + $0xf4] ss:$8 sps:$4 sm:$0xff]   ;;  %v5745_v61 = vld [vmem:[#allocation6 + $0x40] sm:$0xff]  }
  0x5b   :  { %544 = vmatprep.subr.bf16.mxu1 %v5709_v21  ;;  %v5744_v60 = vld [vmem:[#allocation4 + $0xf0] ss:$8 sps:$4 sm:$0xff]   ;;  %v5746_v62 = vld [vmem:[#allocation6] sm:$0xff]   ;;  %v5747_v63 = vld [vmem:[#allocation6 + $0x48] sm:$0xff]   ;;  %5225 = vmatprep.subr.bf16.mxu0 %v5745_v61 }
  0x5c   :  { %5226 = vmatpush3.bf16.msra.mxu0 %v5746_v62  ;;  %v5748_v1 = vld [vmem:[#allocation6 + $0x8] sm:$0xff]   ;;  %v5749_v2 = vld [vmem:[#allocation6 + $0x50] sm:$0xff]   ;;  %v5751_v4 = vld [vmem:[#allocation6 + $0x58] sm:$0xff]  }
  0x5d   :  { %5227 = vmatprep.subr.bf16.mxu0 %v5747_v63  ;;  %v5750_v3 = vld [vmem:[#allocation6 + $0x10] sm:$0xff]   ;;  %v5752_v5 = vld [vmem:[#allocation6 + $0x18] sm:$0xff]   ;;  %v5753_v6 = vld [vmem:[#allocation6 + $0x60] sm:$0xff]  }
  0x5e   :  { %545 = vmatpush1.bf16.msra.mxu1 %v5711_v23  ;;  %v5754_v7 = vld [vmem:[#allocation6 + $0x20] sm:$0xff]   ;;  %v5755_v8 = vld [vmem:[#allocation6 + $0x68] sm:$0xff]   ;;  %v5757_v10 = vld [vmem:[#allocation6 + $0x70] sm:$0xff]  }
  0x5f   :  { %546 = vmatprep.subr.bf16.mxu1 %v5712_v26  ;;  %v5756_v9 = vld [vmem:[#allocation6 + $0x28] sm:$0xff]   ;;  %v5758_v11 = vld [vmem:[#allocation6 + $0x30] sm:$0xff]   ;;  %v122_v15 = vld [vmem:[%s8510_s3] sm:$0x3] }
  0x60   :  { %5228 = vmatpush3.bf16.msra.mxu0 %v5748_v1  ;;  %v6531_v17 = vrot.slane %v122_v15, %v6524_v14  ;;  %v6535_v18 = vrot.slane %v122_v15, %v130_v16 }
  0x61   :  { %5085 = vmatmul.mubr.msk.bf16.gmra.mrb[8].mxu0 %vm139_vm1, %v115_v22  ;;  %5229 = vmatprep.subr.bf16.mxu0 %v5749_v2 }
  0x62   :  { %233 = vmatprep.mubr.bf16.mxu0 %v6329_v0  ;;  %547 = vmatpush1.bf16.msra.mxu1 %v5714_v27 }
  0x63   :  { %548 = vmatprep.subr.bf16.mxu1 %v5715_v28 }
  0x64   :  { %5230 = vmatpush3.bf16.msra.mxu0 %v5750_v3 }
  0x65   :  { %5231 = vmatprep.subr.bf16.mxu0 %v5751_v4 }
  0x66   :  { %549 = vmatpush1.bf16.msra.mxu1 %v5717_v30 }
  0x67   :  { %550 = vmatprep.subr.bf16.mxu1 %v5718_v31 }
  0x68   :  { %5232 = vmatpush3.bf16.msra.mxu0 %v5752_v5 }
  0x69   :  { %5086 = vmatmul.mubr.msk.bf16.gmra.mrb[12].mxu0 %vm139_vm1, %v116_v29  ;;  %5233 = vmatprep.subr.bf16.mxu0 %v5753_v6 }
  0x6a   :  { %243 = vmatprep.mubr.bf16.mxu0 %v6329_v0  ;;  %551 = vmatpush1.bf16.msra.mxu1 %v5720_v34 }
  0x6b   :  { %552 = vmatprep.subr.bf16.mxu1 %v5721_v35 }
  0x6c   :  { %5234 = vmatpush3.bf16.msra.mxu0 %v5754_v7 }
  0x6d   :  { %5235 = vmatprep.subr.bf16.mxu0 %v5755_v8 }
  0x6e   :  { %553 = vmatpush1.bf16.msra.mxu1 %v5723_v37 }
  0x6f   :  { %554 = vmatprep.subr.bf16.mxu1 %v5724_v38 }
  0x70   :  { %5236 = vmatpush3.bf16.msra.mxu0 %v5756_v9 }
  0x71   :  { %5087 = vmatmul.mubr.msk.bf16.gmra.mrb[16].mxu0 %vm139_vm1, %v117_v36  ;;  %5237 = vmatprep.subr.bf16.mxu0 %v5757_v10 }
  0x72   :  { %253 = vmatprep.mubr.bf16.mxu0 %v6329_v0  ;;  %555 = vmatpush1.bf16.msra.mxu1 %v5726_v41 }
  0x73   :  { %556 = vmatprep.subr.bf16.mxu1 %v5727_v42 }
  0x74   :  { %5238 = vmatpush3.bf16.msra.mxu0 %v5758_v11 }
  0x76   :  { %557 = vmatpush1.bf16.msra.mxu1 %v5729_v44 }
  0x77   :  { %558 = vmatprep.subr.bf16.mxu1 %v5730_v45 }
  0x79   :  { %5088 = vmatmul.mubr.msk.bf16.gmra.mrb[20].mxu0 %vm139_vm1, %v118_v43 }
  0x7a   :  { %263 = vmatprep.mubr.bf16.mxu0 %v6329_v0  ;;  %559 = vmatpush1.bf16.msra.mxu1 %v5732_v48 }
  0x7b   :  { %560 = vmatprep.subr.bf16.mxu1 %v5733_v49 }
  0x7e   :  { %561 = vmatpush1.bf16.msra.mxu1 %v5735_v51 }
  0x7f   :  { %562 = vmatprep.subr.bf16.mxu1 %v5736_v52 }
  0x81   :  { %5089 = vmatmul.mubr.msk.bf16.gmra.mrb[24].mxu0 %vm139_vm1, %v119_v50 }
  0x82   :  { %273 = vmatprep.mubr.bf16.mxu0 %v6329_v0  ;;  %563 = vmatpush1.bf16.msra.mxu1 %v5738_v56 }
  0x83   :  { %564 = vmatprep.subr.bf16.mxu1 %v5739_v57 }
  0x86   :  { %565 = vmatpush1.bf16.msra.mxu1 %v5741_v58 }
  0x87   :  { %566 = vmatprep.subr.bf16.mxu1 %v5742_v59 }
  0x89   :  { %5090 = vmatmul.mubr.msk.bf16.gmra.mrb[28].mxu0 %vm139_vm1, %v120_v55 }
  0x8a   :  { %567 = vmatpush1.bf16.msra.mxu1 %v5744_v60 }
 0x124   :  { %v205_v19 = vpop.f32.mrb[0].mxu0 }
 0x125   :  { %v206_v20 = vadd.f32 %v205_v19, %v6531_v17  ;;  %v207_v21 = vpop.f32.mrb[1].mxu0 }
 0x126   :  { %v208_v22 = vadd.f32 %v207_v21, %v6535_v18  ;;  %v209_v23 = vpop.f32.mrb[2].mxu0 }
 0x127   :  { %v210_v24 = vadd.f32 %v209_v23, %v6531_v17  ;;  %v211_v25 = vpop.f32.mrb[3].mxu0  ;;  %v284_v27 = vmax.f32 %v206_v20, 0.0 }
 0x128   :  { %v212_v26 = vadd.f32 %v211_v25, %v6535_v18  ;;  %v285_v29 = vmax.f32 %v208_v22, 0.0 }
 0x129   :  { %v286_v28 = vmax.f32 %v210_v24, 0.0 }
 0x12a   :  { %v287_v30 = vmax.f32 %v212_v26, 0.0 }
 0x12b   :  { %v316_v31 = vpack.c.bf16 %v286_v28, %v284_v27 }
 0x12c   :  { %v215_v32 = vpop.f32.mrb[4].mxu0  ;;  %v317_v33 = vpack.c.bf16 %v287_v30, %v285_v29 }
 0x12d   :  { %v216_v34 = vadd.f32 %v215_v32, %v6531_v17  ;;  %v217_v35 = vpop.f32.mrb[5].mxu0 }
 0x12e   :  { %v218_v36 = vadd.f32 %v217_v35, %v6535_v18  ;;  %v219_v37 = vpop.f32.mrb[6].mxu0  ;;  %568 = vmatprep.mubr.bf16.mxu1 %v317_v33 }
 0x12f   :  { %v288_v38 = vmax.f32 %v216_v34, 0.0  ;;  %v220_v39 = vadd.f32 %v219_v37, %v6531_v17  ;;  %v221_v40 = vpop.f32.mrb[7].mxu0  ;;  %569 = vmatmul.mubr.bf16.vlgmr.msra.gmra.mrb[0].mxu1 %v316_v31 }
 0x130   :  { %v289_v41 = vmax.f32 %v218_v36, 0.0  ;;  %v222_v42 = vadd.f32 %v221_v40, %v6535_v18 }
 0x131   :  { %v290_v43 = vmax.f32 %v220_v39, 0.0 }
 0x132   :  { %v291_v44 = vmax.f32 %v222_v42, 0.0 }
 0x133   :  { %v318_v45 = vpack.c.bf16 %v290_v43, %v288_v38 }
 0x134   :  { %v319_v46 = vpack.c.bf16 %v291_v44, %v289_v41  ;;  %v225_v47 = vpop.f32.mrb[8].mxu0 }
 0x135   :  { %v226_v48 = vadd.f32 %v225_v47, %v6531_v17  ;;  %v227_v49 = vpop.f32.mrb[9].mxu0 }
 0x136   :  { %v228_v50 = vadd.f32 %v227_v49, %v6535_v18  ;;  %v229_v51 = vpop.f32.mrb[10].mxu0  ;;  %578 = vmatprep.mubr.bf16.mxu1 %v319_v46 }
 0x137   :  { %v292_v52 = vmax.f32 %v226_v48, 0.0  ;;  %v230_v53 = vadd.f32 %v229_v51, %v6531_v17  ;;  %v231_v54 = vpop.f32.mrb[11].mxu0  ;;  %579 = vmatmul.mubr.bf16.gmra.mrb[4].mxu1 %v318_v45 }
 0x138   :  { %v293_v55 = vmax.f32 %v228_v50, 0.0  ;;  %v232_v56 = vadd.f32 %v231_v54, %v6535_v18 }
 0x139   :  { %v294_v57 = vmax.f32 %v230_v53, 0.0 }
 0x13a   :  { %v295_v58 = vmax.f32 %v232_v56, 0.0 }
 0x13b   :  { %v320_v59 = vpack.c.bf16 %v294_v57, %v292_v52 }
 0x13c   :  { %v321_v60 = vpack.c.bf16 %v295_v58, %v293_v55  ;;  %v235_v61 = vpop.f32.mrb[12].mxu0 }
 0x13d   :  { %v236_v62 = vadd.f32 %v235_v61, %v6531_v17  ;;  %v237_v63 = vpop.f32.mrb[13].mxu0 }
 0x13e   :  { %v238_v1 = vadd.f32 %v237_v63, %v6535_v18  ;;  %v239_v2 = vpop.f32.mrb[14].mxu0  ;;  %588 = vmatprep.mubr.bf16.mxu1 %v321_v60 }
 0x13f   :  { %v296_v3 = vmax.f32 %v236_v62, 0.0  ;;  %v240_v4 = vadd.f32 %v239_v2, %v6531_v17  ;;  %v241_v5 = vpop.f32.mrb[15].mxu0  ;;  %589 = vmatmul.mubr.bf16.gmra.mrb[8].mxu1 %v320_v59 }
 0x140   :  { %v297_v6 = vmax.f32 %v238_v1, 0.0  ;;  %v242_v7 = vadd.f32 %v241_v5, %v6535_v18 }
 0x141   :  { %v298_v8 = vmax.f32 %v240_v4, 0.0 }
 0x142   :  { %v299_v9 = vmax.f32 %v242_v7, 0.0 }
 0x143   :  { %v322_v10 = vpack.c.bf16 %v298_v8, %v296_v3 }
 0x144   :  { %v323_v11 = vpack.c.bf16 %v299_v9, %v297_v6  ;;  %v245_v12 = vpop.f32.mrb[16].mxu0 }
 0x145   :  { %v246_v15 = vadd.f32 %v245_v12, %v6531_v17  ;;  %v247_v19 = vpop.f32.mrb[17].mxu0  ;;  %v5763_v12 = vld [vmem:[#allocation8 + $0xc] ss:$16 sps:$4 sm:$0xff]  }
 0x146   :  { %v248_v20 = vadd.f32 %v247_v19, %v6535_v18  ;;  %v249_v21 = vpop.f32.mrb[18].mxu0  ;;  %598 = vmatprep.mubr.bf16.mxu1 %v323_v11  ;;  %v5760_v11 = vld [vmem:[#allocation6 + $0x38] sm:$0xff]   ;;  %v5772_v19 = vld [vmem:[#allocation8 + $0x24] ss:$16 sps:$4 sm:$0xff]  }
 0x147   :  { %v300_v22 = vmax.f32 %v246_v15, 0.0  ;;  %v250_v23 = vadd.f32 %v249_v21, %v6531_v17  ;;  %v251_v24 = vpop.f32.mrb[19].mxu0  ;;  %599 = vmatmul.mubr.bf16.gmra.mrb[12].mxu1 %v322_v10  ;;  %v5759_v10 = vld [vmem:[#allocation6 + $0x78] sm:$0xff]   ;;  %v5764_v15 = vld [vmem:[#allocation8] ss:$16 sps:$4 sm:$0xff]  }
 0x148   :  { %v301_v25 = vmax.f32 %v248_v20, 0.0  ;;  %v252_v26 = vadd.f32 %v251_v24, %v6535_v18  ;;  %5239 = vmatprep.subr.bf16.mxu0 %v5759_v10  ;;  %v5778_v20 = vld [vmem:[#allocation8 + $0x44] ss:$16 sps:$4 sm:$0xff]   ;;  %v5776_v21 = vld [vmem:[#allocation8 + $0x40] ss:$16 sps:$4 sm:$0xff]  }
 0x149   :  { %v302_v27 = vmax.f32 %v250_v23, 0.0  ;;  %5240 = vmatpush3.bf16.msra.mxu0 %v5760_v11  ;;  %v5782_v23 = vld [vmem:[#allocation8 + $0x60] ss:$16 sps:$4 sm:$0xff]   ;;  %v5790_v24 = vld [vmem:[#allocation8 + $0x84] ss:$16 sps:$4 sm:$0xff]  }
 0x14a   :  { %v303_v28 = vmax.f32 %v252_v26, 0.0  ;;  %1242 = vmatprep.subr.bf16.mxu0 %v5763_v12  ;;  %v5796_v26 = vld [vmem:[#allocation8 + $0xa4] ss:$16 sps:$4 sm:$0xff]   ;;  %v5779_v12 = vld [vmem:[#allocation8 + $0x68] ss:$16 sps:$4 sm:$0xff]  }
 0x14b   :  { %v324_v29 = vpack.c.bf16 %v302_v27, %v300_v22  ;;  %v5784_v22 = vld [vmem:[#allocation8 + $0x64] ss:$16 sps:$4 sm:$0xff]   ;;  %v5794_v27 = vld [vmem:[#allocation8 + $0xa0] ss:$16 sps:$4 sm:$0xff]  }
 0x14c   :  { %v325_v30 = vpack.c.bf16 %v303_v28, %v301_v25  ;;  %v255_v31 = vpop.f32.mrb[20].mxu0  ;;  %v5788_v25 = vld [vmem:[#allocation8 + $0x80] ss:$16 sps:$4 sm:$0xff]   ;;  %v5802_v28 = vld [vmem:[#allocation8 + $0xc4] ss:$16 sps:$4 sm:$0xff]  }
 0x14d   :  { %v256_v32 = vadd.f32 %v255_v31, %v6531_v17  ;;  %v257_v33 = vpop.f32.mrb[21].mxu0 }
 0x14e   :  { %v258_v34 = vadd.f32 %v257_v33, %v6535_v18  ;;  %v259_v35 = vpop.f32.mrb[22].mxu0  ;;  %608 = vmatprep.mubr.bf16.mxu1 %v325_v30  ;;  %v364_v30 = vld [vmem:[%s8512_s5] sm:$0x3] }
 0x14f   :  { %v304_v36 = vmax.f32 %v256_v32, 0.0  ;;  %v260_v37 = vadd.f32 %v259_v35, %v6531_v17  ;;  %v261_v38 = vpop.f32.mrb[23].mxu0  ;;  %609 = vmatmul.mubr.bf16.gmra.mrb[16].mxu1 %v324_v29  ;;  %v5800_v29 = vld [vmem:[#allocation8 + $0xc0] ss:$16 sps:$4 sm:$0xff]   ;;  %v6574_v31 = vrot.slane %v364_v30, %v6524_v14  ;;  %v6578_v32 = vrot.slane %v364_v30, %v130_v16 }
 0x150   :  { %v305_v39 = vmax.f32 %v258_v34, 0.0  ;;  %v262_v40 = vadd.f32 %v261_v38, %v6535_v18 }
 0x151   :  { %v306_v41 = vmax.f32 %v260_v37, 0.0 }
 0x152   :  { %v307_v42 = vmax.f32 %v262_v40, 0.0 }
 0x153   :  { %v326_v43 = vpack.c.bf16 %v306_v41, %v304_v36 }
 0x154   :  { %v327_v44 = vpack.c.bf16 %v307_v42, %v305_v39  ;;  %v265_v45 = vpop.f32.mrb[24].mxu0 }
 0x155   :  { %v266_v46 = vadd.f32 %v265_v45, %v6531_v17  ;;  %v267_v47 = vpop.f32.mrb[25].mxu0 }
 0x156   :  { %v268_v48 = vadd.f32 %v267_v47, %v6535_v18  ;;  %v269_v49 = vpop.f32.mrb[26].mxu0  ;;  %618 = vmatprep.mubr.bf16.mxu1 %v327_v44 }
 0x157   :  { %v308_v50 = vmax.f32 %v266_v46, 0.0  ;;  %v270_v51 = vadd.f32 %v269_v49, %v6531_v17  ;;  %v271_v52 = vpop.f32.mrb[27].mxu0  ;;  %619 = vmatmul.mubr.bf16.gmra.mrb[20].mxu1 %v326_v43  ;;  %v5761_v46 = vld [vmem:[#allocation8 + $0x8] ss:$16 sps:$4 sm:$0xff]   ;;  %v5769_v49 = vld [vmem:[#allocation8 + $0x2c] ss:$16 sps:$4 sm:$0xff]  }
 0x158   :  { %v309_v53 = vmax.f32 %v268_v48, 0.0  ;;  %v272_v54 = vadd.f32 %v271_v52, %v6535_v18 }
 0x159   :  { %v310_v55 = vmax.f32 %v270_v51, 0.0 }
 0x15a   :  { %v311_v56 = vmax.f32 %v272_v54, 0.0 }
 0x15b   :  { %v328_v57 = vpack.c.bf16 %v310_v55, %v308_v50 }
 0x15c   :  { %v329_v58 = vpack.c.bf16 %v311_v56, %v309_v53  ;;  %v275_v59 = vpop.f32.mrb[28].mxu0 }
 0x15d   :  { %v276_v60 = vadd.f32 %v275_v59, %v6531_v17  ;;  %v277_v61 = vpop.f32.mrb[29].mxu0  ;;  %v5775_v59 = vld [vmem:[#allocation8 + $0x4c] ss:$16 sps:$4 sm:$0xff]  }
 0x15e   :  { %v278_v62 = vadd.f32 %v277_v61, %v6535_v18  ;;  %v279_v63 = vpop.f32.mrb[30].mxu0  ;;  %628 = vmatprep.mubr.bf16.mxu1 %v329_v58 }
 0x15f   :  { %v312_v1 = vmax.f32 %v276_v60, 0.0  ;;  %v280_v2 = vadd.f32 %v279_v63, %v6531_v17  ;;  %v281_v3 = vpop.f32.mrb[31].mxu0  ;;  %629 = vmatmul.mubr.bf16.gmra.mrb[24].mxu1 %v328_v57  ;;  %v5766_v17 = vld [vmem:[#allocation8 + $0x4] ss:$16 sps:$4 sm:$0xff]   ;;  %v5767_v57 = vld [vmem:[#allocation8 + $0x28] ss:$16 sps:$4 sm:$0xff]  }
 0x160   :  { %v313_v4 = vmax.f32 %v278_v62, 0.0  ;;  %v282_v5 = vadd.f32 %v281_v3, %v6535_v18  ;;  %1129 = vmatprep.subr.bf16.mxu1 %v5766_v17  ;;  %v5770_v18 = vld [vmem:[#allocation8 + $0x20] ss:$16 sps:$4 sm:$0xff]   ;;  %v5787_v17 = vld [vmem:[#allocation8 + $0x8c] ss:$16 sps:$4 sm:$0xff]  }
 0x161   :  { %v314_v6 = vmax.f32 %v280_v2, 0.0  ;;  %1130 = vmatpush1.bf16.msra.mxu1 %v5764_v15 }
 0x162   :  { %v315_v7 = vmax.f32 %v282_v5, 0.0  ;;  %1131 = vmatprep.subr.bf16.mxu1 %v5772_v19 }
 0x163   :  { %v330_v8 = vpack.c.bf16 %v314_v6, %v312_v1  ;;  %v5773_v1 = vld [vmem:[#allocation8 + $0x48] ss:$16 sps:$4 sm:$0xff]  }
 0x164   :  { %v331_v9 = vpack.c.bf16 %v315_v7, %v313_v4  ;;  %v5781_v4 = vld [vmem:[#allocation8 + $0x6c] ss:$16 sps:$4 sm:$0xff]  }
 0x165   :  { %1132 = vmatpush1.bf16.msra.mxu1 %v5770_v18 }
 0x166   :  { %638 = vmatprep.mubr.bf16.mxu1 %v331_v9  ;;  %1133 = vmatprep.subr.bf16.mxu1 %v5778_v20 }
 0x167   :  { %639 = vmatmul.mubr.bf16.gmra.mrb[28].mxu1 %v330_v8 }
 0x168   :  { %1161 = vmatprep.mubr.bf16.mxu1 %v6329_v0 }
 0x169   :  { %1134 = vmatpush1.bf16.msra.mxu1 %v5776_v21 }
 0x16a   :  { %1135 = vmatprep.subr.bf16.mxu1 %v5784_v22  ;;  %v5785_v22 = vld [vmem:[#allocation8 + $0x88] ss:$16 sps:$4 sm:$0xff]  }
 0x16d   :  { %1136 = vmatpush1.bf16.msra.mxu1 %v5782_v23 }
 0x16e   :  { %1137 = vmatprep.subr.bf16.mxu1 %v5790_v24 }
 0x171   :  { %1138 = vmatpush1.bf16.msra.mxu1 %v5788_v25  ;;  %v5793_v25 = vld [vmem:[#allocation8 + $0xac] ss:$16 sps:$4 sm:$0xff]  }
 0x172   :  { %1139 = vmatprep.subr.bf16.mxu1 %v5796_v26 }
 0x175   :  { %1140 = vmatpush1.bf16.msra.mxu1 %v5794_v27 }
 0x176   :  { %1141 = vmatprep.subr.bf16.mxu1 %v5802_v28 }
 0x179   :  { %1142 = vmatpush1.bf16.msra.mxu1 %v5800_v29 }
 0x202   :  { %v570_v33 = vpop.f32.mrb[0].mxu1 }
 0x203   :  { %v571_v34 = vadd.f32 %v570_v33, %v6574_v31  ;;  %v572_v35 = vpop.f32.mrb[1].mxu1 }
 0x204   :  { %v573_v36 = vadd.f32 %v572_v35, %v6578_v32  ;;  %v574_v37 = vpop.f32.mrb[2].mxu1  ;;  %v5791_v35 = vld [vmem:[#allocation8 + $0xa8] ss:$16 sps:$4 sm:$0xff]  }
 0x205   :  { %v575_v38 = vadd.f32 %v574_v37, %v6574_v31  ;;  %v576_v39 = vpop.f32.mrb[3].mxu1  ;;  %v649_v41 = vmax.f32 %v571_v34, 0.0  ;;  %v5799_v37 = vld [vmem:[#allocation8 + $0xcc] ss:$16 sps:$4 sm:$0xff]  }
 0x206   :  { %v577_v40 = vadd.f32 %v576_v39, %v6578_v32  ;;  %v650_v43 = vmax.f32 %v573_v36, 0.0 }
 0x207   :  { %v651_v42 = vmax.f32 %v575_v38, 0.0 }
 0x208   :  { %v652_v44 = vmax.f32 %v577_v40, 0.0 }
 0x209   :  { %v681_v45 = vpack.c.bf16 %v651_v42, %v649_v41  ;;  %v5797_v42 = vld [vmem:[#allocation8 + $0xc8] ss:$16 sps:$4 sm:$0xff]  }
 0x20a   :  { %v682_v13 = vpack.c.bf16 %v652_v44, %v650_v43  ;;  %v580_v16 = vpop.f32.mrb[4].mxu1 }
 0x20b   :  { %v581_v47 = vadd.f32 %v580_v16, %v6574_v31  ;;  %v582_v48 = vpop.f32.mrb[5].mxu1 }
 0x20c   :  { %v583_v50 = vadd.f32 %v582_v48, %v6578_v32  ;;  %v584_v51 = vpop.f32.mrb[6].mxu1  ;;  %864 = vmatprep.mubr.bf16.mxu0 %v682_v13 }
 0x20d   :  { %v653_v52 = vmax.f32 %v581_v47, 0.0  ;;  %v585_v53 = vadd.f32 %v584_v51, %v6574_v31  ;;  %v586_v54 = vpop.f32.mrb[7].mxu1  ;;  %865 = vmatmul.mubr.bf16.vlgmr.msra.gmra.mrb[32].mxu0 %v681_v45 }
 0x20e   :  { %v654_v55 = vmax.f32 %v583_v50, 0.0  ;;  %v587_v56 = vadd.f32 %v586_v54, %v6578_v32  ;;  %1243 = vmatpush1.bf16.msra.mxu0 %v5761_v46 }
 0x20f   :  { %v655_v58 = vmax.f32 %v585_v53, 0.0  ;;  %1244 = vmatprep.subr.bf16.mxu0 %v5769_v49 }
 0x210   :  { %v656_v60 = vmax.f32 %v587_v56, 0.0 }
 0x211   :  { %v683_v61 = vpack.c.bf16 %v655_v58, %v653_v52 }
 0x212   :  { %v684_v62 = vpack.c.bf16 %v656_v60, %v654_v55  ;;  %v590_v63 = vpop.f32.mrb[8].mxu1  ;;  %1245 = vmatpush1.bf16.msra.mxu0 %v5767_v57 }
 0x213   :  { %v591_v2 = vadd.f32 %v590_v63, %v6574_v31  ;;  %v592_v3 = vpop.f32.mrb[9].mxu1  ;;  %1246 = vmatprep.subr.bf16.mxu0 %v5775_v59 }
 0x214   :  { %v593_v5 = vadd.f32 %v592_v3, %v6578_v32  ;;  %v594_v6 = vpop.f32.mrb[10].mxu1  ;;  %872 = vmatprep.mubr.bf16.mxu0 %v684_v62 }
 0x215   :  { %v657_v7 = vmax.f32 %v591_v2, 0.0  ;;  %v595_v8 = vadd.f32 %v594_v6, %v6574_v31  ;;  %v596_v9 = vpop.f32.mrb[11].mxu1  ;;  %873 = vmatmul.mubr.bf16.gmra.mrb[36].mxu0 %v683_v61 }
 0x216   :  { %v658_v10 = vmax.f32 %v593_v5, 0.0  ;;  %v597_v11 = vadd.f32 %v596_v9, %v6578_v32  ;;  %1247 = vmatpush1.bf16.msra.mxu0 %v5773_v1 }
 0x217   :  { %v659_v15 = vmax.f32 %v595_v8, 0.0  ;;  %1248 = vmatprep.subr.bf16.mxu0 %v5781_v4 }
 0x218   :  { %v660_v19 = vmax.f32 %v597_v11, 0.0 }
 0x219   :  { %v685_v18 = vpack.c.bf16 %v659_v15, %v657_v7 }
 0x21a   :  { %v686_v20 = vpack.c.bf16 %v660_v19, %v658_v10  ;;  %v600_v21 = vpop.f32.mrb[12].mxu1  ;;  %1249 = vmatpush1.bf16.msra.mxu0 %v5779_v12 }
 0x21b   :  { %v601_v23 = vadd.f32 %v600_v21, %v6574_v31  ;;  %v602_v24 = vpop.f32.mrb[13].mxu1  ;;  %1250 = vmatprep.subr.bf16.mxu0 %v5787_v17 }
 0x21c   :  { %v603_v26 = vadd.f32 %v602_v24, %v6578_v32  ;;  %v604_v27 = vpop.f32.mrb[14].mxu1  ;;  %880 = vmatprep.mubr.bf16.mxu0 %v686_v20 }
 0x21d   :  { %v661_v28 = vmax.f32 %v601_v23, 0.0  ;;  %v605_v29 = vadd.f32 %v604_v27, %v6574_v31  ;;  %v606_v30 = vpop.f32.mrb[15].mxu1  ;;  %881 = vmatmul.mubr.bf16.gmra.mrb[40].mxu0 %v685_v18 }
 0x21e   :  { %v662_v33 = vmax.f32 %v603_v26, 0.0  ;;  %v607_v34 = vadd.f32 %v606_v30, %v6578_v32  ;;  %1251 = vmatpush1.bf16.msra.mxu0 %v5785_v22 }
 0x21f   :  { %v663_v36 = vmax.f32 %v605_v29, 0.0  ;;  %1252 = vmatprep.subr.bf16.mxu0 %v5793_v25 }
 0x220   :  { %v664_v38 = vmax.f32 %v607_v34, 0.0 }
 0x221   :  { %v687_v39 = vpack.c.bf16 %v663_v36, %v661_v28 }
 0x222   :  { %v688_v40 = vpack.c.bf16 %v664_v38, %v662_v33  ;;  %v610_v41 = vpop.f32.mrb[16].mxu1  ;;  %1253 = vmatpush1.bf16.msra.mxu0 %v5791_v35  ;;  %v5803_v38 = vld [vmem:[#allocation8 + $0xe8] ss:$16 sps:$4 sm:$0xff]  }
 0x223   :  { %v611_v43 = vadd.f32 %v610_v41, %v6574_v31  ;;  %v612_v44 = vpop.f32.mrb[17].mxu1  ;;  %1254 = vmatprep.subr.bf16.mxu0 %v5799_v37  ;;  %v5806_v41 = vld [vmem:[#allocation8 + $0xe0] ss:$16 sps:$4 sm:$0xff]  }
 0x224   :  { %v613_v45 = vadd.f32 %v612_v44, %v6578_v32  ;;  %v614_v13 = vpop.f32.mrb[18].mxu1  ;;  %888 = vmatprep.mubr.bf16.mxu0 %v688_v40  ;;  %v5808_v40 = vld [vmem:[#allocation8 + $0xe4] ss:$16 sps:$4 sm:$0xff]   ;;  %v6616_v44 = vld [vmem:[%s8514_s7] ss:$0 sm:$0xff]  ;;  %s6331_s7 = smov 117  }
 0x225   :  { %v665_v16 = vmax.f32 %v611_v43, 0.0  ;;  %v615_v46 = vadd.f32 %v614_v13, %v6574_v31  ;;  %v616_v47 = vpop.f32.mrb[19].mxu1  ;;  %889 = vmatmul.mubr.bf16.gmra.mrb[44].mxu0 %v687_v39  ;;  %v5805_v39 = vld [vmem:[#allocation8 + $0xec] ss:$16 sps:$4 sm:$0xff]   ;;  %1143 = vmatprep.subr.bf16.mxu1 %v5808_v40 }
 0x226   :  { %v666_v48 = vmax.f32 %v613_v45, 0.0  ;;  %v617_v49 = vadd.f32 %v616_v47, %v6578_v32  ;;  %1255 = vmatpush1.bf16.msra.mxu0 %v5797_v42  ;;  %1144 = vmatpush1.bf16.msra.mxu1 %v5806_v41 }
 0x227   :  { %v667_v50 = vmax.f32 %v615_v46, 0.0  ;;  %1256 = vmatprep.subr.bf16.mxu0 %v5805_v39 }
 0x228   :  { %v668_v51 = vmax.f32 %v617_v49, 0.0 }
 0x229   :  { %v689_v52 = vpack.c.bf16 %v667_v50, %v665_v16 }
 0x22a   :  { %v690_v53 = vpack.c.bf16 %v668_v51, %v666_v48  ;;  %v620_v54 = vpop.f32.mrb[20].mxu1  ;;  %1257 = vmatpush1.bf16.msra.mxu0 %v5803_v38 }
 0x22b   :  { %v621_v55 = vadd.f32 %v620_v54, %v6574_v31  ;;  %v622_v56 = vpop.f32.mrb[21].mxu1 }
 0x22c   :  { %v623_v57 = vadd.f32 %v622_v56, %v6578_v32  ;;  %v624_v58 = vpop.f32.mrb[22].mxu1  ;;  %896 = vmatprep.mubr.bf16.mxu0 %v690_v53 }
 0x22d   :  { %v669_v59 = vmax.f32 %v621_v55, 0.0  ;;  %v625_v60 = vadd.f32 %v624_v58, %v6574_v31  ;;  %v626_v61 = vpop.f32.mrb[23].mxu1  ;;  %897 = vmatmul.mubr.bf16.gmra.mrb[48].mxu0 %v689_v52 }
 0x22e   :  { %v670_v62 = vmax.f32 %v623_v57, 0.0  ;;  %v627_v63 = vadd.f32 %v626_v61, %v6578_v32 }
 0x22f   :  { %v671_v1 = vmax.f32 %v625_v60, 0.0 }
 0x230   :  { %v672_v2 = vmax.f32 %v627_v63, 0.0 }
 0x231   :  { %v691_v3 = vpack.c.bf16 %v671_v1, %v669_v59 }
 0x232   :  { %v692_v4 = vpack.c.bf16 %v672_v2, %v670_v62  ;;  %v630_v5 = vpop.f32.mrb[24].mxu1 }
 0x233   :  { %v631_v6 = vadd.f32 %v630_v5, %v6574_v31  ;;  %v632_v7 = vpop.f32.mrb[25].mxu1 }
 0x234   :  { %v633_v8 = vadd.f32 %v632_v7, %v6578_v32  ;;  %v634_v9 = vpop.f32.mrb[26].mxu1  ;;  %904 = vmatprep.mubr.bf16.mxu0 %v692_v4 }
 0x235   :  { %v673_v10 = vmax.f32 %v631_v6, 0.0  ;;  %v635_v11 = vadd.f32 %v634_v9, %v6574_v31  ;;  %v636_v12 = vpop.f32.mrb[27].mxu1  ;;  %905 = vmatmul.mubr.bf16.gmra.mrb[52].mxu0 %v691_v3 }
 0x236   :  { %v674_v15 = vmax.f32 %v633_v8, 0.0  ;;  %v637_v17 = vadd.f32 %v636_v12, %v6578_v32 }
 0x237   :  { %v675_v19 = vmax.f32 %v635_v11, 0.0 }
 0x238   :  { %v676_v18 = vmax.f32 %v637_v17, 0.0 }
 0x239   :  { %v693_v20 = vpack.c.bf16 %v675_v19, %v673_v10 }
 0x23a   :  { %v694_v21 = vpack.c.bf16 %v676_v18, %v674_v15  ;;  %v640_v22 = vpop.f32.mrb[28].mxu1 }
 0x23b   :  { %v641_v23 = vadd.f32 %v640_v22, %v6574_v31  ;;  %v642_v24 = vpop.f32.mrb[29].mxu1 }
 0x23c   :  { %v643_v25 = vadd.f32 %v642_v24, %v6578_v32  ;;  %v644_v26 = vpop.f32.mrb[30].mxu1  ;;  %912 = vmatprep.mubr.bf16.mxu0 %v694_v21 }
 0x23d   :  { %v677_v27 = vmax.f32 %v641_v23, 0.0  ;;  %v645_v28 = vadd.f32 %v644_v26, %v6574_v31  ;;  %v646_v29 = vpop.f32.mrb[31].mxu1  ;;  %913 = vmatmul.mubr.bf16.gmra.mrb[56].mxu0 %v693_v20 }
 0x23e   :  { %v678_v30 = vmax.f32 %v643_v25, 0.0  ;;  %v647_v33 = vadd.f32 %v646_v29, %v6578_v32 }
 0x23f   :  { %v679_v34 = vmax.f32 %v645_v28, 0.0 }
 0x240   :  { %v680_v35 = vmax.f32 %v647_v33, 0.0 }
 0x241   :  { %v695_v36 = vpack.c.bf16 %v679_v34, %v677_v27 }
 0x242   :  { %v696_v37 = vpack.c.bf16 %v680_v35, %v678_v30 }
 0x244   :  { %920 = vmatprep.mubr.bf16.mxu0 %v696_v37 }
 0x245   :  { %921 = vmatmul.mubr.bf16.gmra.mrb[60].mxu0 %v695_v36 }
 0x246   :  { %1274 = vmatprep.mubr.bf16.mxu0 %v6329_v0 }
 0x2e0   :  { %v5241_v31 = vpop.f32.mrb[32].mxu0 }
 0x2e1   :  { %v5242_v42 = vpop.f32.mrb[33].mxu0 }
 0x2e2   :  { %v5243_v43 = vadd.f32 %v5242_v42, %v5241_v31  ;;  %v5244_v32 = vpop.f32.mrb[34].mxu0 }
 0x2e3   :  { %v5245_v45 = vpop.f32.mrb[35].mxu0 }
 0x2e4   :  { %v5246_v13 = vadd.f32 %v5245_v45, %v5244_v32  ;;  %v867_v16 = vadd.f32 %v5243_v43, %v6616_v44 }
 0x2e6   :  { %v870_v46 = vadd.f32 %v5246_v13, %v6616_v44 }
 0x2e8   :  { %v929_v47 = vpack.c.bf16 %v870_v46, %v867_v16  ;;  %v5247_v48 = vpop.f32.mrb[36].mxu0 }
 0x2e9   :  { %v5248_v49 = vpop.f32.mrb[37].mxu0 }
 0x2ea   :  { %v5249_v50 = vadd.f32 %v5248_v49, %v5247_v48  ;;  %v5250_v51 = vpop.f32.mrb[38].mxu0  ;;  %1162 = vmatmul.mubr.bf16.vlgmr.msra.gmra.mrb[32].mxu1 %v929_v47  ;;  %1275 = vmatmul.mubr.bf16.vlgmr.msra.gmra.mrb[64].mxu0 %v929_v47 }
 0x2eb   :  { %v5251_v52 = vpop.f32.mrb[39].mxu0  ;;  %1171 = vmatprep.mubr.bf16.mxu1 %v6329_v0  ;;  %1284 = vmatprep.mubr.bf16.mxu0 %v6329_v0 }
 0x2ec   :  { %v875_v53 = vadd.f32 %v5249_v50, %v6616_v44  ;;  %v5252_v54 = vadd.f32 %v5251_v52, %v5250_v51  ;;  %v6330_v50 = vmov 12  }
 0x2ed   :  { %5689 = vset.pattern.permute.xlu0 %v6330_v50  ;;  %5690 = vset.pattern.permute.xlu1 %v6330_v50 }
 0x2ee   :  { %v878_v55 = vadd.f32 %v5252_v54, %v6616_v44 }
 0x2f0   :  { %v5253_v56 = vpop.f32.mrb[40].mxu0  ;;  %v930_v57 = vpack.c.bf16 %v878_v55, %v875_v53 }
 0x2f1   :  { %v5254_v58 = vpop.f32.mrb[41].mxu0 }
 0x2f2   :  { %v5255_v59 = vadd.f32 %v5254_v58, %v5253_v56  ;;  %v5256_v60 = vpop.f32.mrb[42].mxu0  ;;  %1172 = vmatmul.mubr.bf16.gmra.mrb[36].mxu1 %v930_v57  ;;  %1285 = vmatmul.mubr.bf16.gmra.mrb[68].mxu0 %v930_v57 }
 0x2f3   :  { %v5257_v61 = vpop.f32.mrb[43].mxu0  ;;  %1181 = vmatprep.mubr.bf16.mxu1 %v6329_v0  ;;  %1294 = vmatprep.mubr.bf16.mxu0 %v6329_v0 }
 0x2f4   :  { %v883_v62 = vadd.f32 %v5255_v59, %v6616_v44  ;;  %v5258_v63 = vadd.f32 %v5257_v61, %v5256_v60 }
 0x2f6   :  { %v886_v1 = vadd.f32 %v5258_v63, %v6616_v44 }
 0x2f8   :  { %v5259_v2 = vpop.f32.mrb[44].mxu0  ;;  %v931_v3 = vpack.c.bf16 %v886_v1, %v883_v62 }
 0x2f9   :  { %v5260_v4 = vpop.f32.mrb[45].mxu0 }
 0x2fa   :  { %v5261_v5 = vadd.f32 %v5260_v4, %v5259_v2  ;;  %v5262_v6 = vpop.f32.mrb[46].mxu0  ;;  %1182 = vmatmul.mubr.bf16.gmra.mrb[40].mxu1 %v931_v3  ;;  %1295 = vmatmul.mubr.bf16.gmra.mrb[72].mxu0 %v931_v3 }
 0x2fb   :  { %v5263_v7 = vpop.f32.mrb[47].mxu0  ;;  %1191 = vmatprep.mubr.bf16.mxu1 %v6329_v0  ;;  %1304 = vmatprep.mubr.bf16.mxu0 %v6329_v0 }
 0x2fc   :  { %v891_v8 = vadd.f32 %v5261_v5, %v6616_v44  ;;  %v5264_v9 = vadd.f32 %v5263_v7, %v5262_v6 }
 0x2fe   :  { %v894_v10 = vadd.f32 %v5264_v9, %v6616_v44 }
 0x300   :  { %v5265_v11 = vpop.f32.mrb[48].mxu0  ;;  %v932_v12 = vpack.c.bf16 %v894_v10, %v891_v8 }
 0x301   :  { %v5266_v15 = vpop.f32.mrb[49].mxu0 }
 0x302   :  { %v5267_v17 = vadd.f32 %v5266_v15, %v5265_v11  ;;  %v5268_v19 = vpop.f32.mrb[50].mxu0  ;;  %1192 = vmatmul.mubr.bf16.gmra.mrb[44].mxu1 %v932_v12  ;;  %1305 = vmatmul.mubr.bf16.gmra.mrb[76].mxu0 %v932_v12 }
 0x303   :  { %v5269_v18 = vpop.f32.mrb[51].mxu0  ;;  %1201 = vmatprep.mubr.bf16.mxu1 %v6329_v0  ;;  %1314 = vmatprep.mubr.bf16.mxu0 %v6329_v0 }
 0x304   :  { %v899_v20 = vadd.f32 %v5267_v17, %v6616_v44  ;;  %v5270_v21 = vadd.f32 %v5269_v18, %v5268_v19 }
 0x306   :  { %v902_v22 = vadd.f32 %v5270_v21, %v6616_v44 }
 0x308   :  { %v5271_v23 = vpop.f32.mrb[52].mxu0  ;;  %v933_v24 = vpack.c.bf16 %v902_v22, %v899_v20 }
 0x309   :  { %v5272_v25 = vpop.f32.mrb[53].mxu0 }
 0x30a   :  { %v5273_v26 = vadd.f32 %v5272_v25, %v5271_v23  ;;  %v5274_v27 = vpop.f32.mrb[54].mxu0  ;;  %1202 = vmatmul.mubr.bf16.gmra.mrb[48].mxu1 %v933_v24  ;;  %1315 = vmatmul.mubr.bf16.gmra.mrb[80].mxu0 %v933_v24 }
 0x30b   :  { %v5275_v28 = vpop.f32.mrb[55].mxu0  ;;  %1211 = vmatprep.mubr.bf16.mxu1 %v6329_v0  ;;  %1324 = vmatprep.mubr.bf16.mxu0 %v6329_v0 }
 0x30c   :  { %v907_v29 = vadd.f32 %v5273_v26, %v6616_v44  ;;  %v5276_v30 = vadd.f32 %v5275_v28, %v5274_v27 }
 0x30e   :  { %v910_v33 = vadd.f32 %v5276_v30, %v6616_v44 }
 0x310   :  { %v5277_v34 = vpop.f32.mrb[56].mxu0  ;;  %v934_v35 = vpack.c.bf16 %v910_v33, %v907_v29 }
 0x311   :  { %v5278_v36 = vpop.f32.mrb[57].mxu0 }
 0x312   :  { %v5279_v37 = vadd.f32 %v5278_v36, %v5277_v34  ;;  %v5280_v38 = vpop.f32.mrb[58].mxu0  ;;  %1212 = vmatmul.mubr.bf16.gmra.mrb[52].mxu1 %v934_v35  ;;  %1325 = vmatmul.mubr.bf16.gmra.mrb[84].mxu0 %v934_v35 }
 0x313   :  { %v5281_v39 = vpop.f32.mrb[59].mxu0  ;;  %1221 = vmatprep.mubr.bf16.mxu1 %v6329_v0  ;;  %1334 = vmatprep.mubr.bf16.mxu0 %v6329_v0 }
 0x314   :  { %v915_v40 = vadd.f32 %v5279_v37, %v6616_v44  ;;  %v5282_v41 = vadd.f32 %v5281_v39, %v5280_v38 }
 0x316   :  { %v918_v31 = vadd.f32 %v5282_v41, %v6616_v44 }
 0x318   :  { %v5283_v42 = vpop.f32.mrb[60].mxu0  ;;  %v935_v43 = vpack.c.bf16 %v918_v31, %v915_v40 }
 0x319   :  { %v5284_v32 = vpop.f32.mrb[61].mxu0 }
 0x31a   :  { %v5285_v45 = vadd.f32 %v5284_v32, %v5283_v42  ;;  %v5286_v13 = vpop.f32.mrb[62].mxu0  ;;  %1222 = vmatmul.mubr.bf16.gmra.mrb[56].mxu1 %v935_v43  ;;  %1335 = vmatmul.mubr.bf16.gmra.mrb[88].mxu0 %v935_v43 }
 0x31b   :  { %v5287_v16 = vpop.f32.mrb[63].mxu0  ;;  %1231 = vmatprep.mubr.bf16.mxu1 %v6329_v0  ;;  %1344 = vmatprep.mubr.bf16.mxu0 %v6329_v0 }
 0x31c   :  { %v923_v46 = vadd.f32 %v5285_v45, %v6616_v44  ;;  %v5288_v47 = vadd.f32 %v5287_v16, %v5286_v13 }
 0x31e   :  { %v926_v48 = vadd.f32 %v5288_v47, %v6616_v44 }
 0x320   :  { %v936_v49 = vpack.c.bf16 %v926_v48, %v923_v46 }
 0x322   :  { %1232 = vmatmul.mubr.bf16.gmra.mrb[60].mxu1 %v936_v49  ;;  %1345 = vmatmul.mubr.bf16.gmra.mrb[92].mxu0 %v936_v49 }
 0x3bd   :  { %v1163_v51 = vpop.f32.mrb[32].mxu1  ;;  %v1276_v52 = vpop.f32.mrb[64].mxu0 }
 0x3be   :  { %2688 = vrot.lane.b32.xlu1 %v1276_v52, %s6331_s7  ;;  %v1278_v53 = vpop.f32.mrb[65].mxu0  ;;  %1452 = vrot.lane.b32.xlu0 %v1163_v51, %s6331_s7  ;;  %v1165_v0 = vpop.f32.mrb[33].mxu1 }
 0x3bf   :  { %v1167_v54 = vpop.f32.mrb[34].mxu1  ;;  %v1280_v55 = vpop.f32.mrb[66].mxu0 }
 0x3c0   :  { %v1768_v56 = vpack.c.bf16 %v1167_v54, %v1163_v51  ;;  %v6650_v57 = vpack.c.bf16 %v1280_v55, %v1276_v52  ;;  %v6652_v44 = vpop.f32.mrb[35].mxu1  ;;  %v6654_v58 = vpop.f32.mrb[67].mxu0 }
 0x3c1   :  { %v2386_v59 = vpack.c.bf16 %v6652_v44, %v1165_v0  ;;  %v6658_v60 = vpack.c.bf16 %v6654_v58, %v1278_v53 }
 0x3c2   :  { %8574 = vst [vmem:[#allocation15_spill] sm:$0xff] %v6650_v57  ;;  %1533 = vperm.xlu0 %5689, %v1163_v51   ;;  %2070 = vrot.lane.b32.xlu1 %v1165_v0, %s6331_s7 }
 0x3c3   :  { %8575 = vst [vmem:[#allocation16_spill] sm:$0xff] %v6658_v60  ;;  %5497 = vmatprep.subr.bf16.mxu1 %v1768_v56  ;;  %5529 = vmatprep.subr.bf16.mxu0 %v2386_v59 }
 0x3c4   :  { %5498 = vmatpush3.bf16.msra.mxu1 %v1768_v56  ;;  %5530 = vmatpush3.bf16.msra.mxu0 %v2386_v59 }
 0x3c5   :  { %v6661_v61 = vpop.f32.mrb[36].mxu1  ;;  %v6663_v62 = vpop.f32.mrb[68].mxu0 }
 0x3c6   :  { %2769 = vperm.xlu0 %5689, %v1276_v52   ;;  %3306 = vrot.lane.b32.xlu1 %v1278_v53, %s6331_s7  ;;  %v6666_v63 = vpop.f32.mrb[37].mxu1  ;;  %v6668_v1 = vpop.f32.mrb[69].mxu0 }
 0x3c7   :  { %v6670_v2 = vpop.f32.mrb[38].mxu1  ;;  %v6672_v3 = vpop.f32.mrb[70].mxu0 }
 0x3c8   :  { %v1769_v4 = vpack.c.bf16 %v6670_v2, %v6661_v61  ;;  %v6676_v5 = vpop.f32.mrb[39].mxu1  ;;  %v6680_v6 = vpack.c.bf16 %v6672_v3, %v6663_v62  ;;  %v6682_v7 = vpop.f32.mrb[71].mxu0 }
 0x3c9   :  { %v2387_v8 = vpack.c.bf16 %v6676_v5, %v6666_v63  ;;  %v6688_v9 = vpack.c.bf16 %v6682_v7, %v6668_v1 }
 0x3ca   :  { %8576 = vst [vmem:[#allocation17_spill] sm:$0xff] %v6680_v6  ;;  %2151 = vperm.xlu0 %5689, %v1165_v0   ;;  %2690 = vrot.lane.b32.xlu1 %v1280_v55, %s6331_s7 }
 0x3cb   :  { %8577 = vst [vmem:[#allocation18_spill] sm:$0xff] %v6688_v9  ;;  %5499 = vmatprep.subr.bf16.mxu1 %v1769_v4  ;;  %5531 = vmatprep.subr.bf16.mxu0 %v2387_v8 }
 0x3cc   :  { %5500 = vmatpush3.bf16.msra.mxu1 %v1769_v4  ;;  %5532 = vmatpush3.bf16.msra.mxu0 %v2387_v8 }
 0x3cd   :  { %v6691_v10 = vpop.f32.mrb[40].mxu1  ;;  %v6693_v11 = vpop.f32.mrb[72].mxu0 }
 0x3ce   :  { %3387 = vperm.xlu0 %5689, %v1278_v53   ;;  %1537 = vperm.xlu1 %5690, %v1167_v54   ;;  %v6695_v12 = vpop.f32.mrb[41].mxu1  ;;  %v6697_v15 = vpop.f32.mrb[73].mxu0 }
 0x3cf   :  { %v6699_v17 = vpop.f32.mrb[42].mxu1  ;;  %v6701_v19 = vpop.f32.mrb[74].mxu0 }
 0x3d0   :  { %v1770_v18 = vpack.c.bf16 %v6699_v17, %v6691_v10  ;;  %v6705_v20 = vpop.f32.mrb[43].mxu1  ;;  %v6709_v21 = vpack.c.bf16 %v6701_v19, %v6693_v11  ;;  %v6711_v22 = vpop.f32.mrb[75].mxu0 }
 0x3d1   :  { %v2388_v23 = vpack.c.bf16 %v6705_v20, %v6695_v12  ;;  %v6717_v24 = vpack.c.bf16 %v6711_v22, %v6697_v15 }
 0x3d2   :  { %8578 = vst [vmem:[#allocation19_spill] sm:$0xff] %v6709_v21  ;;  %1454 = vrot.lane.b32.xlu0 %v1167_v54, %s6331_s7  ;;  %2072 = vrot.lane.b32.xlu1 %v6652_v44, %s6331_s7 }
 0x3d3   :  { %8579 = vst [vmem:[#allocation20_spill] sm:$0xff] %v6717_v24  ;;  %5501 = vmatprep.subr.bf16.mxu1 %v1770_v18  ;;  %5533 = vmatprep.subr.bf16.mxu0 %v2388_v23 }
 0x3d4   :  { %5502 = vmatpush3.bf16.msra.mxu1 %v1770_v18  ;;  %5534 = vmatpush3.bf16.msra.mxu0 %v2388_v23 }
 0x3d5   :  { %v6722_v25 = vpop.f32.mrb[44].mxu1  ;;  %v6724_v26 = vpop.f32.mrb[76].mxu0 }
 0x3d6   :  { %2773 = vperm.xlu0 %5689, %v1280_v55   ;;  %3308 = vrot.lane.b32.xlu1 %v6654_v58, %s6331_s7  ;;  %v6728_v27 = vpop.f32.mrb[45].mxu1  ;;  %v6730_v28 = vpop.f32.mrb[77].mxu0 }
 0x3d7   :  { %v6732_v29 = vpop.f32.mrb[46].mxu1  ;;  %v6734_v30 = vpop.f32.mrb[78].mxu0 }
 0x3d8   :  { %v1771_v33 = vpack.c.bf16 %v6732_v29, %v6722_v25  ;;  %v6738_v34 = vpop.f32.mrb[47].mxu1  ;;  %v6742_v35 = vpack.c.bf16 %v6734_v30, %v6724_v26  ;;  %v6744_v36 = vpop.f32.mrb[79].mxu0 }
 0x3d9   :  { %v2389_v37 = vpack.c.bf16 %v6738_v34, %v6728_v27  ;;  %v6750_v38 = vpack.c.bf16 %v6744_v36, %v6730_v28 }
 0x3da   :  { %8580 = vst [vmem:[#allocation21_spill] sm:$0xff] %v6742_v35  ;;  %3391 = vperm.xlu0 %5689, %v6654_v58   ;;  %2155 = vperm.xlu1 %5690, %v6652_v44  }
 0x3db   :  { %8581 = vst [vmem:[#allocation22_spill] sm:$0xff] %v6750_v38  ;;  %5503 = vmatprep.subr.bf16.mxu1 %v1771_v33  ;;  %5535 = vmatprep.subr.bf16.mxu0 %v2389_v37 }
 0x3dc   :  { %5504 = vmatpush3.bf16.msra.mxu1 %v1771_v33  ;;  %5536 = vmatpush3.bf16.msra.mxu0 %v2389_v37 }
 0x3dd   :  { %v6754_v39 = vpop.f32.mrb[48].mxu1  ;;  %v6756_v40 = vpop.f32.mrb[80].mxu0 }
 0x3de   :  { %2777 = vperm.xlu0 %5689, %v6663_v62   ;;  %1456 = vrot.lane.b32.xlu1 %v6661_v61, %s6331_s7  ;;  %v6761_v41 = vpop.f32.mrb[49].mxu1  ;;  %v6763_v31 = vpop.f32.mrb[81].mxu0 }
 0x3df   :  { %v6765_v42 = vpop.f32.mrb[50].mxu1  ;;  %v6767_v43 = vpop.f32.mrb[82].mxu0 }
 0x3e0   :  { %v1772_v32 = vpack.c.bf16 %v6765_v42, %v6754_v39  ;;  %v6771_v45 = vpop.f32.mrb[51].mxu1  ;;  %v6775_v13 = vpack.c.bf16 %v6767_v43, %v6756_v40  ;;  %v6777_v16 = vpop.f32.mrb[83].mxu0 }
 0x3e1   :  { %v2390_v46 = vpack.c.bf16 %v6771_v45, %v6761_v41  ;;  %v6783_v47 = vpack.c.bf16 %v6777_v16, %v6763_v31 }
 0x3e2   :  { %8582 = vst [vmem:[#allocation23_spill] sm:$0xff] %v6775_v13  ;;  %2692 = vrot.lane.b32.xlu1 %v6663_v62, %s6331_s7  ;;  %2159 = vperm.xlu0 %5689, %v6666_v63  }
 0x3e3   :  { %8583 = vst [vmem:[#allocation24_spill] sm:$0xff] %v6783_v47  ;;  %5505 = vmatprep.subr.bf16.mxu1 %v1772_v32  ;;  %5537 = vmatprep.subr.bf16.mxu0 %v2390_v46 }
 0x3e4   :  { %5506 = vmatpush3.bf16.msra.mxu1 %v1772_v32  ;;  %5538 = vmatpush3.bf16.msra.mxu0 %v2390_v46 }
 0x3e5   :  { %v6788_v48 = vpop.f32.mrb[52].mxu1  ;;  %v6790_v49 = vpop.f32.mrb[84].mxu0 }
 0x3e6   :  { %1541 = vperm.xlu1 %5690, %v6661_v61   ;;  %3395 = vperm.xlu0 %5689, %v6668_v1   ;;  %v6794_v50 = vpop.f32.mrb[53].mxu1  ;;  %v6796_v51 = vpop.f32.mrb[85].mxu0 }
 0x3e7   :  { %v6798_v52 = vpop.f32.mrb[54].mxu1  ;;  %v6800_v53 = vpop.f32.mrb[86].mxu0 }
 0x3e8   :  { %v1773_v0 = vpack.c.bf16 %v6798_v52, %v6788_v48  ;;  %v6804_v54 = vpop.f32.mrb[55].mxu1  ;;  %v6808_v55 = vpack.c.bf16 %v6800_v53, %v6790_v49  ;;  %v6810_v56 = vpop.f32.mrb[87].mxu0 }
 0x3e9   :  { %v2391_v44 = vpack.c.bf16 %v6804_v54, %v6794_v50  ;;  %v6816_v58 = vpack.c.bf16 %v6810_v56, %v6796_v51 }
 0x3ea   :  { %8584 = vst [vmem:[#allocation25_spill] sm:$0xff] %v6808_v55  ;;  %2694 = vrot.lane.b32.xlu0 %v6672_v3, %s6331_s7  ;;  %2074 = vrot.lane.b32.xlu1 %v6666_v63, %s6331_s7 }
 0x3eb   :  { %8585 = vst [vmem:[#allocation26_spill] sm:$0xff] %v6816_v58  ;;  %5507 = vmatprep.subr.bf16.mxu1 %v1773_v0  ;;  %5539 = vmatprep.subr.bf16.mxu0 %v2391_v44 }
 0x3ec   :  { %5508 = vmatpush3.bf16.msra.mxu1 %v1773_v0  ;;  %5540 = vmatpush3.bf16.msra.mxu0 %v2391_v44 }
 0x3ed   :  { %v6822_v59 = vpop.f32.mrb[56].mxu1  ;;  %v6824_v61 = vpop.f32.mrb[88].mxu0 }
 0x3ee   :  { %3310 = vrot.lane.b32.xlu1 %v6668_v1, %s6331_s7  ;;  %1545 = vperm.xlu0 %5689, %v6670_v2   ;;  %v6829_v62 = vpop.f32.mrb[57].mxu1  ;;  %v6831_v4 = vpop.f32.mrb[89].mxu0 }
 0x3ef   :  { %v6833_v8 = vpop.f32.mrb[58].mxu1  ;;  %v6851_v37 = vpop.f32.mrb[90].mxu0 }
 0x3f0   :  { %v1774_v63 = vpack.c.bf16 %v6833_v8, %v6822_v59  ;;  %v6837_v18 = vpop.f32.mrb[59].mxu1 }
 0x3f1   :  { %v2392_v23 = vpack.c.bf16 %v6837_v18, %v6829_v62 }
 0x3f2   :  { %2781 = vperm.xlu0 %5689, %v6672_v3   ;;  %1458 = vrot.lane.b32.xlu1 %v6670_v2, %s6331_s7  ;;  %v6857_v2 = vpack.c.bf16 %v6851_v37, %v6824_v61  ;;  %v6859_v3 = vpop.f32.mrb[91].mxu0 }
 0x3f3   :  { %5509 = vmatprep.subr.bf16.mxu1 %v1774_v63  ;;  %5541 = vmatprep.subr.bf16.mxu0 %v2392_v23  ;;  %v6867_v44 = vpack.c.bf16 %v6859_v3, %v6831_v4 }
 0x3f4   :  { %5510 = vmatpush3.bf16.msra.mxu1 %v1774_v63  ;;  %5542 = vmatpush3.bf16.msra.mxu0 %v2392_v23  ;;  %8586 = vst [vmem:[#allocation27_spill] sm:$0xff] %v6857_v2 }
 0x3f5   :  { %v6844_v1 = vpop.f32.mrb[60].mxu1  ;;  %8587 = vst [vmem:[#allocation28_spill] sm:$0xff] %v6867_v44 }
 0x3f6   :  { %3399 = vperm.xlu0 %5689, %v6682_v7   ;;  %2076 = vrot.lane.b32.xlu1 %v6676_v5, %s6331_s7  ;;  %v6849_v33 = vpop.f32.mrb[61].mxu1 }
 0x3f7   :  { %v6853_v32 = vpop.f32.mrb[62].mxu1 }
 0x3f8   :  { %v1775_v46 = vpack.c.bf16 %v6853_v32, %v6844_v1  ;;  %v6863_v0 = vpop.f32.mrb[63].mxu1 }
 0x3f9   :  { %v2393_v63 = vpack.c.bf16 %v6863_v0, %v6849_v33 }
 0x3fa   :  { %3312 = vrot.lane.b32.xlu1 %v6682_v7, %s6331_s7  ;;  %1460 = vrot.lane.b32.xlu0 %v6691_v10, %s6331_s7  ;;  %v6882_v7 = vpop.f32.mrb[92].mxu0 }
 0x3fb   :  { %5511 = vmatprep.subr.bf16.mxu1 %v1775_v46  ;;  %5543 = vmatprep.subr.bf16.mxu0 %v2393_v63  ;;  %v6884_v23 = vpop.f32.mrb[93].mxu0 }
 0x3fc   :  { %5512 = vmatpush3.bf16.msra.mxu1 %v1775_v46  ;;  %5544 = vmatpush3.bf16.msra.mxu0 %v2393_v63  ;;  %v6886_v44 = vpop.f32.mrb[94].mxu0 }
 0x3fd   :  { %5561 = vmatprep.subr.bf16.mxu1 %v6650_v57  ;;  %5593 = vmatprep.subr.bf16.mxu0 %v6658_v60  ;;  %v6894_v46 = vpop.f32.mrb[95].mxu0 }
 0x3fe   :  { %2163 = vperm.xlu1 %5690, %v6676_v5   ;;  %2785 = vperm.xlu0 %5689, %v6693_v11   ;;  %v6892_v5 = vpack.c.bf16 %v6886_v44, %v6882_v7 }
 0x400   :  { %8588 = vst [vmem:[#allocation29_spill] sm:$0xff] %v6892_v5 }
 0x402   :  { %2696 = vrot.lane.b32.xlu1 %v6693_v11, %s6331_s7  ;;  %3403 = vperm.xlu0 %5689, %v6697_v15   ;;  %v6898_v11 = vpack.c.bf16 %v6894_v46, %v6884_v23 }
 0x404   :  { %8589 = vst [vmem:[#allocation30_spill] sm:$0xff] %v6898_v11 }
 0x406   :  { %1549 = vperm.xlu1 %5690, %v6691_v10   ;;  %1553 = vperm.xlu0 %5689, %v6699_v17  }
 0x40a   :  { %2078 = vrot.lane.b32.xlu1 %v6695_v12, %s6331_s7  ;;  %2789 = vperm.xlu0 %5689, %v6701_v19  }
 0x40e   :  { %3314 = vrot.lane.b32.xlu1 %v6697_v15, %s6331_s7  ;;  %2171 = vperm.xlu0 %5689, %v6705_v20  }
 0x412   :  { %2167 = vperm.xlu1 %5690, %v6695_v12   ;;  %3407 = vperm.xlu0 %5689, %v6711_v22  }
 0x416   :  { %1462 = vrot.lane.b32.xlu1 %v6699_v17, %s6331_s7  ;;  %1464 = vrot.lane.b32.xlu0 %v6722_v25, %s6331_s7 }
 0x41a   :  { %2698 = vrot.lane.b32.xlu1 %v6701_v19, %s6331_s7  ;;  %2793 = vperm.xlu0 %5689, %v6724_v26  }
 0x41e   :  { %2080 = vrot.lane.b32.xlu1 %v6705_v20, %s6331_s7  ;;  %3411 = vperm.xlu0 %5689, %v6730_v28  }
 0x422   :  { %3316 = vrot.lane.b32.xlu1 %v6711_v22, %s6331_s7  ;;  %1561 = vperm.xlu0 %5689, %v6732_v29  }
 0x426   :  { %2700 = vrot.lane.b32.xlu1 %v6724_v26, %s6331_s7  ;;  %2797 = vperm.xlu0 %5689, %v6734_v30  }
 0x42a   :  { %1557 = vperm.xlu1 %5690, %v6722_v25   ;;  %2179 = vperm.xlu0 %5689, %v6738_v34  }
 0x42e   :  { %2082 = vrot.lane.b32.xlu1 %v6728_v27, %s6331_s7  ;;  %3415 = vperm.xlu0 %5689, %v6744_v36  }
 0x430   :  { %v6935_v10 = vpop.permute.xlu1 %2688  ;;  %v6940_v12 = vpop.permute.xlu0 %1452 }
 0x432   :  { %3318 = vrot.lane.b32.xlu1 %v6730_v28, %s6331_s7  ;;  %1468 = vrot.lane.b32.xlu0 %v6754_v39, %s6331_s7 }
 0x434   :  { %v6942_v15 = vpop.permute.xlu1 %2070 }
 0x436   :  { %2175 = vperm.xlu1 %5690, %v6728_v27   ;;  %3419 = vperm.xlu0 %5689, %v6763_v31  }
 0x438   :  { %v6953_v19 = vpop.permute.xlu1 %3306 }
 0x43a   :  { %1466 = vrot.lane.b32.xlu1 %v6732_v29, %s6331_s7  ;;  %1569 = vperm.xlu0 %5689, %v6765_v42  }
 0x43c   :  { %v6960_v22 = vpop.permute.xlu1 %2690 }
 0x43e   :  { %2702 = vrot.lane.b32.xlu1 %v6734_v30, %s6331_s7  ;;  %2805 = vperm.xlu0 %5689, %v6767_v43  }
 0x441   :  { %v6947_v17 = vpop.permute.xlu0 %1533 }
 0x442   :  { %2084 = vrot.lane.b32.xlu1 %v6738_v34, %s6331_s7  ;;  %3324 = vrot.lane.b32.xlu0 %v6777_v16, %s6331_s7 }
 0x445   :  { %v6955_v20 = vpop.permute.xlu0 %2769 }
 0x446   :  { %3320 = vrot.lane.b32.xlu1 %v6744_v36, %s6331_s7  ;;  %2187 = vperm.xlu0 %5689, %v6771_v45  }
 0x449   :  { %v6962_v25 = vpop.permute.xlu0 %2151 }
 0x44a   :  { %2704 = vrot.lane.b32.xlu1 %v6756_v40, %s6331_s7  ;;  %1472 = vrot.lane.b32.xlu0 %v6788_v48, %s6331_s7 }
 0x44d   :  { %v6968_v26 = vpop.permute.xlu0 %3387  ;;  %v6970_v27 = vpop.permute.xlu1 %1537 }
 0x44e   :  { %8590 = vst [vmem:[#allocation31_spill] sm:$0xff] %v6968_v26  ;;  %1565 = vperm.xlu1 %5690, %v6754_v39   ;;  %3326 = vrot.lane.b32.xlu0 %v6796_v51, %s6331_s7 }
 0x451   :  { %v6975_v28 = vpop.permute.xlu0 %1454  ;;  %v6977_v29 = vpop.permute.xlu1 %2072 }
 0x452   :  { %2801 = vperm.xlu1 %5690, %v6756_v40   ;;  %1577 = vperm.xlu0 %5689, %v6798_v52  }
 0x455   :  { %v6981_v30 = vpop.permute.xlu0 %2773  ;;  %v6983_v34 = vpop.permute.xlu1 %3308 }
 0x456   :  { %2086 = vrot.lane.b32.xlu1 %v6761_v41, %s6331_s7  ;;  %2813 = vperm.xlu0 %5689, %v6800_v53  }
 0x459   :  { %v6988_v36 = vpop.permute.xlu0 %3391  ;;  %v6990_v39 = vpop.permute.xlu1 %2155 }
 0x45a   :  { %8591 = vst [vmem:[#allocation32_spill] sm:$0xff] %v6988_v36  ;;  %8592 = vst [vmem:[#allocation33_spill] sm:$0xff] %v6990_v39  ;;  %3322 = vrot.lane.b32.xlu1 %v6763_v31, %s6331_s7  ;;  %3328 = vrot.lane.b32.xlu0 %v6810_v56, %s6331_s7 }
 0x45d   :  { %v6996_v40 = vpop.permute.xlu0 %2777  ;;  %v6998_v63 = vpop.permute.xlu1 %1456 }
 0x45e   :  { %8593 = vst [vmem:[#allocation34_spill] sm:$0xff] %v6996_v40  ;;  %2183 = vperm.xlu1 %5690, %v6761_v41   ;;  %2195 = vperm.xlu0 %5689, %v6804_v54  }
 0x461   :  { %v7002_v11 = vpop.permute.xlu1 %2692  ;;  %v7004_v58 = vpop.permute.xlu0 %2159 }
 0x462   :  { %8594 = vst [vmem:[#allocation35_spill] sm:$0xff] %v7004_v58  ;;  %1470 = vrot.lane.b32.xlu1 %v6765_v42, %s6331_s7  ;;  %3431 = vperm.xlu0 %5689, %v6810_v56  }
 0x465   :  { %v7009_v31 = vpop.permute.xlu1 %1541  ;;  %v7011_v47 = vpop.permute.xlu0 %3395 }
 0x466   :  { %8595 = vst [vmem:[#allocation36_spill] sm:$0xff] %v7011_v47  ;;  %2706 = vrot.lane.b32.xlu1 %v6767_v43, %s6331_s7  ;;  %1476 = vrot.lane.b32.xlu0 %v6822_v59, %s6331_s7 }
 0x469   :  { %v7017_v41 = vpop.permute.xlu0 %2694  ;;  %v7019_v38 = vpop.permute.xlu1 %2074 }
 0x46a   :  { %2088 = vrot.lane.b32.xlu1 %v6771_v45, %s6331_s7  ;;  %2817 = vperm.xlu0 %5689, %v6824_v61  }
 0x46d   :  { %v7024_v42 = vpop.permute.xlu1 %3310  ;;  %v7026_v56 = vpop.permute.xlu0 %1545 }
 0x46e   :  { %3423 = vperm.xlu1 %5690, %v6777_v16   ;;  %3330 = vrot.lane.b32.xlu0 %v6831_v4, %s6331_s7 }
 0x471   :  { %v7031_v43 = vpop.permute.xlu0 %2781  ;;  %v7033_v24 = vpop.permute.xlu1 %1458 }
 0x472   :  { %8596 = vst [vmem:[#allocation37_spill] sm:$0xff] %v7031_v43  ;;  %2708 = vrot.lane.b32.xlu1 %v6790_v49, %s6331_s7  ;;  %3435 = vperm.xlu0 %5689, %v6831_v4  }
 0x475   :  { %v7038_v45 = vpop.permute.xlu0 %3399  ;;  %v7040_v9 = vpop.permute.xlu1 %2076 }
 0x476   :  { %8597 = vst [vmem:[#allocation38_spill] sm:$0xff] %v7038_v45  ;;  %1573 = vperm.xlu1 %5690, %v6788_v48   ;;  %1585 = vperm.xlu0 %5689, %v6833_v8  }
 0x479   :  { %v7044_v16 = vpop.permute.xlu1 %3312  ;;  %v7046_v60 = vpop.permute.xlu0 %1460 }
 0x47a   :  { %2809 = vperm.xlu1 %5690, %v6790_v49   ;;  %3332 = vrot.lane.b32.xlu0 %v6859_v3, %s6331_s7 }
 0x47d   :  { %v7051_v5 = vpop.permute.xlu1 %2163  ;;  %v7053_v4 = vpop.permute.xlu0 %2785 }
 0x47e   :  { %8598 = vst [vmem:[#allocation39_spill] sm:$0xff] %v7053_v4  ;;  %2090 = vrot.lane.b32.xlu1 %v6794_v50, %s6331_s7  ;;  %2203 = vperm.xlu0 %5689, %v6837_v18  }
 0x481   :  { %v7058_v48 = vpop.permute.xlu1 %2696  ;;  %v7060_v2 = vpop.permute.xlu0 %3403 }
 0x482   :  { %8599 = vst [vmem:[#allocation40_spill] sm:$0xff] %v7060_v2  ;;  %2191 = vperm.xlu1 %5690, %v6794_v50   ;;  %1480 = vrot.lane.b32.xlu0 %v6844_v1, %s6331_s7 }
 0x485   :  { %v7065_v49 = vpop.permute.xlu1 %1549  ;;  %v7067_v55 = vpop.permute.xlu0 %1553 }
 0x486   :  { %3427 = vperm.xlu1 %5690, %v6796_v51   ;;  %2716 = vrot.lane.b32.xlu0 %v6882_v7, %s6331_s7 }
 0x489   :  { %v7072_v13 = vpop.permute.xlu1 %2078  ;;  %v7074_v35 = vpop.permute.xlu0 %2789 }
 0x48a   :  { %8600 = vst [vmem:[#allocation41_spill] sm:$0xff] %v7074_v35  ;;  %1474 = vrot.lane.b32.xlu1 %v6798_v52, %s6331_s7  ;;  %2825 = vperm.xlu0 %5689, %v6882_v7  }
 0x48d   :  { %v7079_v50 = vpop.permute.xlu1 %3314  ;;  %v7081_v21 = vpop.permute.xlu0 %2171 }
 0x48e   :  { %8601 = vst [vmem:[#allocation42_spill] sm:$0xff] %v7081_v21  ;;  %2710 = vrot.lane.b32.xlu1 %v6800_v53, %s6331_s7  ;;  %2718 = vrot.lane.b32.xlu0 %v6886_v44, %s6331_s7 }
 0x491   :  { %v7087_v51 = vpop.permute.xlu1 %2167  ;;  %v7089_v6 = vpop.permute.xlu0 %3407 }
 0x492   :  { %8602 = vst [vmem:[#allocation43_spill] sm:$0xff] %v7089_v6  ;;  %2092 = vrot.lane.b32.xlu1 %v6804_v54, %s6331_s7  ;;  %1593 = vperm.xlu0 %5689, %v6853_v32  }
 0x495   :  { %v1463_v52 = vpop.permute.xlu1 %1462  ;;  %v1465_v7 = vpop.permute.xlu0 %1464 }
 0x496   :  { %2712 = vrot.lane.b32.xlu1 %v6824_v61, %s6331_s7  ;;  %2211 = vperm.xlu0 %5689, %v6863_v0  }
 0x499   :  { %v7097_v53 = vpop.permute.xlu1 %2698  ;;  %v7099_v57 = vpop.permute.xlu0 %2793 }
 0x49a   :  { %8603 = vst [vmem:[#allocation44_spill] sm:$0xff] %v7099_v57  ;;  %1581 = vperm.xlu1 %5690, %v6822_v59   ;;  %3447 = vperm.xlu0 %5689, %v6894_v46  }
 0x49d   :  { %v7103_v2 = vpop.permute.xlu1 %2080  ;;  %v7105_v54 = vpop.permute.xlu0 %3411 }
 0x49e   :  { %8604 = vst [vmem:[#allocation45_spill] sm:$0xff] %v7105_v54  ;;  %2094 = vrot.lane.b32.xlu1 %v6829_v62, %s6331_s7 }
 0x4a1   :  { %v7109_v4 = vpop.permute.xlu1 %3316  ;;  %v7111_v61 = vpop.permute.xlu0 %1561 }
 0x4a2   :  { %2199 = vperm.xlu1 %5690, %v6829_v62  }
 0x4a5   :  { %v7114_v40 = vpop.permute.xlu1 %2700  ;;  %v7116_v57 = vpop.permute.xlu0 %2797 }
 0x4a6   :  { %8605 = vst [vmem:[#allocation46_spill] sm:$0xff] %v7116_v57  ;;  %1478 = vrot.lane.b32.xlu1 %v6833_v8, %s6331_s7 }
 0x4a9   :  { %v7120_v59 = vpop.permute.xlu1 %1557  ;;  %v7122_v47 = vpop.permute.xlu0 %2179 }
 0x4aa   :  { %2714 = vrot.lane.b32.xlu1 %v6851_v37, %s6331_s7 }
 0x4ad   :  { %v7126_v54 = vpop.permute.xlu1 %2082  ;;  %v7128_v26 = vpop.permute.xlu0 %3415 }
 0x4ae   :  { %8606 = vst [vmem:[#allocation47_spill] sm:$0xff] %v7128_v26  ;;  %2821 = vperm.xlu1 %5690, %v6851_v37  }
 0x4b1   :  { %v7131_v62 = vpop.permute.xlu1 %3318  ;;  %v1469_v6 = vpop.permute.xlu0 %1468 }
 0x4b2   :  { %2096 = vrot.lane.b32.xlu1 %v6837_v18, %s6331_s7 }
 0x4b5   :  { %v7135_v8 = vpop.permute.xlu1 %2175  ;;  %v7138_v57 = vpop.permute.xlu0 %3419 }
 0x4b6   :  { %8607 = vst [vmem:[#allocation48_spill] sm:$0xff] %v7135_v8  ;;  %3439 = vperm.xlu1 %5690, %v6859_v3   ;;  %8608 = vst [vmem:[#allocation49_spill] sm:$0xff] %v7138_v57 }
 0x4b8   :  { %1500 = vxpose.xlu0.b32.start [1/16] (narrow) %v6940_v12, 8 }
 0x4b9   :  { %v1467_v35 = vpop.permute.xlu1 %1466  ;;  %v7143_v37 = vpop.permute.xlu0 %1569 }
 0x4ba   :  { %1589 = vperm.xlu1 %5690, %v6844_v1  }
 0x4bc   :  { %1501 = vxpose.xlu0.b32.cont [2/16] (narrow) %v6975_v28, 8 }
 0x4bd   :  { %v7145_v26 = vpop.permute.xlu1 %2702  ;;  %v7154_v3 = vpop.permute.xlu0 %2805 }
 0x4be   :  { %2098 = vrot.lane.b32.xlu1 %v6849_v33, %s6331_s7  ;;  %8609 = vst [vmem:[#allocation50_spill] sm:$0xff] %v7154_v3 }
 0x4c0   :  { %1502 = vxpose.xlu0.b32.cont [3/16] (narrow) %v6998_v63, 8 }
 0x4c1   :  { %v7150_v18 = vpop.permute.xlu1 %2084  ;;  %v7161_v12 = vpop.permute.xlu0 %3324 }
 0x4c2   :  { %3334 = vrot.lane.b32.xlu1 %v6884_v23, %s6331_s7 }
 0x4c4   :  { %1503 = vxpose.xlu0.b32.cont [4/16] (narrow) %v7033_v24, 8 }
 0x4c5   :  { %v7157_v1 = vpop.permute.xlu1 %3320  ;;  %v7168_v57 = vpop.permute.xlu0 %2187 }
 0x4c6   :  { %2207 = vperm.xlu1 %5690, %v6849_v33  }
 0x4c8   :  { %1504 = vxpose.xlu0.b32.cont [5/16] (narrow) %v7046_v60, 8 }
 0x4c9   :  { %v2705_v28 = vpop.permute.xlu1 %2704  ;;  %v1473_v60 = vpop.permute.xlu0 %1472 }
 0x4ca   :  { %3443 = vperm.xlu1 %5690, %v6884_v23  }
 0x4cc   :  { %1505 = vxpose.xlu0.b32.cont [6/16] (narrow) %v1463_v52, 8 }
 0x4cd   :  { %v7164_v63 = vpop.permute.xlu1 %1565 }
 0x4ce   :  { %1482 = vrot.lane.b32.xlu1 %v6853_v32, %s6331_s7  ;;  %v7181_v32 = vpop.permute.xlu0 %3326 }
 0x4d0   :  { %1506 = vxpose.xlu0.b32.cont [7/16] (narrow) %v1465_v7, 8 }
 0x4d1   :  { %v7170_v24 = vpop.permute.xlu1 %2801 }
 0x4d2   :  { %8610 = vst [vmem:[#allocation51_spill] sm:$0xff] %v7170_v24  ;;  %2829 = vperm.xlu1 %5690, %v6886_v44   ;;  %v7185_v7 = vpop.permute.xlu0 %1577 }
 0x4d4   :  { %1507 = vxpose.xlu0.b32.cont [8/16] (narrow) %v1467_v35, 8 }
 0x4d5   :  { %v7173_v33 = vpop.permute.xlu1 %2086 }
 0x4d6   :  { %2100 = vrot.lane.b32.xlu1 %v6863_v0, %s6331_s7  ;;  %v7187_v24 = vpop.permute.xlu0 %2813 }
 0x4d7   :  { %8612 = vst [vmem:[#allocation53_spill] sm:$0xff] %v7187_v24 }
 0x4d8   :  { %1508 = vxpose.xlu0.b32.cont [9/16] (narrow) %v1469_v6, 8 }
 0x4d9   :  { %v7177_v23 = vpop.permute.xlu1 %3322 }
 0x4da   :  { %3336 = vrot.lane.b32.xlu1 %v6894_v46, %s6331_s7  ;;  %v7191_v6 = vpop.permute.xlu0 %3328 }
 0x4dd   :  { %v7183_v52 = vpop.permute.xlu1 %2183 }
 0x4de   :  { %8611 = vst [vmem:[#allocation52_spill] sm:$0xff] %v7183_v52  ;;  %v7195_v46 = vpop.permute.xlu0 %2195 }
 0x4df   :  { %8614 = vst [vmem:[#allocation55_spill] sm:$0xff] %v7195_v46 }
 0x4e1   :  { %v1471_v44 = vpop.permute.xlu1 %1470 }
 0x4e2   :  { %1509 = vxpose.xlu0.b32.cont [10/16] (narrow) %v1471_v44, 8  ;;  %v7199_v52 = vpop.permute.xlu0 %3431 }
 0x4e3   :  { %8615 = vst [vmem:[#allocation56_spill] sm:$0xff] %v7199_v52 }
 0x4e5   :  { %v2707_v35 = vpop.permute.xlu1 %2706 }
 0x4e6   :  { %1510 = vxpose.xlu0.b32.cont [11/16] (narrow) %v1473_v60, 8  ;;  %v1477_v60 = vpop.permute.xlu0 %1476 }
 0x4e9   :  { %v7189_v3 = vpop.permute.xlu1 %2088 }
 0x4ea   :  { %v7208_v24 = vpop.permute.xlu0 %2817 }
 0x4eb   :  { %8618 = vst [vmem:[#allocation59_spill] sm:$0xff] %v7208_v24 }
 0x4ed   :  { %v7193_v0 = vpop.permute.xlu1 %3423 }
 0x4ee   :  { %8613 = vst [vmem:[#allocation54_spill] sm:$0xff] %v7193_v0  ;;  %v7213_v58 = vpop.permute.xlu0 %3330 }
 0x4f1   :  { %v2709_v43 = vpop.permute.xlu1 %2708 }
 0x4f2   :  { %v7217_v52 = vpop.permute.xlu0 %3435 }
 0x4f3   :  { %8620 = vst [vmem:[#allocation61_spill] sm:$0xff] %v7217_v52 }
 0x4f5   :  { %v7197_v45 = vpop.permute.xlu1 %1573 }
 0x4f6   :  { %v7220_v24 = vpop.permute.xlu0 %1585 }
 0x4f9   :  { %v7201_v36 = vpop.permute.xlu1 %2809 }
 0x4fa   :  { %8616 = vst [vmem:[#allocation57_spill] sm:$0xff] %v7201_v36 }
 0x4fd   :  { %v7203_v44 = vpop.permute.xlu1 %2090 }
 0x501   :  { %v7205_v8 = vpop.permute.xlu1 %2191 }
 0x502   :  { %8617 = vst [vmem:[#allocation58_spill] sm:$0xff] %v7205_v8 }
 0x503   :  { %2736 = vxpose.xlu1.b32.start [1/16] (narrow) %v6935_v10, 8 }
 0x505   :  { %v7210_v21 = vpop.permute.xlu1 %3427 }
 0x506   :  { %8619 = vst [vmem:[#allocation60_spill] sm:$0xff] %v7210_v21 }
 0x507   :  { %2737 = vxpose.xlu1.b32.cont [2/16] (narrow) %v6960_v22, 8 }
 0x509   :  { %v1475_v0 = vpop.permute.xlu1 %1474 }
 0x50a   :  { %1511 = vxpose.xlu0.b32.cont [12/16] (narrow) %v1475_v0, 8  ;;  %v3333_v0 = vpop.permute.xlu0 %3332 }
 0x50b   :  { %2738 = vxpose.xlu1.b32.cont [3/16] (narrow) %v7002_v11, 8 }
 0x50d   :  { %v2711_v36 = vpop.permute.xlu1 %2710 }
 0x50e   :  { %1512 = vxpose.xlu0.b32.cont [13/16] (narrow) %v1477_v60, 8 }
 0x50f   :  { %2739 = vxpose.xlu1.b32.cont [4/16] (narrow) %v7017_v41, 8  ;;  %v7229_v41 = vpop.permute.xlu0 %2203 }
 0x511   :  { %v2093_v8 = vpop.permute.xlu1 %2092 }
 0x513   :  { %2740 = vxpose.xlu1.b32.cont [5/16] (narrow) %v7058_v48, 8  ;;  %v1481_v48 = vpop.permute.xlu0 %1480 }
 0x515   :  { %v2713_v10 = vpop.permute.xlu1 %2712 }
 0x517   :  { %2741 = vxpose.xlu1.b32.cont [6/16] (narrow) %v7097_v53, 8  ;;  %v2717_v46 = vpop.permute.xlu0 %2716 }
 0x519   :  { %v7223_v22 = vpop.permute.xlu1 %1581 }
 0x51b   :  { %2742 = vxpose.xlu1.b32.cont [7/16] (narrow) %v7114_v40, 8 }
 0x51d   :  { %v2095_v11 = vpop.permute.xlu1 %2094 }
 0x51f   :  { %2743 = vxpose.xlu1.b32.cont [8/16] (narrow) %v7145_v26, 8  ;;  %v7235_v26 = vpop.permute.xlu0 %2825 }
 0x521   :  { %v7227_v60 = vpop.permute.xlu1 %2199 }
 0x522   :  { %8621 = vst [vmem:[#allocation62_spill] sm:$0xff] %v7227_v60 }
 0x523   :  { %2744 = vxpose.xlu1.b32.cont [9/16] (narrow) %v2705_v28, 8 }
 0x525   :  { %v1479_v52 = vpop.permute.xlu1 %1478 }
 0x526   :  { %1513 = vxpose.xlu0.b32.cont [14/16] (narrow) %v1479_v52, 8  ;;  %v2719_v52 = vpop.permute.xlu0 %2718 }
 0x527   :  { %2745 = vxpose.xlu1.b32.cont [10/16] (narrow) %v2707_v35, 8 }
 0x529   :  { %v2715_v21 = vpop.permute.xlu1 %2714 }
 0x52a   :  { %1514 = vxpose.xlu0.b32.cont [15/16] (narrow) %v1481_v48, 8 }
 0x52b   :  { %2746 = vxpose.xlu1.b32.cont [11/16] (narrow) %v2709_v43, 8 }
 0x52d   :  { %v7231_v53 = vpop.permute.xlu1 %2821 }
 0x52f   :  { %2747 = vxpose.xlu1.b32.cont [12/16] (narrow) %v2711_v36, 8 }
 0x531   :  { %v2097_v40 = vpop.permute.xlu1 %2096 }
 0x533   :  { %2748 = vxpose.xlu1.b32.cont [13/16] (narrow) %v2713_v10, 8 }
 0x535   :  { %v7233_v39 = vpop.permute.xlu1 %3439 }
 0x537   :  { %2749 = vxpose.xlu1.b32.cont [14/16] (narrow) %v2715_v21, 8 }
 0x539   :  { %v7237_v60 = vpop.permute.xlu1 %1589 }
 0x53b   :  { %2750 = vxpose.xlu1.b32.cont [15/16] (narrow) %v2717_v46, 8 }
 0x53d   :  { %v2099_v28 = vpop.permute.xlu1 %2098 }
 0x53f   :  { %2751 = vxpose.xlu1.b32.end [16/16] (narrow) %v2719_v52, 8  ;;  %v7336_v52 = vld [vmem:[%s8508_s1 + $0x48] sm:$0xff] }
 0x541   :  { %v3335_v35 = vpop.permute.xlu1 %3334 }
 0x543   :  { %2118 = vxpose.xlu1.b32.start [1/16] (narrow) %v6942_v15, 8 }
 0x545   :  { %v7240_v43 = vpop.permute.xlu1 %2207 }
 0x547   :  { %2119 = vxpose.xlu1.b32.cont [2/16] (narrow) %v6977_v29, 8 }
 0x549   :  { %v7243_v36 = vpop.permute.xlu1 %3443 }
 0x54b   :  { %2120 = vxpose.xlu1.b32.cont [3/16] (narrow) %v7019_v38, 8 }
 0x54d   :  { %v1483_v21 = vpop.permute.xlu1 %1482 }
 0x54e   :  { %1515 = vxpose.xlu0.b32.end [16/16] (narrow) %v1483_v21, 8 }
 0x54f   :  { %2121 = vxpose.xlu1.b32.cont [4/16] (narrow) %v7040_v9, 8 }
 0x551   :  { %v7264_v9 = vpop.permute.xlu1 %2829 }
 0x552   :  { %3354 = vxpose.xlu0.b32.start [1/16] (narrow) %v6953_v19, 8 }
 0x553   :  { %2122 = vxpose.xlu1.b32.cont [5/16] (narrow) %v7072_v13, 8  ;;  %v1594_v13 = vpop.permute.xlu0 %1593 }
 0x555   :  { %v2101_v38 = vpop.permute.xlu1 %2100 }
 0x556   :  { %3355 = vxpose.xlu0.b32.cont [2/16] (narrow) %v6983_v34, 8 }
 0x557   :  { %2123 = vxpose.xlu1.b32.cont [6/16] (narrow) %v7103_v2, 8  ;;  %v7269_v2 = vpop.permute.xlu0 %2211 }
 0x559   :  { %v3337_v15 = vpop.permute.xlu1 %3336 }
 0x55a   :  { %3356 = vxpose.xlu0.b32.cont [3/16] (narrow) %v7024_v42, 8 }
 0x55b   :  { %2124 = vxpose.xlu1.b32.cont [7/16] (narrow) %v7126_v54, 8  ;;  %v7271_v19 = vpop.permute.xlu0 %3447 }
 0x55e   :  { %3357 = vxpose.xlu0.b32.cont [4/16] (narrow) %v7044_v16, 8 }
 0x55f   :  { %2125 = vxpose.xlu1.b32.cont [8/16] (narrow) %v7150_v18, 8 }
 0x562   :  { %3358 = vxpose.xlu0.b32.cont [5/16] (narrow) %v7079_v50, 8 }
 0x563   :  { %2126 = vxpose.xlu1.b32.cont [9/16] (narrow) %v7173_v33, 8 }
 0x566   :  { %3359 = vxpose.xlu0.b32.cont [6/16] (narrow) %v7109_v4, 8 }
 0x567   :  { %2127 = vxpose.xlu1.b32.cont [10/16] (narrow) %v7189_v3, 8 }
 0x56a   :  { %3360 = vxpose.xlu0.b32.cont [7/16] (narrow) %v7131_v62, 8  ;;  %v7285_v62 = vld [vmem:[%s8508_s1 + $0x8] sm:$0xff] }
 0x56b   :  { %2128 = vxpose.xlu1.b32.cont [11/16] (narrow) %v7203_v44, 8 }
 0x56e   :  { %3361 = vxpose.xlu0.b32.cont [8/16] (narrow) %v7157_v1, 8 }
 0x56f   :  { %2129 = vxpose.xlu1.b32.cont [12/16] (narrow) %v2093_v8, 8 }
 0x572   :  { %3362 = vxpose.xlu0.b32.cont [9/16] (narrow) %v7177_v23, 8 }
 0x573   :  { %2130 = vxpose.xlu1.b32.cont [13/16] (narrow) %v2095_v11, 8 }
 0x576   :  { %3363 = vxpose.xlu0.b32.cont [10/16] (narrow) %v7161_v12, 8 }
 0x577   :  { %2131 = vxpose.xlu1.b32.cont [14/16] (narrow) %v2097_v40, 8 }
 0x57a   :  { %3364 = vxpose.xlu0.b32.cont [11/16] (narrow) %v7181_v32, 8 }
 0x57b   :  { %2132 = vxpose.xlu1.b32.cont [15/16] (narrow) %v2099_v28, 8 }
 0x57e   :  { %3365 = vxpose.xlu0.b32.cont [12/16] (narrow) %v7191_v6, 8 }
 0x57f   :  { %2133 = vxpose.xlu1.b32.end [16/16] (narrow) %v2101_v38, 8 }
 0x582   :  { %3366 = vxpose.xlu0.b32.cont [13/16] (narrow) %v7213_v58, 8 }
 0x583   :  { %v2752_v10 = vpop.trf.xlu1 }
 0x584   :  { %v7331_v28 = vrot.slane %v2752_v10, %v6524_v14 }
 0x586   :  { %3367 = vxpose.xlu0.b32.cont [14/16] (narrow) %v3333_v0, 8 }
 0x58a   :  { %3368 = vxpose.xlu0.b32.cont [15/16] (narrow) %v3335_v35, 8 }
 0x58e   :  { %3369 = vxpose.xlu0.b32.end [16/16] (narrow) %v3337_v15, 8 }
 0x592   :  { %v1516_v29 = vpop.trf.xlu0 }
 0x593   :  { %v7274_v34 = vrot.slane %v1516_v29, %v6524_v14 }
 0x595   :  { %v1601_v42 = vadd.f32 %v7274_v34, %v6970_v27  ;;  %v1603_v4 = vadd.f32 %v7274_v34, %v7026_v56  ;;  %v1604_v54 = vadd.f32 %v7274_v34, %v7065_v49  ;;  %v1606_v27 = vadd.f32 %v7274_v34, %v7120_v59  ;;  %v7296_v56 = vld [vmem:[%s8508_s1 + $0x18] sm:$0xff]  ;;  %v7307_v59 = vld [vmem:[%s8508_s1 + $0x20] sm:$0xff] }
 0x596   :  { %v1609_v33 = vadd.f32 %v7274_v34, %v7143_v37  ;;  %v1611_v46 = vadd.f32 %v7274_v34, %v7185_v7  ;;  %v1600_v44 = vadd.f32 %v7274_v34, %v6947_v17  ;;  %v7320_v37 = vld [vmem:[%s8508_s1 + $0x30] sm:$0xff]  ;;  %v1613_v40 = vadd.f32 %v7274_v34, %v7220_v24 }
 0x597   :  { %v1617_v16 = vmul.f32 0.2, %v1601_v42  ;;  %v1619_v50 = vmul.f32 0.2, %v1603_v4  ;;  %v1620_v3 = vmul.f32 0.2, %v1604_v54  ;;  %v1602_v17 = vadd.f32 %v7274_v34, %v7009_v31 }
 0x598   :  { %v1622_v12 = vmul.f32 0.2, %v1606_v27  ;;  %v1625_v6 = vmul.f32 0.2, %v1609_v33  ;;  %v1627_v48 = vmul.f32 0.2, %v1611_v46  ;;  %v1615_v24 = vadd.f32 %v7274_v34, %v1594_v13 }
 0x599   :  { %v1633_v58 = vmax.f32 %v1601_v42, %v1617_v16  ;;  %v1635_v18 = vmax.f32 %v1603_v4, %v1619_v50  ;;  %v1636_v1 = vmax.f32 %v1604_v54, %v1620_v3  ;;  %v1616_v7 = vmul.f32 0.2, %v1600_v44  ;;  %v7348_v42 = vld [vmem:[%s8508_s1 + $0x58] sm:$0xff]  ;;  %v7356_v4 = vld [vmem:[%s8508_s1] sm:$0xff] }
 0x59a   :  { %v1638_v32 = vmax.f32 %v1606_v27, %v1622_v12  ;;  %v1641_v11 = vmax.f32 %v1609_v33, %v1625_v6  ;;  %v1643_v21 = vmax.f32 %v1611_v46, %v1627_v48  ;;  %v1629_v38 = vmul.f32 0.2, %v1613_v40  ;;  %v7370_v27 = vld [vmem:[%s8508_s1 + $0x68] sm:$0xff] }
 0x59b   :  { %v7288_v8 = vadd.f32 %v7285_v62, %v1633_v58  ;;  %v7299_v49 = vadd.f32 %v7296_v56, %v1635_v18  ;;  %v7310_v23 = vadd.f32 %v7307_v59, %v1636_v1  ;;  %v1632_v15 = vmax.f32 %v1600_v44, %v1616_v7  ;;  %v7390_v44 = vld [vmem:[%s8508_s1 + $0x78] sm:$0xff] }
 0x59c   :  { %v7323_v0 = vadd.f32 %v7320_v37, %v1638_v32  ;;  %v7339_v35 = vadd.f32 %v7336_v52, %v1641_v11  ;;  %v1618_v29 = vmul.f32 0.2, %v1602_v17  ;;  %v1605_v31 = vadd.f32 %v7274_v34, %v7067_v55  ;;  %v7398_v11 = vld [vmem:[%s8508_s1 + $0x28] sm:$0xff] }
 0x59d   :  { %v7351_v16 = vadd.f32 %v7348_v42, %v1643_v21  ;;  %v1645_v13 = vmax.f32 %v1613_v40, %v1629_v38  ;;  %v1631_v58 = vmul.f32 0.2, %v1615_v24  ;;  %v2837_v55 = vadd.f32 %v7331_v28, %v6981_v30  ;;  %v7378_v30 = vld [vmem:[%s8508_s1 + $0x10] sm:$0xff] }
 0x59e   :  { %v7361_v50 = vadd.f32 %v7356_v4, %v1632_v15  ;;  %v1634_v54 = vmax.f32 %v1602_v17, %v1618_v29  ;;  %v1621_v18 = vmul.f32 0.2, %v1605_v31  ;;  %v1607_v3 = vadd.f32 %v7274_v34, %v7111_v61  ;;  %v7416_v15 = vld [vmem:[%s8508_s1 + $0x38] sm:$0xff] }
 0x59f   :  { %v7373_v1 = vadd.f32 %v7370_v27, %v1645_v13  ;;  %v1647_v12 = vmax.f32 %v1615_v24, %v1631_v58  ;;  %v2853_v33 = vmul.f32 0.2, %v2837_v55  ;;  %v1608_v46 = vadd.f32 %v7274_v34, %v7164_v63 }
 0x5a0   :  { %v7381_v61 = vadd.f32 %v7378_v30, %v1634_v54  ;;  %v1637_v32 = vmax.f32 %v1605_v31, %v1621_v18  ;;  %v1623_v6 = vmul.f32 0.2, %v1607_v3  ;;  %v1610_v17 = vadd.f32 %v7274_v34, %v7197_v45  ;;  %v7432_v54 = vld [vmem:[%s8508_s1 + $0x40] sm:$0xff] }
 0x5a1   :  { %v7393_v10 = vadd.f32 %v7390_v44, %v1647_v12  ;;  %v2869_v48 = vmax.f32 %v2837_v55, %v2853_v33  ;;  %v1624_v7 = vmul.f32 0.2, %v1608_v46  ;;  %v1612_v13 = vadd.f32 %v7274_v34, %v7223_v22 }
 0x5a2   :  { %v7401_v63 = vadd.f32 %v7398_v11, %v1637_v32  ;;  %v1639_v40 = vmax.f32 %v1607_v3, %v1623_v6  ;;  %v1626_v31 = vmul.f32 0.2, %v1610_v17 }
 0x5a3   :  { %v7411_v24 = vadd.f32 %v2869_v48, %v7285_v62  ;;  %v1640_v45 = vmax.f32 %v1608_v46, %v1624_v7  ;;  %v7448_v46 = vld [vmem:[%s8508_s1 + $0x50] sm:$0xff] }
 0x5a4   :  { %v7419_v29 = vadd.f32 %v7416_v15, %v1639_v40  ;;  %v1642_v33 = vmax.f32 %v1610_v17, %v1626_v31  ;;  %v2836_v17 = vadd.f32 %v7331_v28, %v6955_v20 }
 0x5a5   :  { %v7437_v12 = vadd.f32 %v7432_v54, %v1640_v45  ;;  %v7465_v45 = vld [vmem:[%s8508_s1 + $0x60] sm:$0xff] }
 0x5a6   :  { %1682 = vmax.xlane.f32.xlu1 %v7288_v8  ;;  %v7453_v7 = vadd.f32 %v7448_v46, %v1642_v33  ;;  %v8625_v33 = vld [vmem:[#allocation55_spill] sm:$0xff] }
 0x5aa   :  { %1686 = vmax.xlane.f32.xlu1 %v7299_v49 }
 0x5ae   :  { %1688 = vmax.xlane.f32.xlu1 %v7310_v23 }
 0x5b2   :  { %1692 = vmax.xlane.f32.xlu1 %v7323_v0 }
 0x5b6   :  { %1698 = vmax.xlane.f32.xlu1 %v7339_v35 }
 0x5ba   :  { %1702 = vmax.xlane.f32.xlu1 %v7351_v16 }
 0x5bb   :  { %1680 = vmax.xlane.f32.xlu0 %v7361_v50 }
 0x5be   :  { %1706 = vmax.xlane.f32.xlu1 %v7373_v1 }
 0x5bf   :  { %1684 = vmax.xlane.f32.xlu0 %v7381_v61 }
 0x5c2   :  { %1710 = vmax.xlane.f32.xlu1 %v7393_v10 }
 0x5c3   :  { %1690 = vmax.xlane.f32.xlu0 %v7401_v63  ;;  %v2134_v21 = vpop.trf.xlu1 }
 0x5c4   :  { %v7408_v38 = vrot.slane %v2134_v21, %v6524_v14 }
 0x5c6   :  { %2918 = vmax.xlane.f32.xlu1 %v7411_v24  ;;  %v2218_v58 = vadd.f32 %v7408_v38, %v6962_v25  ;;  %v2221_v55 = vadd.f32 %v7408_v38, %v7051_v5  ;;  %v2222_v22 = vadd.f32 %v7408_v38, %v7087_v51  ;;  %v1628_v25 = vmul.f32 0.2, %v1612_v13 }
 0x5c7   :  { %1694 = vmax.xlane.f32.xlu0 %v7419_v29  ;;  %v1614_v5 = vadd.f32 %v7274_v34, %v7237_v60  ;;  %v2225_v40 = vadd.f32 %v7408_v38, %v7122_v47 }
 0x5c8   :  { %v2234_v18 = vmul.f32 0.2, %v2218_v58  ;;  %v2237_v3 = vmul.f32 0.2, %v2221_v55  ;;  %v2238_v48 = vmul.f32 0.2, %v2222_v22  ;;  %v1644_v60 = vmax.f32 %v1612_v13, %v1628_v25 }
 0x5c9   :  { %v1630_v34 = vmul.f32 0.2, %v1614_v5  ;;  %v2241_v31 = vmul.f32 0.2, %v2225_v40  ;;  %v2227_v13 = vadd.f32 %v7408_v38, %v7168_v57  ;;  %v2229_v25 = vadd.f32 %v7408_v38, %v8625_v33  ;;  %v7484_v57 = vld [vmem:[%s8508_s1 + $0x70] sm:$0xff] }
 0x5ca   :  { %v2250_v32 = vmax.f32 %v2218_v58, %v2234_v18  ;;  %v2253_v51 = vmax.f32 %v2221_v55, %v2237_v3  ;;  %v2254_v47 = vmax.f32 %v2222_v22, %v2238_v48  ;;  %v7470_v58 = vadd.f32 %v7465_v45, %v1644_v60  ;;  %v8624_v18 = vld [vmem:[#allocation33_spill] sm:$0xff] }
 0x5cb   :  { %1696 = vmax.xlane.f32.xlu0 %v7437_v12  ;;  %v1646_v20 = vmax.f32 %v1614_v5, %v1630_v34  ;;  %v2852_v55 = vmul.f32 0.2, %v2836_v17  ;;  %v2219_v3 = vadd.f32 %v7408_v38, %v8624_v18  ;;  %v2257_v5 = vmax.f32 %v2225_v40, %v2241_v31  ;;  %v8627_v34 = vld [vmem:[#allocation35_spill] sm:$0xff] }
 0x5cc   :  { %v7443_v6 = vadd.f32 %v2250_v32, %v7356_v4  ;;  %v7460_v21 = vadd.f32 %v2253_v51, %v7296_v56  ;;  %v7479_v22 = vadd.f32 %v2254_v47, %v7307_v59  ;;  %v2243_v32 = vmul.f32 0.2, %v2227_v13 }
 0x5cd   :  { %v7487_v51 = vadd.f32 %v7484_v57, %v1646_v20  ;;  %v2868_v48 = vmax.f32 %v2836_v17, %v2852_v55  ;;  %v2235_v60 = vmul.f32 0.2, %v2219_v3  ;;  %v2220_v18 = vadd.f32 %v7408_v38, %v8627_v34 }
 0x5ce   :  { %8622 = vst [vmem:[#allocation63_spill] sm:$0xff] %v7443_v6  ;;  %2298 = vmax.xlane.f32.xlu1 %v7443_v6  ;;  %8623 = vst [vmem:[#allocation64_spill] sm:$0xff] %v7460_v21  ;;  %v2245_v47 = vmul.f32 0.2, %v2229_v25  ;;  %v7494_v33 = vadd.f32 %v2257_v5, %v7416_v15  ;;  %v2231_v40 = vadd.f32 %v7408_v38, %v7229_v41  ;;  %v8629_v6 = vld [vmem:[#allocation42_spill] sm:$0xff] }
 0x5cf   :  { %1700 = vmax.xlane.f32.xlu0 %v7453_v7  ;;  %8626 = vst [vmem:[#allocation33_spill] sm:$0xff] %v7479_v22  ;;  %v7499_v20 = vadd.f32 %v2868_v48, %v7356_v4  ;;  %v2251_v17 = vmax.f32 %v2219_v3, %v2235_v60  ;;  %v2236_v55 = vmul.f32 0.2, %v2220_v18  ;;  %v2223_v34 = vadd.f32 %v7408_v38, %v8629_v6  ;;  %v8632_v60 = vld [vmem:[#allocation48_spill] sm:$0xff] }
 0x5d0   :  { %8628 = vst [vmem:[#allocation55_spill] sm:$0xff] %v7494_v33  ;;  %v2247_v41 = vmul.f32 0.2, %v2231_v40 }
 0x5d1   :  { %v7514_v3 = vadd.f32 %v2251_v17, %v7285_v62  ;;  %v2252_v48 = vmax.f32 %v2220_v18, %v2236_v55  ;;  %v2239_v6 = vmul.f32 0.2, %v2223_v34 }
 0x5d2   :  { %2304 = vmax.xlane.f32.xlu1 %v7460_v21  ;;  %v2259_v21 = vmax.f32 %v2227_v13, %v2243_v32  ;;  %v3370_v31 = vpop.trf.xlu0  ;;  %v2233_v32 = vadd.f32 %v7408_v38, %v7269_v2 }
 0x5d3   :  { %1704 = vmax.xlane.f32.xlu0 %v7470_v58  ;;  %v7506_v5 = vrot.slane %v3370_v31, %v6524_v14  ;;  %8631 = vst [vmem:[#allocation42_spill] sm:$0xff] %v7514_v3  ;;  %v8634_v31 = vld [vmem:[#allocation32_spill] sm:$0xff]  ;;  %v7526_v17 = vadd.f32 %v2252_v48, %v7378_v30  ;;  %v2255_v18 = vmax.f32 %v2223_v34, %v2239_v6 }
 0x5d4   :  { %v7509_v13 = vadd.f32 %v2259_v21, %v7336_v52  ;;  %v2263_v21 = vmax.f32 %v2231_v40, %v2247_v41  ;;  %v8636_v14 = vld [vmem:[#allocation52_spill] sm:$0xff] }
 0x5d5   :  { %v3455_v2 = vadd.f32 %v7506_v5, %v8634_v31  ;;  %8635 = vst [vmem:[#allocation32_spill] sm:$0xff] %v7526_v17  ;;  %v7538_v48 = vadd.f32 %v2255_v18, %v7398_v11 }
 0x5d6   :  { %2306 = vmax.xlane.f32.xlu1 %v7479_v22  ;;  %v2261_v22 = vmax.f32 %v2229_v25, %v2245_v47  ;;  %8630 = vst [vmem:[#allocation35_spill] sm:$0xff] %v7509_v13  ;;  %v2249_v47 = vmul.f32 0.2, %v2233_v32 }
 0x5d7   :  { %1708 = vmax.xlane.f32.xlu0 %v7487_v51  ;;  %v3471_v41 = vmul.f32 0.2, %v3455_v2 }
 0x5d8   :  { %v7521_v25 = vadd.f32 %v2261_v22, %v7348_v42  ;;  %v7533_v22 = vadd.f32 %v2263_v21, %v7370_v27  ;;  %v2265_v40 = vmax.f32 %v2233_v32, %v2249_v47 }
 0x5d9   :  { %v3487_v32 = vmax.f32 %v3455_v2, %v3471_v41 }
 0x5da   :  { %2312 = vmax.xlane.f32.xlu1 %v7494_v33  ;;  %v2224_v33 = vadd.f32 %v7408_v38, %v8632_v60  ;;  %8633 = vst [vmem:[#allocation48_spill] sm:$0xff] %v7521_v25  ;;  %v2226_v60 = vadd.f32 %v7408_v38, %v8636_v14  ;;  %8637 = vst [vmem:[#allocation52_spill] sm:$0xff] %v7533_v22  ;;  %v7545_v21 = vadd.f32 %v2265_v40, %v7390_v44 }
 0x5db   :  { %2916 = vmax.xlane.f32.xlu0 %v7499_v20  ;;  %v7557_v40 = vadd.f32 %v3487_v32, %v7285_v62 }
 0x5dc   :  { %v2240_v55 = vmul.f32 0.2, %v2224_v33  ;;  %v2242_v6 = vmul.f32 0.2, %v2226_v60 }
 0x5de   :  { %2316 = vmax.xlane.f32.xlu1 %v7509_v13  ;;  %v8638_v13 = vld [vmem:[#allocation38_spill] sm:$0xff]  ;;  %v2256_v34 = vmax.f32 %v2224_v33, %v2240_v55  ;;  %v2258_v33 = vmax.f32 %v2226_v60, %v2242_v6 }
 0x5df   :  { %2300 = vmax.xlane.f32.xlu0 %v7514_v3  ;;  %v3457_v31 = vadd.f32 %v7506_v5, %v8638_v13  ;;  %v8639_v3 = vld [vmem:[#allocation58_spill] sm:$0xff]  ;;  %8640 = vst [vmem:[#allocation38_spill] sm:$0xff] %v7545_v21 }
 0x5e0   :  { %v2228_v14 = vadd.f32 %v7408_v38, %v8639_v3  ;;  %v7550_v18 = vadd.f32 %v2256_v34, %v7320_v37  ;;  %8643 = vst [vmem:[#allocation58_spill] sm:$0xff] %v7557_v40  ;;  %v7562_v34 = vadd.f32 %v2258_v33, %v7432_v54 }
 0x5e1   :  { %v3473_v47 = vmul.f32 0.2, %v3457_v31 }
 0x5e2   :  { %2320 = vmax.xlane.f32.xlu1 %v7521_v25  ;;  %v8641_v25 = vld [vmem:[#allocation37_spill] sm:$0xff]  ;;  %v2244_v55 = vmul.f32 0.2, %v2228_v14 }
 0x5e3   :  { %2302 = vmax.xlane.f32.xlu0 %v7526_v17  ;;  %v2839_v13 = vadd.f32 %v7331_v28, %v8641_v25  ;;  %v8642_v17 = vld [vmem:[#allocation62_spill] sm:$0xff]  ;;  %v3489_v2 = vmax.f32 %v3457_v31, %v3473_v47  ;;  %v8646_v47 = vld [vmem:[#allocation43_spill] sm:$0xff] }
 0x5e4   :  { %v2230_v3 = vadd.f32 %v7408_v38, %v8642_v17  ;;  %v2260_v60 = vmax.f32 %v2228_v14, %v2244_v55  ;;  %v2232_v17 = vadd.f32 %v7408_v38, %v7240_v43 }
 0x5e5   :  { %v2855_v41 = vmul.f32 0.2, %v2839_v13  ;;  %v7569_v62 = vadd.f32 %v3489_v2, %v7296_v56 }
 0x5e6   :  { %2324 = vmax.xlane.f32.xlu1 %v7533_v22  ;;  %v8644_v22 = vld [vmem:[#allocation41_spill] sm:$0xff]  ;;  %v2246_v6 = vmul.f32 0.2, %v2230_v3  ;;  %v7574_v33 = vadd.f32 %v2260_v60, %v7448_v46  ;;  %v2248_v55 = vmul.f32 0.2, %v2232_v17 }
 0x5e7   :  { %2308 = vmax.xlane.f32.xlu0 %v7538_v48  ;;  %v2841_v25 = vadd.f32 %v7331_v28, %v8644_v22  ;;  %8645 = vst [vmem:[#allocation37_spill] sm:$0xff] %v7569_v62  ;;  %v2871_v31 = vmax.f32 %v2839_v13, %v2855_v41  ;;  %v3459_v22 = vadd.f32 %v7506_v5, %v8646_v47  ;;  %v8649_v41 = vld [vmem:[#allocation47_spill] sm:$0xff] }
 0x5e8   :  { %v2262_v14 = vmax.f32 %v2230_v3, %v2246_v6  ;;  %v3461_v47 = vadd.f32 %v7506_v5, %v8649_v41  ;;  %v2264_v3 = vmax.f32 %v2232_v17, %v2248_v55 }
 0x5e9   :  { %v2857_v32 = vmul.f32 0.2, %v2841_v25  ;;  %v7581_v38 = vadd.f32 %v2871_v31, %v7296_v56  ;;  %v3475_v2 = vmul.f32 0.2, %v3459_v22 }
 0x5ea   :  { %2328 = vmax.xlane.f32.xlu1 %v7545_v21  ;;  %v8647_v21 = vld [vmem:[#allocation31_spill] sm:$0xff]  ;;  %v7586_v60 = vadd.f32 %v2262_v14, %v7465_v45  ;;  %v3477_v31 = vmul.f32 0.2, %v3461_v47  ;;  %v7598_v14 = vadd.f32 %v2264_v3, %v7484_v57 }
 0x5eb   :  { %2310 = vmax.xlane.f32.xlu0 %v7550_v18  ;;  %v3454_v43 = vadd.f32 %v7506_v5, %v8647_v21  ;;  %8648 = vst [vmem:[#allocation62_spill] sm:$0xff] %v7581_v38  ;;  %v2873_v13 = vmax.f32 %v2841_v25, %v2857_v32  ;;  %v3491_v25 = vmax.f32 %v3459_v22, %v3475_v2  ;;  %v8653_v32 = vld [vmem:[#allocation46_spill] sm:$0xff] }
 0x5ec   :  { %8650 = vst [vmem:[#allocation41_spill] sm:$0xff] %v7586_v60  ;;  %v2843_v41 = vadd.f32 %v7331_v28, %v8653_v32  ;;  %v3493_v22 = vmax.f32 %v3461_v47, %v3477_v31  ;;  %v8658_v31 = vld [vmem:[#allocation54_spill] sm:$0xff] }
 0x5ed   :  { %v3470_v6 = vmul.f32 0.2, %v3454_v43  ;;  %v7593_v56 = vadd.f32 %v2873_v13, %v7398_v11  ;;  %v7605_v13 = vadd.f32 %v3491_v25, %v7398_v11 }
 0x5ee   :  { %3536 = vmax.xlane.f32.xlu1 %v7557_v40  ;;  %v8651_v40 = vld [vmem:[#allocation36_spill] sm:$0xff]  ;;  %v2859_v2 = vmul.f32 0.2, %v2843_v41  ;;  %v7617_v11 = vadd.f32 %v3493_v22, %v7416_v15 }
 0x5ef   :  { %2314 = vmax.xlane.f32.xlu0 %v7562_v34  ;;  %v3456_v21 = vadd.f32 %v7506_v5, %v8651_v40  ;;  %8652 = vst [vmem:[#allocation43_spill] sm:$0xff] %v7593_v56  ;;  %v3486_v17 = vmax.f32 %v3454_v43, %v3470_v6  ;;  %8655 = vst [vmem:[#allocation31_spill] sm:$0xff] %v7605_v13 }
 0x5f0   :  { %v2875_v47 = vmax.f32 %v2843_v41, %v2859_v2 }
 0x5f1   :  { %v3472_v55 = vmul.f32 0.2, %v3456_v21  ;;  %v7610_v3 = vadd.f32 %v3486_v17, %v7356_v4 }
 0x5f2   :  { %3540 = vmax.xlane.f32.xlu1 %v7569_v62  ;;  %v8654_v62 = vld [vmem:[#allocation34_spill] sm:$0xff]  ;;  %v7629_v22 = vadd.f32 %v2875_v47, %v7416_v15 }
 0x5f3   :  { %2318 = vmax.xlane.f32.xlu0 %v7574_v33  ;;  %v2838_v40 = vadd.f32 %v7331_v28, %v8654_v62  ;;  %v3488_v43 = vmax.f32 %v3456_v21, %v3472_v55  ;;  %v8659_v55 = vld [vmem:[#allocation40_spill] sm:$0xff] }
 0x5f4   :  { %8660 = vst [vmem:[#allocation47_spill] sm:$0xff] %v7629_v22 }
 0x5f5   :  { %v2854_v6 = vmul.f32 0.2, %v2838_v40  ;;  %v7622_v4 = vadd.f32 %v3488_v43, %v7378_v30 }
 0x5f6   :  { %2922 = vmax.xlane.f32.xlu1 %v7581_v38  ;;  %v8656_v38 = vld [vmem:[#allocation50_spill] sm:$0xff] }
 0x5f7   :  { %2322 = vmax.xlane.f32.xlu0 %v7586_v60  ;;  %v2845_v32 = vadd.f32 %v7331_v28, %v8656_v38  ;;  %v8657_v60 = vld [vmem:[#allocation39_spill] sm:$0xff]  ;;  %v3463_v38 = vadd.f32 %v7506_v5, %v8658_v31  ;;  %v2870_v21 = vmax.f32 %v2838_v40, %v2854_v6 }
 0x5f8   :  { %v2840_v62 = vadd.f32 %v7331_v28, %v8657_v60  ;;  %v3458_v60 = vadd.f32 %v7506_v5, %v8659_v55 }
 0x5f9   :  { %v2861_v25 = vmul.f32 0.2, %v2845_v32  ;;  %v3479_v2 = vmul.f32 0.2, %v3463_v38  ;;  %v7634_v43 = vadd.f32 %v2870_v21, %v7378_v30 }
 0x5fa   :  { %2926 = vmax.xlane.f32.xlu1 %v7593_v56  ;;  %v2856_v17 = vmul.f32 0.2, %v2840_v62  ;;  %v3474_v6 = vmul.f32 0.2, %v3458_v60  ;;  %v8662_v56 = vld [vmem:[#allocation45_spill] sm:$0xff] }
 0x5fb   :  { %2326 = vmax.xlane.f32.xlu0 %v7598_v14  ;;  %v2877_v41 = vmax.f32 %v2845_v32, %v2861_v25  ;;  %v3460_v55 = vadd.f32 %v7506_v5, %v8662_v56  ;;  %v3495_v32 = vmax.f32 %v3463_v38, %v3479_v2  ;;  %v8663_v25 = vld [vmem:[#allocation53_spill] sm:$0xff] }
 0x5fc   :  { %v2872_v40 = vmax.f32 %v2840_v62, %v2856_v17  ;;  %v3490_v62 = vmax.f32 %v3458_v60, %v3474_v6  ;;  %v8664_v17 = vld [vmem:[#allocation44_spill] sm:$0xff] }
 0x5fd   :  { %v7641_v15 = vadd.f32 %v2877_v41, %v7336_v52  ;;  %v3476_v21 = vmul.f32 0.2, %v3460_v55  ;;  %v2842_v56 = vadd.f32 %v7331_v28, %v8664_v17  ;;  %v7653_v41 = vadd.f32 %v3495_v32, %v7336_v52 }
 0x5fe   :  { %3544 = vmax.xlane.f32.xlu1 %v7605_v13  ;;  %v8661_v13 = vld [vmem:[#allocation56_spill] sm:$0xff]  ;;  %v7646_v30 = vadd.f32 %v2872_v40, %v7307_v59  ;;  %v7658_v40 = vadd.f32 %v3490_v62, %v7307_v59  ;;  %v8666_v62 = vld [vmem:[#allocation49_spill] sm:$0xff] }
 0x5ff   :  { %3534 = vmax.xlane.f32.xlu0 %v7610_v3  ;;  %v3465_v31 = vadd.f32 %v7506_v5, %v8661_v13  ;;  %v2847_v13 = vadd.f32 %v7331_v28, %v8663_v25  ;;  %v2849_v25 = vadd.f32 %v7331_v28, %v7231_v53  ;;  %v3492_v60 = vmax.f32 %v3460_v55, %v3476_v21 }
 0x600   :  { %v2858_v6 = vmul.f32 0.2, %v2842_v56  ;;  %v3467_v53 = vadd.f32 %v7506_v5, %v7233_v39  ;;  %v3469_v39 = vadd.f32 %v7506_v5, %v7271_v19  ;;  %v2851_v19 = vadd.f32 %v7331_v28, %v7264_v9 }
 0x601   :  { %v3481_v47 = vmul.f32 0.2, %v3465_v31  ;;  %v2863_v2 = vmul.f32 0.2, %v2847_v13  ;;  %v2865_v32 = vmul.f32 0.2, %v2849_v25  ;;  %v7670_v59 = vadd.f32 %v3492_v60, %v7320_v37 }
 0x602   :  { %3548 = vmax.xlane.f32.xlu1 %v7617_v11  ;;  %v2874_v55 = vmax.f32 %v2842_v56, %v2858_v6  ;;  %v8668_v6 = vld [vmem:[#allocation60_spill] sm:$0xff] }
 0x603   :  { %3538 = vmax.xlane.f32.xlu0 %v7622_v4  ;;  %v3497_v38 = vmax.f32 %v3465_v31, %v3481_v47  ;;  %v2879_v31 = vmax.f32 %v2847_v13, %v2863_v2  ;;  %v2881_v13 = vmax.f32 %v2849_v25, %v2865_v32 }
 0x604   :  { %v7682_v2 = vadd.f32 %v2874_v55, %v7320_v37  ;;  %v8669_v55 = vld [vmem:[#allocation57_spill] sm:$0xff] }
 0x605   :  { %v7665_v52 = vadd.f32 %v3497_v38, %v7348_v42  ;;  %v7677_v21 = vadd.f32 %v2879_v31, %v7348_v42  ;;  %v3483_v38 = vmul.f32 0.2, %v3467_v53  ;;  %v7689_v42 = vadd.f32 %v2881_v13, %v7370_v27 }
 0x606   :  { %2930 = vmax.xlane.f32.xlu1 %v7629_v22  ;;  %v8665_v22 = vld [vmem:[#allocation51_spill] sm:$0xff]  ;;  %v3485_v31 = vmul.f32 0.2, %v3469_v39 }
 0x607   :  { %2920 = vmax.xlane.f32.xlu0 %v7634_v43  ;;  %v2844_v17 = vadd.f32 %v7331_v28, %v8665_v22  ;;  %v3462_v22 = vadd.f32 %v7506_v5, %v8666_v62  ;;  %8667 = vst [vmem:[#allocation36_spill] sm:$0xff] %v7677_v21  ;;  %v3464_v62 = vadd.f32 %v7506_v5, %v8668_v6 }
 0x608   :  { %v3499_v25 = vmax.f32 %v3467_v53, %v3483_v38  ;;  %v3501_v53 = vmax.f32 %v3469_v39, %v3485_v31  ;;  %v2867_v38 = vmul.f32 0.2, %v2851_v19 }
 0x609   :  { %v2860_v47 = vmul.f32 0.2, %v2844_v17  ;;  %v3478_v60 = vmul.f32 0.2, %v3462_v22  ;;  %v3480_v32 = vmul.f32 0.2, %v3464_v62 }
 0x60a   :  { %2934 = vmax.xlane.f32.xlu1 %v7641_v15  ;;  %v7701_v13 = vadd.f32 %v3499_v25, %v7370_v27 }
 0x60b   :  { %2924 = vmax.xlane.f32.xlu0 %v7646_v30  ;;  %v2876_v56 = vmax.f32 %v2844_v17, %v2860_v47  ;;  %v3494_v17 = vmax.f32 %v3462_v22, %v3478_v60  ;;  %v2846_v47 = vadd.f32 %v7331_v28, %v8669_v55  ;;  %v3496_v9 = vmax.f32 %v3464_v62, %v3480_v32 }
 0x60c   :  { %v7711_v60 = vadd.f32 %v3501_v53, %v7390_v44  ;;  %v2883_v55 = vmax.f32 %v2851_v19, %v2867_v38  ;;  %v3468_v32 = vadd.f32 %v7506_v5, %v7243_v36 }
 0x60d   :  { %v7694_v37 = vadd.f32 %v2876_v56, %v7432_v54  ;;  %v7704_v6 = vadd.f32 %v3494_v17, %v7432_v54  ;;  %v2862_v56 = vmul.f32 0.2, %v2846_v47  ;;  %v7714_v27 = vadd.f32 %v3496_v9, %v7448_v46  ;;  %v8671_v54 = vld [vmem:[#allocation61_spill] sm:$0xff] }
 0x60e   :  { %3552 = vmax.xlane.f32.xlu1 %v7653_v41  ;;  %v3466_v62 = vadd.f32 %v7506_v5, %v8671_v54  ;;  %v3484_v38 = vmul.f32 0.2, %v3468_v32 }
 0x60f   :  { %3542 = vmax.xlane.f32.xlu0 %v7658_v40  ;;  %v2878_v39 = vmax.f32 %v2846_v47, %v2862_v56 }
 0x610   :  { %v3482_v19 = vmul.f32 0.2, %v3466_v62  ;;  %v3500_v9 = vmax.f32 %v3468_v32, %v3484_v38 }
 0x611   :  { %v7724_v31 = vadd.f32 %v2878_v39, %v7448_v46 }
 0x612   :  { %3556 = vmax.xlane.f32.xlu1 %v7665_v52  ;;  %v3498_v53 = vmax.f32 %v3466_v62, %v3482_v19  ;;  %v7741_v36 = vadd.f32 %v3500_v9, %v7484_v57 }
 0x613   :  { %3546 = vmax.xlane.f32.xlu0 %v7670_v59 }
 0x614   :  { %v7737_v46 = vadd.f32 %v3498_v53, %v7465_v45 }
 0x616   :  { %2938 = vmax.xlane.f32.xlu1 %v7677_v21  ;;  %v8670_v21 = vld [vmem:[#allocation59_spill] sm:$0xff] }
 0x617   :  { %2928 = vmax.xlane.f32.xlu0 %v7682_v2  ;;  %v2848_v22 = vadd.f32 %v7331_v28, %v8670_v21  ;;  %v7721_v21 = vadd.f32 %v2883_v55, %v7390_v44  ;;  %v2850_v44 = vadd.f32 %v7331_v28, %v7235_v26 }
 0x619   :  { %v2864_v25 = vmul.f32 0.2, %v2848_v22  ;;  %v2866_v56 = vmul.f32 0.2, %v2850_v44 }
 0x61a   :  { %2942 = vmax.xlane.f32.xlu1 %v7689_v42 }
 0x61b   :  { %2932 = vmax.xlane.f32.xlu0 %v7694_v37  ;;  %v2880_v17 = vmax.f32 %v2848_v22, %v2864_v25  ;;  %v2882_v5 = vmax.f32 %v2850_v44, %v2866_v56 }
 0x61d   :  { %v7731_v47 = vadd.f32 %v2880_v17, %v7465_v45  ;;  %v7745_v55 = vadd.f32 %v2882_v5, %v7484_v57 }
 0x61e   :  { %3560 = vmax.xlane.f32.xlu1 %v7701_v13 }
 0x61f   :  { %3550 = vmax.xlane.f32.xlu0 %v7704_v6 }
 0x622   :  { %3564 = vmax.xlane.f32.xlu1 %v7711_v60 }
 0x623   :  { %3554 = vmax.xlane.f32.xlu0 %v7714_v27 }
 0x626   :  { %2946 = vmax.xlane.f32.xlu1 %v7721_v21 }
 0x627   :  { %2936 = vmax.xlane.f32.xlu0 %v7724_v31 }
 0x62b   :  { %2940 = vmax.xlane.f32.xlu0 %v7731_v47 }
 0x62f   :  { %3558 = vmax.xlane.f32.xlu0 %v7737_v46 }
 0x633   :  { %3562 = vmax.xlane.f32.xlu0 %v7741_v36  ;;  %v1683_v22 = vpop.xlane.xlu1 %1682 }
 0x634   :  { %v1713_v25 = vsub.f32 %v7288_v8, %v1683_v22 }
 0x636   :  { %v1730_v62 = vmul.f32 1.442695, %v1713_v25 }
 0x637   :  { %2944 = vmax.xlane.f32.xlu0 %v7745_v55  ;;  %v1687_v26 = vpop.xlane.xlu1 %1686 }
 0x638   :  { %v1715_v17 = vsub.f32 %v7299_v49, %v1687_v26  ;;  %5841 = vpow2.f32 %v1730_v62 }
 0x63a   :  { %v1734_v57 = vmul.f32 1.442695, %v1715_v17 }
 0x63b   :  { %v1689_v28 = vpop.xlane.xlu1 %1688 }
 0x63c   :  { %v1716_v44 = vsub.f32 %v7310_v23, %v1689_v28 }
 0x63e   :  { %v1736_v8 = vmul.f32 1.442695, %v1716_v44 }
 0x63f   :  { %v1693_v45 = vpop.xlane.xlu1 %1692 }
 0x640   :  { %v1718_v22 = vsub.f32 %v7323_v0, %v1693_v45 }
 0x642   :  { %v1740_v62 = vmul.f32 1.442695, %v1718_v22 }
 0x643   :  { %v1699_v39 = vpop.xlane.xlu1 %1698 }
 0x644   :  { %v1721_v17 = vsub.f32 %v7339_v35, %v1699_v39 }
 0x646   :  { %v1746_v0 = vmul.f32 1.442695, %v1721_v17 }
 0x647   :  { %v1703_v54 = vpop.xlane.xlu1 %1702 }
 0x648   :  { %v1681_v19 = vpop.xlane.xlu0 %1680  ;;  %v1723_v45 = vsub.f32 %v7351_v16, %v1703_v54 }
 0x649   :  { %v1712_v32 = vsub.f32 %v7361_v50, %v1681_v19 }
 0x64b   :  { %v1728_v53 = vmul.f32 1.442695, %v1712_v32  ;;  %v1707_v38 = vpop.xlane.xlu1 %1706 }
 0x64c   :  { %v1685_v9 = vpop.xlane.xlu0 %1684 }
 0x64d   :  { %5843 = vpow2.f32 %v1728_v53  ;;  %v1714_v56 = vsub.f32 %v7381_v61, %v1685_v9  ;;  %v5842_v61 = vpop.eup %5841 }
 0x64e   :  { %5845 = vpow2.f32 %v1734_v57 }
 0x64f   :  { %v1732_v5 = vmul.f32 1.442695, %v1714_v56  ;;  %v1711_v49 = vpop.xlane.xlu1 %1710 }
 0x650   :  { %v1691_v25 = vpop.xlane.xlu0 %1690  ;;  %v1727_v17 = vsub.f32 %v7393_v10, %v1711_v49 }
 0x651   :  { %5847 = vpow2.f32 %v1732_v5  ;;  %v1717_v50 = vsub.f32 %v7401_v63, %v1691_v25  ;;  %v1725_v5 = vsub.f32 %v7373_v1, %v1707_v38 }
 0x652   :  { %5849 = vpow2.f32 %v1736_v8 }
 0x653   :  { %v1738_v26 = vmul.f32 1.442695, %v1717_v50  ;;  %v2919_v32 = vpop.xlane.xlu1 %2918 }
 0x654   :  { %v1695_v23 = vpop.xlane.xlu0 %1694 }
 0x655   :  { %5851 = vpow2.f32 %v1738_v26  ;;  %v1719_v28 = vsub.f32 %v7419_v29, %v1695_v23  ;;  %v1750_v29 = vmul.f32 1.442695, %v1723_v45  ;;  %v8672_v26 = vld [vmem:[#allocation15_spill] sm:$0xff]  ;;  %v8673_v23 = vld [vmem:[#allocation17_spill] sm:$0xff]  ;;  %v2949_v45 = vsub.f32 %v7411_v24, %v2919_v32 }
 0x656   :  { %5853 = vpow2.f32 %v1740_v62  ;;  %v1754_v62 = vmul.f32 1.442695, %v1725_v5 }
 0x657   :  { %v5844_v19 = vpop.eup %5843  ;;  %v1742_v53 = vmul.f32 1.442695, %v1719_v28 }
 0x658   :  { %v1697_v57 = vpop.xlane.xlu0 %1696  ;;  %v1760_v44 = vpack.c.bf16 %v5842_v61, %v5844_v19  ;;  %v5846_v9 = vpop.eup %5845 }
 0x659   :  { %5855 = vpow2.f32 %v1742_v53  ;;  %v1720_v63 = vsub.f32 %v7437_v12, %v1697_v57  ;;  %v8674_v57 = vld [vmem:[#allocation19_spill] sm:$0xff] }
 0x65a   :  { %5513 = vmatprep.mubr.bf16.mxu1 %v1760_v44  ;;  %5857 = vpow2.f32 %v1746_v0  ;;  %v1758_v0 = vmul.f32 1.442695, %v1727_v17  ;;  %v8678_v17 = vld [vmem:[#allocation23_spill] sm:$0xff] }
 0x65b   :  { %v5848_v35 = vpop.eup %5847  ;;  %v1744_v39 = vmul.f32 1.442695, %v1720_v63  ;;  %v2299_v56 = vpop.xlane.xlu1 %2298 }
 0x65c   :  { %v1701_v8 = vpop.xlane.xlu0 %1700  ;;  %v1761_v22 = vpack.c.bf16 %v5846_v9, %v5848_v35  ;;  %v5850_v16 = vpop.eup %5849 }
 0x65d   :  { %5859 = vpow2.f32 %v1744_v39  ;;  %v1722_v25 = vsub.f32 %v7453_v7, %v1701_v8  ;;  %v2966_v39 = vmul.f32 1.442695, %v2949_v45  ;;  %v8676_v8 = vld [vmem:[#allocation21_spill] sm:$0xff] }
 0x65e   :  { %5514 = vmatmul.mubr.bf16.vlgmr.msra.gmra.mrb[64].mxu1 %v1761_v22  ;;  %5861 = vpow2.f32 %v1750_v29  ;;  %v8675_v29 = vld [vmem:[#allocation63_spill] sm:$0xff] }
 0x65f   :  { %v5852_v54 = vpop.eup %5851  ;;  %v1748_v50 = vmul.f32 1.442695, %v1722_v25  ;;  %5562 = vmatpush3.bf16.msra.mxu1 %v8672_v26  ;;  %v2305_v12 = vpop.xlane.xlu1 %2304  ;;  %v2330_v5 = vsub.f32 %v8675_v29, %v2299_v56  ;;  %v8677_v26 = vld [vmem:[#allocation64_spill] sm:$0xff] }
 0x660   :  { %5563 = vmatprep.subr.bf16.mxu1 %v8673_v23  ;;  %v1705_v28 = vpop.xlane.xlu0 %1704  ;;  %v1762_v1 = vpack.c.bf16 %v5852_v54, %v5850_v16  ;;  %v5854_v61 = vpop.eup %5853 }
 0x661   :  { %5863 = vpow2.f32 %v1748_v50  ;;  %v1724_v38 = vsub.f32 %v7470_v58, %v1705_v28  ;;  %v2346_v50 = vmul.f32 1.442695, %v2330_v5  ;;  %v8679_v28 = vld [vmem:[#allocation42_spill] sm:$0xff]  ;;  %v8683_v5 = vld [vmem:[#allocation55_spill] sm:$0xff] }
 0x662   :  { %5517 = vmatprep.mubr.bf16.mxu1 %v1762_v1  ;;  %5865 = vpow2.f32 %v1754_v62  ;;  %v2333_v62 = vsub.f32 %v8677_v26, %v2305_v12 }
 0x663   :  { %v5856_v7 = vpop.eup %5855  ;;  %v1752_v19 = vmul.f32 1.442695, %v1724_v38  ;;  %5564 = vmatpush3.bf16.msra.mxu1 %v8673_v23  ;;  %v2307_v53 = vpop.xlane.xlu1 %2306 }
 0x664   :  { %5565 = vmatprep.subr.bf16.mxu1 %v8674_v57  ;;  %v1709_v10 = vpop.xlane.xlu0 %1708  ;;  %v1763_v49 = vpack.c.bf16 %v5856_v7, %v5854_v61  ;;  %v5858_v63 = vpop.eup %5857 }
 0x665   :  { %5867 = vpow2.f32 %v1752_v19  ;;  %v1726_v44 = vsub.f32 %v7487_v51, %v1709_v10  ;;  %v2352_v19 = vmul.f32 1.442695, %v2333_v62  ;;  %v8685_v62 = vld [vmem:[#allocation35_spill] sm:$0xff] }
 0x666   :  { %5518 = vmatmul.mubr.bf16.gmra.mrb[68].mxu1 %v1763_v49  ;;  %5869 = vpow2.f32 %v1758_v0  ;;  %v8680_v0 = vld [vmem:[#allocation33_spill] sm:$0xff]  ;;  %v8682_v49 = vld [vmem:[#allocation32_spill] sm:$0xff] }
 0x667   :  { %v5860_v58 = vpop.eup %5859  ;;  %v1756_v9 = vmul.f32 1.442695, %v1726_v44  ;;  %5566 = vmatpush3.bf16.msra.mxu1 %v8674_v57  ;;  %v2313_v35 = vpop.xlane.xlu1 %2312  ;;  %v2334_v45 = vsub.f32 %v8680_v0, %v2307_v53  ;;  %v8681_v57 = vld [vmem:[#allocation25_spill] sm:$0xff] }
 0x668   :  { %5567 = vmatprep.subr.bf16.mxu1 %v8676_v8  ;;  %v2917_v24 = vpop.xlane.xlu0 %2916  ;;  %v1764_v32 = vpack.c.bf16 %v5858_v63, %v5860_v58  ;;  %v5862_v25 = vpop.eup %5861 }
 0x669   :  { %5871 = vpow2.f32 %v1756_v9  ;;  %v2948_v22 = vsub.f32 %v7499_v20, %v2917_v24  ;;  %v2354_v29 = vmul.f32 1.442695, %v2334_v45  ;;  %v8684_v24 = vld [vmem:[#allocation27_spill] sm:$0xff] }
 0x66a   :  { %5521 = vmatprep.mubr.bf16.mxu1 %v1764_v32  ;;  %5873 = vpow2.f32 %v2966_v39 }
 0x66b   :  { %v5864_v51 = vpop.eup %5863  ;;  %v2964_v16 = vmul.f32 1.442695, %v2948_v22  ;;  %5568 = vmatpush3.bf16.msra.mxu1 %v8676_v8  ;;  %v2317_v54 = vpop.xlane.xlu1 %2316  ;;  %v2337_v8 = vsub.f32 %v8683_v5, %v2313_v35 }
 0x66c   :  { %5569 = vmatprep.subr.bf16.mxu1 %v8678_v17  ;;  %v2301_v56 = vpop.xlane.xlu0 %2300  ;;  %v1765_v23 = vpack.c.bf16 %v5862_v25, %v5864_v51  ;;  %v5866_v38 = vpop.eup %5865 }
 0x66d   :  { %5875 = vpow2.f32 %v2964_v16  ;;  %v2331_v1 = vsub.f32 %v8679_v28, %v2301_v56  ;;  %v2360_v26 = vmul.f32 1.442695, %v2337_v8  ;;  %v8686_v56 = vld [vmem:[#allocation29_spill] sm:$0xff] }
 0x66e   :  { %5522 = vmatmul.mubr.bf16.gmra.mrb[72].mxu1 %v1765_v23  ;;  %5877 = vpow2.f32 %v2346_v50 }
 0x66f   :  { %v5868_v20 = vpop.eup %5867  ;;  %v2348_v61 = vmul.f32 1.442695, %v2331_v1  ;;  %5570 = vmatpush3.bf16.msra.mxu1 %v8678_v17  ;;  %v2321_v7 = vpop.xlane.xlu1 %2320  ;;  %v2339_v17 = vsub.f32 %v8685_v62, %v2317_v54 }
 0x670   :  { %5571 = vmatprep.subr.bf16.mxu1 %v8681_v57  ;;  %v2303_v12 = vpop.xlane.xlu0 %2302  ;;  %v1766_v10 = vpack.c.bf16 %v5866_v38, %v5868_v20  ;;  %v5870_v63 = vpop.eup %5869 }
 0x671   :  { %5879 = vpow2.f32 %v2348_v61  ;;  %v2332_v44 = vsub.f32 %v8682_v49, %v2303_v12  ;;  %v2364_v61 = vmul.f32 1.442695, %v2339_v17 }
 0x672   :  { %5525 = vmatprep.mubr.bf16.mxu1 %v1766_v10  ;;  %5881 = vpow2.f32 %v2352_v19  ;;  %v8687_v19 = vld [vmem:[#allocation48_spill] sm:$0xff] }
 0x673   :  { %v5872_v58 = vpop.eup %5871  ;;  %v2350_v9 = vmul.f32 1.442695, %v2332_v44  ;;  %5572 = vmatpush3.bf16.msra.mxu1 %v8681_v57  ;;  %v2325_v39 = vpop.xlane.xlu1 %2324  ;;  %v2341_v0 = vsub.f32 %v8687_v19, %v2321_v7 }
 0x674   :  { %5573 = vmatprep.subr.bf16.mxu1 %v8684_v24  ;;  %v2309_v53 = vpop.xlane.xlu0 %2308  ;;  %v1767_v32 = vpack.c.bf16 %v5870_v63, %v5872_v58  ;;  %v5874_v25 = vpop.eup %5873  ;;  %v8688_v63 = vld [vmem:[#allocation52_spill] sm:$0xff] }
 0x675   :  { %5883 = vpow2.f32 %v2350_v9  ;;  %v2335_v22 = vsub.f32 %v7538_v48, %v2309_v53  ;;  %v2368_v44 = vmul.f32 1.442695, %v2341_v0  ;;  %v2343_v58 = vsub.f32 %v8688_v63, %v2325_v39  ;;  %v8689_v53 = vld [vmem:[#allocation16_spill] sm:$0xff] }
 0x676   :  { %5526 = vmatmul.mubr.bf16.gmra.mrb[76].mxu1 %v1767_v32  ;;  %5885 = vpow2.f32 %v2354_v29 }
 0x677   :  { %v5876_v51 = vpop.eup %5875  ;;  %v2356_v16 = vmul.f32 1.442695, %v2335_v22  ;;  %5574 = vmatpush3.bf16.msra.mxu1 %v8684_v24  ;;  %v2329_v50 = vpop.xlane.xlu1 %2328  ;;  %v2372_v32 = vmul.f32 1.442695, %v2343_v58  ;;  %v8690_v22 = vld [vmem:[#allocation38_spill] sm:$0xff] }
 0x678   :  { %5575 = vmatprep.subr.bf16.mxu1 %v8686_v56  ;;  %v2311_v35 = vpop.xlane.xlu0 %2310  ;;  %v2996_v23 = vpack.c.bf16 %v5874_v25, %v5876_v51  ;;  %v5878_v1 = vpop.eup %5877  ;;  %v2345_v25 = vsub.f32 %v8690_v22, %v2329_v50  ;;  %v8691_v51 = vld [vmem:[#allocation18_spill] sm:$0xff] }
 0x679   :  { %5887 = vpow2.f32 %v2356_v16  ;;  %v2336_v28 = vsub.f32 %v7550_v18, %v2311_v35 }
 0x67a   :  { %5577 = vmatprep.mubr.bf16.mxu1 %v2996_v23  ;;  %5889 = vpow2.f32 %v2360_v26  ;;  %v8692_v26 = vld [vmem:[#allocation41_spill] sm:$0xff]  ;;  %v2376_v23 = vmul.f32 1.442695, %v2345_v25 }
 0x67b   :  { %v5880_v48 = vpop.eup %5879  ;;  %v2358_v38 = vmul.f32 1.442695, %v2336_v28  ;;  %5576 = vmatpush3.bf16.msra.mxu1 %v8686_v56  ;;  %v3537_v20 = vpop.xlane.xlu1 %3536  ;;  %v8693_v28 = vld [vmem:[#allocation58_spill] sm:$0xff] }
 0x67c   :  { %v2315_v45 = vpop.xlane.xlu0 %2314  ;;  %v2378_v54 = vpack.c.bf16 %v5880_v48, %v5878_v1  ;;  %v5882_v12 = vpop.eup %5881  ;;  %v3567_v1 = vsub.f32 %v8693_v28, %v3537_v20  ;;  %v8694_v48 = vld [vmem:[#allocation20_spill] sm:$0xff] }
 0x67d   :  { %5891 = vpow2.f32 %v2358_v38  ;;  %v2338_v57 = vsub.f32 %v7562_v34, %v2315_v45 }
 0x67e   :  { %5545 = vmatprep.mubr.bf16.mxu0 %v2378_v54  ;;  %5893 = vpow2.f32 %v2364_v61 }
 0x67f   :  { %v5884_v10 = vpop.eup %5883  ;;  %v2362_v18 = vmul.f32 1.442695, %v2338_v57  ;;  %v3541_v49 = vpop.xlane.xlu1 %3540  ;;  %v3584_v57 = vmul.f32 1.442695, %v3567_v1 }
 0x680   :  { %v2319_v9 = vpop.xlane.xlu0 %2318  ;;  %v2379_v29 = vpack.c.bf16 %v5882_v12, %v5884_v10  ;;  %v5886_v7 = vpop.eup %5885  ;;  %v8695_v12 = vld [vmem:[#allocation37_spill] sm:$0xff] }
 0x681   :  { %5895 = vpow2.f32 %v2362_v18  ;;  %v2340_v5 = vsub.f32 %v7574_v33, %v2319_v9  ;;  %v3569_v10 = vsub.f32 %v8695_v12, %v3541_v49  ;;  %v8696_v18 = vld [vmem:[#allocation22_spill] sm:$0xff] }
 0x682   :  { %5546 = vmatmul.mubr.bf16.vlgmr.msra.gmra.mrb[96].mxu0 %v2379_v29  ;;  %5897 = vpow2.f32 %v2368_v44 }
 0x683   :  { %v5888_v8 = vpop.eup %5887  ;;  %v2366_v24 = vmul.f32 1.442695, %v2340_v5  ;;  %5594 = vmatpush3.bf16.msra.mxu0 %v8689_v53  ;;  %v2923_v34 = vpop.xlane.xlu1 %2922  ;;  %v3588_v5 = vmul.f32 1.442695, %v3569_v10 }
 0x684   :  { %5595 = vmatprep.subr.bf16.mxu0 %v8691_v51  ;;  %v2323_v16 = vpop.xlane.xlu0 %2322  ;;  %v2380_v39 = vpack.c.bf16 %v5888_v8, %v5886_v7  ;;  %v5890_v17 = vpop.eup %5889  ;;  %v8697_v7 = vld [vmem:[#allocation62_spill] sm:$0xff] }
 0x685   :  { %5899 = vpow2.f32 %v2366_v24  ;;  %v2342_v62 = vsub.f32 %v8692_v26, %v2323_v16  ;;  %v2951_v8 = vsub.f32 %v8697_v7, %v2923_v34  ;;  %v8698_v24 = vld [vmem:[#allocation24_spill] sm:$0xff] }
 0x686   :  { %5549 = vmatprep.mubr.bf16.mxu0 %v2380_v39  ;;  %5901 = vpow2.f32 %v2372_v32  ;;  %v8699_v39 = vld [vmem:[#allocation43_spill] sm:$0xff] }
 0x687   :  { %v5892_v33 = vpop.eup %5891  ;;  %v2370_v56 = vmul.f32 1.442695, %v2342_v62  ;;  %5596 = vmatpush3.bf16.msra.mxu0 %v8691_v51  ;;  %v2927_v35 = vpop.xlane.xlu1 %2926  ;;  %v2970_v16 = vmul.f32 1.442695, %v2951_v8  ;;  %v8700_v62 = vld [vmem:[#allocation26_spill] sm:$0xff] }
 0x688   :  { %5597 = vmatprep.subr.bf16.mxu0 %v8694_v48  ;;  %v2327_v50 = vpop.xlane.xlu0 %2326  ;;  %v2381_v38 = vpack.c.bf16 %v5890_v17, %v5892_v33  ;;  %v5894_v19 = vpop.eup %5893  ;;  %v2953_v26 = vsub.f32 %v8699_v39, %v2927_v35 }
 0x689   :  { %5903 = vpow2.f32 %v2370_v56  ;;  %v2344_v61 = vsub.f32 %v7598_v14, %v2327_v50 }
 0x68a   :  { %5550 = vmatmul.mubr.bf16.gmra.mrb[100].mxu0 %v2381_v38  ;;  %5905 = vpow2.f32 %v2376_v23  ;;  %v2974_v1 = vmul.f32 1.442695, %v2953_v26  ;;  %v8702_v38 = vld [vmem:[#allocation28_spill] sm:$0xff] }
 0x68b   :  { %v5896_v0 = vpop.eup %5895  ;;  %v2374_v45 = vmul.f32 1.442695, %v2344_v61  ;;  %5598 = vmatpush3.bf16.msra.mxu0 %v8694_v48  ;;  %v3545_v54 = vpop.xlane.xlu1 %3544  ;;  %v8701_v48 = vld [vmem:[#allocation31_spill] sm:$0xff] }
 0x68c   :  { %5599 = vmatprep.subr.bf16.mxu0 %v8696_v18  ;;  %v3535_v20 = vpop.xlane.xlu0 %3534  ;;  %v2382_v44 = vpack.c.bf16 %v5894_v19, %v5896_v0  ;;  %v5898_v58 = vpop.eup %5897  ;;  %v3571_v50 = vsub.f32 %v8701_v48, %v3545_v54 }
 0x68d   :  { %5907 = vpow2.f32 %v2374_v45  ;;  %v3566_v63 = vsub.f32 %v7610_v3, %v3535_v20 }
 0x68e   :  { %5553 = vmatprep.mubr.bf16.mxu0 %v2382_v44  ;;  %5909 = vpow2.f32 %v3584_v57  ;;  %v3592_v12 = vmul.f32 1.442695, %v3571_v50 }
 0x68f   :  { %v5900_v14 = vpop.eup %5899  ;;  %v3582_v9 = vmul.f32 1.442695, %v3566_v63  ;;  %5600 = vmatpush3.bf16.msra.mxu0 %v8696_v18  ;;  %v3549_v29 = vpop.xlane.xlu1 %3548  ;;  %v8703_v18 = vld [vmem:[#allocation30_spill] sm:$0xff] }
 0x690   :  { %5601 = vmatprep.subr.bf16.mxu0 %v8698_v24  ;;  %v3539_v49 = vpop.xlane.xlu0 %3538  ;;  %v2383_v53 = vpack.c.bf16 %v5898_v58, %v5900_v14  ;;  %v5902_v22 = vpop.eup %5901  ;;  %v3573_v10 = vsub.f32 %v7617_v11, %v3549_v29 }
 0x691   :  { %5911 = vpow2.f32 %v3582_v9  ;;  %v3568_v32 = vsub.f32 %v7622_v4, %v3539_v49 }
 0x692   :  { %5554 = vmatmul.mubr.bf16.gmra.mrb[104].mxu0 %v2383_v53  ;;  %5913 = vpow2.f32 %v3588_v5  ;;  %v3596_v9 = vmul.f32 1.442695, %v3573_v10  ;;  %v8704_v5 = vld [vmem:[#allocation47_spill] sm:$0xff] }
 0x693   :  { %v5904_v3 = vpop.eup %5903  ;;  %v3586_v25 = vmul.f32 1.442695, %v3568_v32  ;;  %5602 = vmatpush3.bf16.msra.mxu0 %v8698_v24  ;;  %v2931_v51 = vpop.xlane.xlu1 %2930 }
 0x694   :  { %5603 = vmatprep.subr.bf16.mxu0 %v8700_v62  ;;  %v2921_v34 = vpop.xlane.xlu0 %2920  ;;  %v2384_v17 = vpack.c.bf16 %v5902_v22, %v5904_v3  ;;  %v5906_v56 = vpop.eup %5905  ;;  %v2955_v7 = vsub.f32 %v8704_v5, %v2931_v51 }
 0x695   :  { %5915 = vpow2.f32 %v3586_v25  ;;  %v2950_v33 = vsub.f32 %v7634_v43, %v2921_v34 }
 0x696   :  { %5557 = vmatprep.mubr.bf16.mxu0 %v2384_v17  ;;  %5917 = vpow2.f32 %v2970_v16  ;;  %v2978_v53 = vmul.f32 1.442695, %v2955_v7 }
 0x697   :  { %v5908_v4 = vpop.eup %5907  ;;  %v2968_v23 = vmul.f32 1.442695, %v2950_v33  ;;  %5604 = vmatpush3.bf16.msra.mxu0 %v8700_v62  ;;  %v2935_v28 = vpop.xlane.xlu1 %2934 }
 0x698   :  { %5605 = vmatprep.subr.bf16.mxu0 %v8702_v38  ;;  %v2925_v35 = vpop.xlane.xlu0 %2924  ;;  %v2385_v61 = vpack.c.bf16 %v5906_v56, %v5908_v4  ;;  %v5910_v0 = vpop.eup %5909  ;;  %v2957_v32 = vsub.f32 %v7641_v15, %v2935_v28 }
 0x699   :  { %5919 = vpow2.f32 %v2968_v23  ;;  %v2952_v19 = vsub.f32 %v7646_v30, %v2925_v35 }
 0x69a   :  { %5558 = vmatmul.mubr.bf16.gmra.mrb[108].mxu0 %v2385_v61  ;;  %5921 = vpow2.f32 %v2974_v1  ;;  %v8705_v61 = vld [vmem:[#allocation36_spill] sm:$0xff] }
 0x69b   :  { %v5912_v43 = vpop.eup %5911  ;;  %v2972_v45 = vmul.f32 1.442695, %v2952_v19  ;;  %5606 = vmatpush3.bf16.msra.mxu0 %v8702_v38  ;;  %v3553_v57 = vpop.xlane.xlu1 %3552 }
 0x69c   :  { %5607 = vmatprep.subr.bf16.mxu0 %v8703_v18  ;;  %v3543_v54 = vpop.xlane.xlu0 %3542  ;;  %v3614_v20 = vpack.c.bf16 %v5910_v0, %v5912_v43  ;;  %v5914_v63 = vpop.eup %5913  ;;  %v3575_v62 = vsub.f32 %v7653_v41, %v3553_v57 }
 0x69d   :  { %5923 = vpow2.f32 %v2972_v45  ;;  %v3570_v44 = vsub.f32 %v7658_v40, %v3543_v54 }
 0x69e   :  { %5609 = vmatprep.mubr.bf16.mxu0 %v3614_v20  ;;  %5925 = vpow2.f32 %v3592_v12 }
 0x69f   :  { %v5916_v30 = vpop.eup %5915  ;;  %v3590_v58 = vmul.f32 1.442695, %v3570_v44  ;;  %5608 = vmatpush3.bf16.msra.mxu0 %v8703_v18  ;;  %v3557_v14 = vpop.xlane.xlu1 %3556 }
 0x6a0   :  { %v3547_v8 = vpop.xlane.xlu0 %3546  ;;  %v3615_v11 = vpack.c.bf16 %v5914_v63, %v5916_v30  ;;  %v5918_v24 = vpop.eup %5917  ;;  %v3577_v28 = vsub.f32 %v7665_v52, %v3557_v14 }
 0x6a1   :  { %5927 = vpow2.f32 %v3590_v58  ;;  %v3572_v29 = vsub.f32 %v7670_v59, %v3547_v8  ;;  %v2982_v59 = vmul.f32 1.442695, %v2957_v32 }
 0x6a2   :  { %5610 = vmatmul.mubr.bf16.vlgmr.msra.gmra.mrb[112].mxu0 %v3615_v11  ;;  %5929 = vpow2.f32 %v3596_v9 }
 0x6a3   :  { %v5920_v49 = vpop.eup %5919  ;;  %v3594_v40 = vmul.f32 1.442695, %v3572_v29  ;;  %v2939_v25 = vpop.xlane.xlu1 %2938 }
 0x6a4   :  { %v2929_v22 = vpop.xlane.xlu0 %2928  ;;  %v2997_v3 = vpack.c.bf16 %v5918_v24, %v5920_v49  ;;  %v5922_v51 = vpop.eup %5921  ;;  %v2959_v19 = vsub.f32 %v8705_v61, %v2939_v25 }
 0x6a5   :  { %5931 = vpow2.f32 %v3594_v40  ;;  %v2954_v16 = vsub.f32 %v7682_v2, %v2929_v22  ;;  %v3600_v2 = vmul.f32 1.442695, %v3575_v62 }
 0x6a6   :  { %5578 = vmatmul.mubr.bf16.vlgmr.msra.gmra.mrb[80].mxu1 %v2997_v3  ;;  %5933 = vpow2.f32 %v2978_v53  ;;  %v2986_v18 = vmul.f32 1.442695, %v2959_v19 }
 0x6a7   :  { %v5924_v39 = vpop.eup %5923  ;;  %v2976_v26 = vmul.f32 1.442695, %v2954_v16  ;;  %v2943_v4 = vpop.xlane.xlu1 %2942 }
 0x6a8   :  { %v2933_v34 = vpop.xlane.xlu0 %2932  ;;  %v2998_v17 = vpack.c.bf16 %v5922_v51, %v5924_v39  ;;  %v5926_v15 = vpop.eup %5925  ;;  %v2961_v10 = vsub.f32 %v7689_v42, %v2943_v4 }
 0x6a9   :  { %5935 = vpow2.f32 %v2976_v26  ;;  %v2956_v33 = vsub.f32 %v7694_v37, %v2933_v34  ;;  %v3604_v37 = vmul.f32 1.442695, %v3577_v28 }
 0x6aa   :  { %5581 = vmatprep.mubr.bf16.mxu1 %v2998_v17  ;;  %5937 = vpow2.f32 %v2982_v59  ;;  %v2990_v58 = vmul.f32 1.442695, %v2961_v10 }
 0x6ab   :  { %v5928_v56 = vpop.eup %5927  ;;  %v2980_v23 = vmul.f32 1.442695, %v2956_v33  ;;  %v3561_v45 = vpop.xlane.xlu1 %3560 }
 0x6ac   :  { %v3551_v1 = vpop.xlane.xlu0 %3550  ;;  %v3616_v48 = vpack.c.bf16 %v5926_v15, %v5928_v56  ;;  %v5930_v41 = vpop.eup %5929 }
 0x6ad   :  { %5939 = vpow2.f32 %v2980_v23  ;;  %v3574_v50 = vsub.f32 %v7704_v6, %v3551_v1 }
 0x6ae   :  { %5613 = vmatprep.mubr.bf16.mxu0 %v3616_v48  ;;  %5941 = vpow2.f32 %v3600_v2 }
 0x6af   :  { %v5932_v38 = vpop.eup %5931  ;;  %v3598_v35 = vmul.f32 1.442695, %v3574_v50  ;;  %v3565_v14 = vpop.xlane.xlu1 %3564 }
 0x6b0   :  { %v3555_v0 = vpop.xlane.xlu0 %3554  ;;  %v3617_v43 = vpack.c.bf16 %v5930_v41, %v5932_v38  ;;  %v5934_v52 = vpop.eup %5933  ;;  %v3581_v24 = vsub.f32 %v7711_v60, %v3565_v14 }
 0x6b1   :  { %5943 = vpow2.f32 %v3598_v35  ;;  %v3576_v57 = vsub.f32 %v7714_v27, %v3555_v0  ;;  %v3579_v27 = vsub.f32 %v7701_v13, %v3561_v45  ;;  %v6332_v13 = vmov 10  }
 0x6b2   :  { %5614 = vmatmul.mubr.bf16.gmra.mrb[116].mxu0 %v3617_v43  ;;  %5945 = vpow2.f32 %v3604_v37  ;;  %5691 = vset.pattern.permute.xlu1 %v6332_v13  ;;  %v3612_v25 = vmul.f32 1.442695, %v3581_v24  ;;  %v5816_v24 = vld [vmem:[#allocation9 + $0x18] sm:$0xff]  }
 0x6b3   :  { %v5936_v12 = vpop.eup %5935  ;;  %v3602_v6 = vmul.f32 1.442695, %v3576_v57  ;;  %v2947_v53 = vpop.xlane.xlu1 %2946  ;;  %5692 = vset.pattern.permute.xlu0 %v6332_v13 }
 0x6b4   :  { %v2937_v54 = vpop.xlane.xlu0 %2936  ;;  %v2999_v20 = vpack.c.bf16 %v5934_v52, %v5936_v12  ;;  %v5938_v63 = vpop.eup %5937  ;;  %v2963_v16 = vsub.f32 %v7721_v21, %v2947_v53 }
 0x6b5   :  { %5947 = vpow2.f32 %v3602_v6  ;;  %v2958_v44 = vsub.f32 %v7724_v31, %v2937_v54  ;;  %v3608_v31 = vmul.f32 1.442695, %v3579_v27  ;;  %v5812_v27 = vld [vmem:[#allocation9 + $0x8] sm:$0xff]  }
 0x6b6   :  { %5582 = vmatmul.mubr.bf16.gmra.mrb[84].mxu1 %v2999_v20  ;;  %5949 = vpow2.f32 %v2986_v18  ;;  %v2994_v62 = vmul.f32 1.442695, %v2963_v16  ;;  %v5817_v16 = vld [vmem:[#allocation9 + $0x60] sm:$0xff]  }
 0x6b7   :  { %v5940_v30 = vpop.eup %5939  ;;  %v2984_v9 = vmul.f32 1.442695, %v2958_v44 }
 0x6b8   :  { %v2941_v5 = vpop.xlane.xlu0 %2940  ;;  %v3000_v7 = vpack.c.bf16 %v5938_v63, %v5940_v30  ;;  %v5942_v8 = vpop.eup %5941  ;;  %v5809_v30 = vld [vmem:[#allocation9 + $0x40] sm:$0xff]  }
 0x6b9   :  { %5951 = vpow2.f32 %v2984_v9  ;;  %v2960_v42 = vsub.f32 %v7731_v47, %v2941_v5  ;;  %5353 = vmatprep.subr.bf16.mxu1 %v5809_v30  ;;  %v5811_v9 = vld [vmem:[#allocation9 + $0x48] sm:$0xff]  }
 0x6ba   :  { %5585 = vmatprep.mubr.bf16.mxu1 %v3000_v7  ;;  %5953 = vpow2.f32 %v2990_v58  ;;  %v5810_v58 = vld [vmem:[#allocation9] sm:$0xff]  }
 0x6bb   :  { %v5944_v11 = vpop.eup %5943  ;;  %v2988_v29 = vmul.f32 1.442695, %v2960_v42  ;;  %5354 = vmatpush3.bf16.msra.mxu1 %v5810_v58 }
 0x6bc   :  { %v3559_v49 = vpop.xlane.xlu0 %3558  ;;  %v3618_v40 = vpack.c.bf16 %v5942_v8, %v5944_v11  ;;  %v5946_v22 = vpop.eup %5945  ;;  %5355 = vmatprep.subr.bf16.mxu1 %v5811_v9  ;;  %v5813_v8 = vld [vmem:[#allocation9 + $0x50] sm:$0xff]  }
 0x6bd   :  { %5955 = vpow2.f32 %v2988_v29  ;;  %v3578_v32 = vsub.f32 %v7737_v46, %v3559_v49  ;;  %v5814_v11 = vld [vmem:[#allocation9 + $0x10] sm:$0xff]  }
 0x6be   :  { %5617 = vmatprep.mubr.bf16.mxu0 %v3618_v40  ;;  %5957 = vpow2.f32 %v3608_v31  ;;  %v5815_v31 = vld [vmem:[#allocation9 + $0x58] sm:$0xff]  }
 0x6bf   :  { %v5948_v47 = vpop.eup %5947  ;;  %v3606_v3 = vmul.f32 1.442695, %v3578_v32  ;;  %5356 = vmatpush3.bf16.msra.mxu1 %v5812_v27 }
 0x6c0   :  { %v3563_v51 = vpop.xlane.xlu0 %3562  ;;  %v3619_v39 = vpack.c.bf16 %v5946_v22, %v5948_v47  ;;  %v5950_v26 = vpop.eup %5949  ;;  %5357 = vmatprep.subr.bf16.mxu1 %v5813_v8 }
 0x6c1   :  { %5959 = vpow2.f32 %v3606_v3  ;;  %v3580_v60 = vsub.f32 %v7741_v36, %v3563_v51  ;;  %v5818_v51 = vld [vmem:[#allocation9 + $0x20] sm:$0xff]  }
 0x6c2   :  { %5618 = vmatmul.mubr.bf16.gmra.mrb[120].mxu0 %v3619_v39  ;;  %5961 = vpow2.f32 %v3612_v25 }
 0x6c3   :  { %v5952_v59 = vpop.eup %5951  ;;  %v3610_v46 = vmul.f32 1.442695, %v3580_v60  ;;  %5358 = vmatpush3.bf16.msra.mxu1 %v5814_v11 }
 0x6c4   :  { %v2945_v34 = vpop.xlane.xlu0 %2944  ;;  %v3001_v17 = vpack.c.bf16 %v5950_v26, %v5952_v59  ;;  %v5954_v33 = vpop.eup %5953  ;;  %5359 = vmatprep.subr.bf16.mxu1 %v5815_v31 }
 0x6c5   :  { %5963 = vpow2.f32 %v3610_v46  ;;  %v2962_v15 = vsub.f32 %v7745_v55, %v2945_v34  ;;  %v5819_v46 = vld [vmem:[#allocation9 + $0x68] sm:$0xff]  }
 0x6c6   :  { %5586 = vmatmul.mubr.bf16.gmra.mrb[88].mxu1 %v3001_v17  ;;  %5965 = vpow2.f32 %v2994_v62  ;;  %v5820_v62 = vld [vmem:[#allocation9 + $0x28] sm:$0xff]  }
 0x6c7   :  { %v5956_v56 = vpop.eup %5955  ;;  %v2992_v21 = vmul.f32 1.442695, %v2962_v15  ;;  %5360 = vmatpush3.bf16.msra.mxu1 %v5816_v24 }
 0x6c8   :  { %v3002_v4 = vpack.c.bf16 %v5954_v33, %v5956_v56  ;;  %v5958_v23 = vpop.eup %5957  ;;  %5361 = vmatprep.subr.bf16.mxu1 %v5817_v16  ;;  %v5821_v56 = vld [vmem:[#allocation9 + $0x70] sm:$0xff]  }
 0x6c9   :  { %5967 = vpow2.f32 %v2992_v21  ;;  %v5822_v21 = vld [vmem:[#allocation9 + $0x30] sm:$0xff]  }
 0x6ca   :  { %5589 = vmatprep.mubr.bf16.mxu1 %v3002_v4 }
 0x6cb   :  { %v5960_v36 = vpop.eup %5959  ;;  %5362 = vmatpush3.bf16.msra.mxu1 %v5818_v51 }
 0x6cc   :  { %v3620_v2 = vpack.c.bf16 %v5958_v23, %v5960_v36  ;;  %v5962_v28 = vpop.eup %5961  ;;  %5363 = vmatprep.subr.bf16.mxu1 %v5819_v46 }
 0x6ce   :  { %5621 = vmatprep.mubr.bf16.mxu0 %v3620_v2 }
 0x6cf   :  { %v5964_v1 = vpop.eup %5963  ;;  %5364 = vmatpush3.bf16.msra.mxu1 %v5820_v62 }
 0x6d0   :  { %v3621_v48 = vpack.c.bf16 %v5962_v28, %v5964_v1  ;;  %v5966_v50 = vpop.eup %5965  ;;  %5365 = vmatprep.subr.bf16.mxu1 %v5821_v56  ;;  %v5823_v28 = vld [vmem:[#allocation9 + $0x78] sm:$0xff]  }
 0x6d1   :  { %v5824_v1 = vld [vmem:[#allocation9 + $0x38] sm:$0xff]  }
 0x6d2   :  { %5622 = vmatmul.mubr.bf16.gmra.mrb[124].mxu0 %v3621_v48 }
 0x6d3   :  { %v5968_v41 = vpop.eup %5967  ;;  %5366 = vmatpush3.bf16.msra.mxu1 %v5822_v21 }
 0x6d4   :  { %v3003_v38 = vpack.c.bf16 %v5966_v50, %v5968_v41  ;;  %5367 = vmatprep.subr.bf16.mxu1 %v5823_v28 }
 0x6d6   :  { %5590 = vmatmul.mubr.bf16.gmra.mrb[92].mxu1 %v3003_v38 }
 0x6d7   :  { %5368 = vmatpush3.bf16.msra.mxu1 %v5824_v1 }
 0x731   :  { %v7842_v55 = vpop.f32.mrb[64].mxu1 }
 0x732   :  { %5969 = vrcp.f32 %v7842_v55  ;;  %v7845_v35 = vpop.f32.mrb[65].mxu1 }
 0x733   :  { %v7847_v37 = vpop.f32.mrb[66].mxu1  ;;  %5971 = vrcp.f32 %v7845_v35 }
 0x734   :  { %v7849_v61 = vpop.f32.mrb[67].mxu1 }
 0x739   :  { %v7852_v19 = vpop.f32.mrb[68].mxu1 }
 0x73a   :  { %v7854_v0 = vpop.f32.mrb[69].mxu1 }
 0x73b   :  { %v7856_v43 = vpop.f32.mrb[70].mxu1 }
 0x73c   :  { %v5970_v45 = vpop.eup %5969  ;;  %v7858_v57 = vpop.f32.mrb[71].mxu1 }
 0x73d   :  { %1901 = vperm.xlu1 %5691, %v5970_v45   ;;  %v5972_v52 = vpop.eup %5971 }
 0x741   :  { %1891 = vperm.xlu1 %5691, %v5972_v52   ;;  %v7860_v12 = vpop.f32.mrb[72].mxu1 }
 0x742   :  { %v7862_v10 = vpop.f32.mrb[73].mxu1 }
 0x743   :  { %v7864_v6 = vpop.f32.mrb[74].mxu1 }
 0x744   :  { %v7866_v18 = vpop.f32.mrb[75].mxu1 }
 0x749   :  { %v7868_v54 = vpop.f32.mrb[76].mxu1 }
 0x74a   :  { %8706 = vst [vmem:[#allocation46_spill] sm:$0xff] %v7868_v54  ;;  %v7870_v20 = vpop.f32.mrb[77].mxu1 }
 0x74b   :  { %v7872_v44 = vpop.f32.mrb[78].mxu1 }
 0x74c   :  { %8707 = vst [vmem:[#allocation34_spill] sm:$0xff] %v7872_v44  ;;  %v7874_v63 = vpop.f32.mrb[79].mxu1 }
 0x755   :  { %v7876_v14 = vpop.f32.mrb[96].mxu0 }
 0x756   :  { %5973 = vrcp.f32 %v7876_v14  ;;  %v7879_v5 = vpop.f32.mrb[97].mxu0 }
 0x757   :  { %5975 = vrcp.f32 %v7879_v5  ;;  %v7882_v7 = vpop.f32.mrb[98].mxu0 }
 0x758   :  { %v7884_v42 = vpop.f32.mrb[99].mxu0  ;;  %5977 = vrcp.f32 %v7849_v61 }
 0x759   :  { %5979 = vrcp.f32 %v7847_v37 }
 0x75a   :  { %5981 = vrcp.f32 %v7884_v42 }
 0x75b   :  { %5983 = vrcp.f32 %v7882_v7 }
 0x75c   :  { %5985 = vrcp.f32 %v7852_v19 }
 0x75d   :  { %v7888_v29 = vpop.f32.mrb[100].mxu0  ;;  %5987 = vrcp.f32 %v7856_v43 }
 0x75e   :  { %v7891_v49 = vpop.f32.mrb[101].mxu0  ;;  %5989 = vrcp.f32 %v7854_v0 }
 0x75f   :  { %v7894_v40 = vpop.f32.mrb[102].mxu0  ;;  %5991 = vrcp.f32 %v7858_v57 }
 0x760   :  { %v5974_v53 = vpop.eup %5973  ;;  %v7896_v32 = vpop.f32.mrb[103].mxu0  ;;  %5993 = vrcp.f32 %v7888_v29 }
 0x761   :  { %v5976_v13 = vpop.eup %5975  ;;  %2519 = vperm.xlu1 %5691, %v5974_v53   ;;  %5995 = vrcp.f32 %v7894_v40 }
 0x762   :  { %2509 = vperm.xlu0 %5692, %v5976_v13   ;;  %v5978_v22 = vpop.eup %5977  ;;  %5997 = vrcp.f32 %v7891_v49 }
 0x763   :  { %v5980_v47 = vpop.eup %5979  ;;  %5999 = vrcp.f32 %v7896_v32 }
 0x764   :  { %v5982_v60 = vpop.eup %5981  ;;  %6001 = vrcp.f32 %v7860_v12 }
 0x765   :  { %1896 = vperm.xlu1 %5691, %v5978_v22   ;;  %v7900_v3 = vpop.f32.mrb[104].mxu0  ;;  %v5984_v59 = vpop.eup %5983  ;;  %6003 = vrcp.f32 %v7864_v6 }
 0x766   :  { %1906 = vperm.xlu0 %5692, %v5980_v47   ;;  %v7903_v25 = vpop.f32.mrb[105].mxu0  ;;  %v5986_v34 = vpop.eup %5985  ;;  %6005 = vrcp.f32 %v7862_v10 }
 0x767   :  { %v7906_v39 = vpop.f32.mrb[106].mxu0  ;;  %v5988_v17 = vpop.eup %5987  ;;  %6007 = vrcp.f32 %v7866_v18 }
 0x768   :  { %v7908_v26 = vpop.f32.mrb[107].mxu0  ;;  %v5990_v23 = vpop.eup %5989  ;;  %6009 = vrcp.f32 %v7900_v3 }
 0x769   :  { %2514 = vperm.xlu1 %5691, %v5982_v60   ;;  %v5992_v2 = vpop.eup %5991  ;;  %6011 = vrcp.f32 %v7906_v39 }
 0x76a   :  { %2524 = vperm.xlu0 %5692, %v5984_v59   ;;  %v5994_v48 = vpop.eup %5993  ;;  %6013 = vrcp.f32 %v7903_v25 }
 0x76b   :  { %v5996_v50 = vpop.eup %5995  ;;  %6015 = vrcp.f32 %v7908_v26 }
 0x76c   :  { %v5998_v52 = vpop.eup %5997 }
 0x76d   :  { %1921 = vperm.xlu1 %5691, %v5986_v34   ;;  %v7912_v33 = vpop.f32.mrb[108].mxu0  ;;  %v6000_v58 = vpop.eup %5999 }
 0x76e   :  { %8708 = vst [vmem:[#allocation50_spill] sm:$0xff] %v7912_v33  ;;  %1926 = vperm.xlu0 %5692, %v5988_v17   ;;  %v7915_v15 = vpop.f32.mrb[109].mxu0  ;;  %v6002_v11 = vpop.eup %6001 }
 0x76f   :  { %v7918_v4 = vpop.f32.mrb[110].mxu0  ;;  %v6004_v24 = vpop.eup %6003  ;;  %6017 = vrcp.f32 %v7915_v15 }
 0x770   :  { %v7920_v36 = vpop.f32.mrb[111].mxu0  ;;  %v6006_v53 = vpop.eup %6005 }
 0x771   :  { %1911 = vperm.xlu1 %5691, %v5990_v23   ;;  %v6008_v13 = vpop.eup %6007  ;;  %6019 = vrcp.f32 %v7920_v36 }
 0x772   :  { %1916 = vperm.xlu0 %5692, %v5992_v2   ;;  %v6010_v22 = vpop.eup %6009 }
 0x773   :  { %v6012_v47 = vpop.eup %6011 }
 0x774   :  { %v6014_v59 = vpop.eup %6013 }
 0x775   :  { %2539 = vperm.xlu1 %5691, %v5994_v48   ;;  %v7924_v41 = vpop.f32.mrb[112].mxu0  ;;  %v6016_v62 = vpop.eup %6015  ;;  %v5825_v48 = vld [vmem:[#allocation9 + $0xc0] sm:$0xff]  }
 0x776   :  { %2544 = vperm.xlu0 %5692, %v5996_v50   ;;  %v7927_v38 = vpop.f32.mrb[113].mxu0  ;;  %v5826_v50 = vld [vmem:[#allocation9 + $0x80] sm:$0xff]   ;;  %5417 = vmatprep.subr.bf16.mxu0 %v5825_v48 }
 0x777   :  { %v7930_v45 = vpop.f32.mrb[114].mxu0  ;;  %5418 = vmatpush3.bf16.msra.mxu0 %v5826_v50 }
 0x778   :  { %v7932_v30 = vpop.f32.mrb[115].mxu0 }
 0x779   :  { %v7934_v9 = vpop.f32.mrb[80].mxu1  ;;  %2529 = vperm.xlu1 %5691, %v5998_v52   ;;  %v6018_v21 = vpop.eup %6017 }
 0x77a   :  { %v7937_v27 = vpop.f32.mrb[81].mxu1  ;;  %2534 = vperm.xlu0 %5692, %v6000_v58   ;;  %6021 = vrcp.f32 %v7934_v9 }
 0x77b   :  { %v7940_v8 = vpop.f32.mrb[82].mxu1  ;;  %v6020_v2 = vpop.eup %6019 }
 0x77c   :  { %v7942_v31 = vpop.f32.mrb[83].mxu1  ;;  %6023 = vrcp.f32 %v7940_v8 }
 0x77d   :  { %1941 = vperm.xlu1 %5691, %v6002_v11   ;;  %6025 = vrcp.f32 %v7937_v27 }
 0x77e   :  { %1946 = vperm.xlu0 %5692, %v6004_v24   ;;  %6027 = vrcp.f32 %v7930_v45  ;;  %v5827_v24 = vld [vmem:[#allocation9 + $0xc8] sm:$0xff]  }
 0x77f   :  { %6029 = vrcp.f32 %v7924_v41  ;;  %5419 = vmatprep.subr.bf16.mxu0 %v5827_v24  ;;  %v5831_v24 = vld [vmem:[#allocation9 + $0xd8] sm:$0xff]  }
 0x781   :  { %1931 = vperm.xlu1 %5691, %v6006_v53  }
 0x782   :  { %1936 = vperm.xlu0 %5692, %v6008_v13   ;;  %v5828_v13 = vld [vmem:[#allocation9 + $0x88] sm:$0xff]  }
 0x783   :  { %5420 = vmatpush3.bf16.msra.mxu0 %v5828_v13  ;;  %v5832_v13 = vld [vmem:[#allocation9 + $0x98] sm:$0xff]  }
 0x784   :  { %v6022_v28 = vpop.eup %6021 }
 0x785   :  { %2559 = vperm.xlu1 %5691, %v6010_v22   ;;  %v7948_v16 = vpop.f32.mrb[116].mxu0 }
 0x786   :  { %8709 = vst [vmem:[#allocation39_spill] sm:$0xff] %v7948_v16  ;;  %2564 = vperm.xlu0 %5692, %v6012_v47   ;;  %v7951_v51 = vpop.f32.mrb[117].mxu0  ;;  %v6024_v1 = vpop.eup %6023 }
 0x787   :  { %v7954_v60 = vpop.f32.mrb[118].mxu0  ;;  %v6026_v52 = vpop.eup %6025 }
 0x788   :  { %8710 = vst [vmem:[#allocation54_spill] sm:$0xff] %v7954_v60  ;;  %v7956_v46 = vpop.f32.mrb[119].mxu0  ;;  %v6028_v58 = vpop.eup %6027 }
 0x789   :  { %8711 = vst [vmem:[#allocation40_spill] sm:$0xff] %v7956_v46  ;;  %v7958_v34 = vpop.f32.mrb[84].mxu1  ;;  %2549 = vperm.xlu1 %5691, %v6014_v59   ;;  %v6030_v47 = vpop.eup %6029 }
 0x78a   :  { %8712 = vst [vmem:[#allocation56_spill] sm:$0xff] %v7958_v34  ;;  %v7961_v17 = vpop.f32.mrb[85].mxu1  ;;  %2554 = vperm.xlu0 %5692, %v6016_v62  }
 0x78b   :  { %8713 = vst [vmem:[#allocation45_spill] sm:$0xff] %v7961_v17  ;;  %v7964_v56 = vpop.f32.mrb[86].mxu1 }
 0x78c   :  { %v7966_v23 = vpop.f32.mrb[87].mxu1  ;;  %6031 = vrcp.f32 %v7964_v56 }
 0x78d   :  { %2569 = vperm.xlu1 %5691, %v6018_v21   ;;  %6033 = vrcp.f32 %v7927_v38 }
 0x78e   :  { %2574 = vperm.xlu0 %5692, %v6020_v2   ;;  %6035 = vrcp.f32 %v7966_v23  ;;  %v5829_v2 = vld [vmem:[#allocation9 + $0xd0] sm:$0xff]  }
 0x78f   :  { %6037 = vrcp.f32 %v7942_v31  ;;  %5421 = vmatprep.subr.bf16.mxu0 %v5829_v2  ;;  %v5834_v2 = vld [vmem:[#allocation9 + $0xa0] sm:$0xff]  }
 0x790   :  { %6039 = vrcp.f32 %v7954_v60 }
 0x791   :  { %3137 = vperm.xlu1 %5691, %v6022_v28   ;;  %6041 = vrcp.f32 %v7932_v30 }
 0x792   :  { %3142 = vperm.xlu0 %5692, %v6024_v1   ;;  %v5830_v1 = vld [vmem:[#allocation9 + $0x90] sm:$0xff]   ;;  %6043 = vrcp.f32 %v7956_v46  ;;  %v5833_v46 = vld [vmem:[#allocation9 + $0xe0] sm:$0xff]  }
 0x793   :  { %5422 = vmatpush3.bf16.msra.mxu0 %v5830_v1  ;;  %6045 = vrcp.f32 %v7958_v34 }
 0x794   :  { %5423 = vmatprep.subr.bf16.mxu0 %v5831_v24 }
 0x795   :  { %3127 = vperm.xlu1 %5691, %v6026_v52   ;;  %v7972_v11 = vpop.f32.mrb[120].mxu0 }
 0x796   :  { %v7975_v53 = vpop.f32.mrb[121].mxu0  ;;  %3760 = vperm.xlu0 %5692, %v6028_v58   ;;  %v6032_v62 = vpop.eup %6031 }
 0x797   :  { %v7978_v22 = vpop.f32.mrb[122].mxu0  ;;  %v6034_v50 = vpop.eup %6033  ;;  %5424 = vmatpush3.bf16.msra.mxu0 %v5832_v13 }
 0x798   :  { %8714 = vst [vmem:[#allocation53_spill] sm:$0xff] %v7978_v22  ;;  %v7980_v59 = vpop.f32.mrb[123].mxu0  ;;  %v6036_v58 = vpop.eup %6035  ;;  %5425 = vmatprep.subr.bf16.mxu0 %v5833_v46 }
 0x799   :  { %v7982_v21 = vpop.f32.mrb[88].mxu1  ;;  %3755 = vperm.xlu1 %5691, %v6030_v47   ;;  %v6038_v47 = vpop.eup %6037 }
 0x79a   :  { %v7985_v28 = vpop.f32.mrb[89].mxu1  ;;  %3162 = vperm.xlu0 %5692, %v6032_v62   ;;  %v6040_v62 = vpop.eup %6039 }
 0x79b   :  { %v7988_v48 = vpop.f32.mrb[90].mxu1  ;;  %v6042_v1 = vpop.eup %6041  ;;  %5426 = vmatpush3.bf16.msra.mxu0 %v5834_v2 }
 0x79c   :  { %8715 = vst [vmem:[#allocation44_spill] sm:$0xff] %v7988_v48  ;;  %v7990_v52 = vpop.f32.mrb[91].mxu1  ;;  %6047 = vrcp.f32 %v7988_v48 }
 0x79d   :  { %8716 = vst [vmem:[#allocation51_spill] sm:$0xff] %v7990_v52  ;;  %3745 = vperm.xlu1 %5691, %v6034_v50   ;;  %6049 = vrcp.f32 %v7961_v17  ;;  %v6044_v50 = vpop.eup %6043 }
 0x79e   :  { %3152 = vperm.xlu0 %5692, %v6036_v58   ;;  %6051 = vrcp.f32 %v7990_v52  ;;  %v6046_v48 = vpop.eup %6045 }
 0x79f   :  { %6053 = vrcp.f32 %v7948_v16 }
 0x7a0   :  { %6055 = vrcp.f32 %v7978_v22 }
 0x7a1   :  { %3132 = vperm.xlu1 %5691, %v6038_v47   ;;  %v5835_v47 = vld [vmem:[#allocation9 + $0xe8] sm:$0xff]   ;;  %6057 = vrcp.f32 %v7951_v51 }
 0x7a2   :  { %3780 = vperm.xlu0 %5692, %v6040_v62   ;;  %v5836_v62 = vld [vmem:[#allocation9 + $0xa8] sm:$0xff]   ;;  %5427 = vmatprep.subr.bf16.mxu0 %v5835_v47  ;;  %6059 = vrcp.f32 %v7980_v59  ;;  %v5840_v47 = vld [vmem:[#allocation9 + $0xb8] sm:$0xff]  }
 0x7a3   :  { %5428 = vmatpush3.bf16.msra.mxu0 %v5836_v62  ;;  %6061 = vrcp.f32 %v7982_v21 }
 0x7a4   :  { %6063 = vrcp.f32 %v7874_v63 }
 0x7a5   :  { %3750 = vperm.xlu1 %5691, %v6042_v1   ;;  %v7996_v58 = vpop.f32.mrb[124].mxu0  ;;  %v5837_v1 = vld [vmem:[#allocation9 + $0xf0] sm:$0xff]   ;;  %6065 = vrcp.f32 %v7985_v28 }
 0x7a6   :  { %8717 = vst [vmem:[#allocation49_spill] sm:$0xff] %v7996_v58  ;;  %v7999_v24 = vpop.f32.mrb[125].mxu0  ;;  %3770 = vperm.xlu0 %5692, %v6044_v50   ;;  %v6048_v46 = vpop.eup %6047  ;;  %v5838_v50 = vld [vmem:[#allocation9 + $0xb0] sm:$0xff]   ;;  %5429 = vmatprep.subr.bf16.mxu0 %v5837_v1  ;;  %6067 = vrcp.f32 %v7918_v4 }
 0x7a7   :  { %8718 = vst [vmem:[#allocation60_spill] sm:$0xff] %v7999_v24  ;;  %v8002_v13 = vpop.f32.mrb[126].mxu0  ;;  %v6050_v17 = vpop.eup %6049  ;;  %5430 = vmatpush3.bf16.msra.mxu0 %v5838_v50  ;;  %6069 = vrcp.f32 %v7972_v11 }
 0x7a8   :  { %8719 = vst [vmem:[#allocation57_spill] sm:$0xff] %v8002_v13  ;;  %v8004_v52 = vpop.f32.mrb[127].mxu0  ;;  %v6052_v34 = vpop.eup %6051 }
 0x7a9   :  { %8720 = vst [vmem:[#allocation59_spill] sm:$0xff] %v8004_v52  ;;  %v8006_v2 = vpop.f32.mrb[92].mxu1  ;;  %3157 = vperm.xlu1 %5691, %v6046_v48   ;;  %v5839_v48 = vld [vmem:[#allocation9 + $0xf8] sm:$0xff]   ;;  %v6054_v62 = vpop.eup %6053 }
 0x7aa   :  { %8721 = vst [vmem:[#allocation61_spill] sm:$0xff] %v8006_v2  ;;  %v8009_v16 = vpop.f32.mrb[93].mxu1  ;;  %3182 = vperm.xlu0 %5692, %v6048_v46   ;;  %5431 = vmatprep.subr.bf16.mxu0 %v5839_v48  ;;  %v6056_v46 = vpop.eup %6055 }
 0x7ab   :  { %8722 = vst [vmem:[#allocation15_spill] sm:$0xff] %v8009_v16  ;;  %v8012_v22 = vpop.f32.mrb[94].mxu1  ;;  %5432 = vmatpush3.bf16.msra.mxu0 %v5840_v47  ;;  %v6058_v1 = vpop.eup %6057 }
 0x7ac   :  { %8723 = vst [vmem:[#allocation17_spill] sm:$0xff] %v8012_v22  ;;  %v8014_v60 = vpop.f32.mrb[95].mxu1 }
 0x7ad   :  { %3147 = vperm.xlu1 %5691, %v6050_v17   ;;  %v6060_v17 = vpop.eup %6059  ;;  %6071 = vrcp.f32 %v8014_v60 }
 0x7ae   :  { %3172 = vperm.xlu0 %5692, %v6052_v34   ;;  %v6062_v34 = vpop.eup %6061  ;;  %6073 = vrcp.f32 %v7975_v53 }
 0x7af   :  { %v6064_v50 = vpop.eup %6063  ;;  %6075 = vrcp.f32 %v8004_v52 }
 0x7b0   :  { %v6066_v48 = vpop.eup %6065  ;;  %6077 = vrcp.f32 %v7870_v20 }
 0x7b1   :  { %3775 = vperm.xlu1 %5691, %v6054_v62   ;;  %v6068_v47 = vpop.eup %6067  ;;  %6079 = vrcp.f32 %v8002_v13 }
 0x7b2   :  { %3800 = vperm.xlu0 %5692, %v6056_v46   ;;  %v6070_v62 = vpop.eup %6069  ;;  %6081 = vrcp.f32 %v7912_v33 }
 0x7b3   :  { %6083 = vrcp.f32 %v7872_v44 }
 0x7b4   :  { %6085 = vrcp.f32 %v8009_v16 }
 0x7b5   :  { %3765 = vperm.xlu1 %5691, %v6058_v1   ;;  %6087 = vrcp.f32 %v8012_v22 }
 0x7b6   :  { %3790 = vperm.xlu0 %5692, %v6060_v17   ;;  %6089 = vrcp.f32 %v7999_v24 }
 0x7b7   :  { %v6072_v46 = vpop.eup %6071  ;;  %6091 = vrcp.f32 %v7996_v58 }
 0x7b8   :  { %v6074_v1 = vpop.eup %6073  ;;  %6093 = vrcp.f32 %v7868_v54 }
 0x7b9   :  { %3177 = vperm.xlu1 %5691, %v6062_v34   ;;  %v6076_v17 = vpop.eup %6075  ;;  %6095 = vrcp.f32 %v8006_v2 }
 0x7ba   :  { %1956 = vperm.xlu0 %5692, %v6064_v50   ;;  %v6078_v34 = vpop.eup %6077 }
 0x7bb   :  { %v6080_v50 = vpop.eup %6079 }
 0x7bd   :  { %3167 = vperm.xlu1 %5691, %v6066_v48   ;;  %v6082_v48 = vpop.eup %6081 }
 0x7be   :  { %2584 = vperm.xlu0 %5692, %v6068_v47   ;;  %v6084_v47 = vpop.eup %6083 }
 0x7c1   :  { %3795 = vperm.xlu1 %5691, %v6070_v62   ;;  %v6086_v62 = vpop.eup %6085 }
 0x7c2   :  { %3192 = vperm.xlu0 %5692, %v6072_v46   ;;  %v6088_v46 = vpop.eup %6087 }
 0x7c5   :  { %3785 = vperm.xlu1 %5691, %v6074_v1   ;;  %v6090_v1 = vpop.eup %6089 }
 0x7c6   :  { %3810 = vperm.xlu0 %5692, %v6076_v17   ;;  %v1902_v17 = vpop.permute.xlu1 %1901 }
 0x7c9   :  { %1951 = vperm.xlu1 %5691, %v6078_v34   ;;  %v6092_v34 = vpop.eup %6091 }
 0x7ca   :  { %3820 = vperm.xlu0 %5692, %v6080_v50   ;;  %v6094_v50 = vpop.eup %6093  ;;  %v1892_v22 = vpop.permute.xlu1 %1891 }
 0x7cd   :  { %2579 = vperm.xlu1 %5691, %v6082_v48   ;;  %v6096_v48 = vpop.eup %6095 }
 0x7ce   :  { %1966 = vperm.xlu0 %5692, %v6084_v47   ;;  %v1969_v47 = vmul.f32 %v1892_v22, %v7845_v35  ;;  %v8048_v35 = vld [vmem:[%s8516_s9 + $0x1] ss:$0 sm:$0xff] }
 0x7d1   :  { %3187 = vperm.xlu1 %5691, %v6086_v62   ;;  %v1971_v62 = vmul.f32 %v7842_v55, %v1902_v17 }
 0x7d2   :  { %3202 = vperm.xlu0 %5692, %v6088_v46   ;;  %v8039_v46 = vld [vmem:[%s8516_s9] ss:$0 sm:$0xff] }
 0x7d3   :  { %v1989_v2 = vadd.f32 %v8039_v46, %v1969_v47  ;;  %v1991_v24 = vadd.f32 %v8039_v46, %v1971_v62 }
 0x7d5   :  { %3805 = vperm.xlu1 %5691, %v6090_v1   ;;  %v2007_v13 = vmax.f32 %v1991_v24, 0.0 }
 0x7d9   :  { %3815 = vperm.xlu1 %5691, %v6092_v34  }
 0x7dd   :  { %1961 = vperm.xlu1 %5691, %v6094_v50  }
 0x7e0   :  { %v2520_v44 = vpop.permute.xlu1 %2519 }
 0x7e1   :  { %v2510_v58 = vpop.permute.xlu0 %2509  ;;  %3197 = vperm.xlu1 %5691, %v6096_v48   ;;  %v2589_v55 = vmul.f32 %v7876_v14, %v2520_v44 }
 0x7e2   :  { %v2587_v34 = vmul.f32 %v2510_v58, %v7879_v5  ;;  %v2005_v5 = vmax.f32 %v1989_v2, 0.0 }
 0x7e3   :  { %v2609_v16 = vadd.f32 %v8048_v35, %v2589_v55 }
 0x7e4   :  { %v1897_v1 = vpop.permute.xlu1 %1896 }
 0x7e5   :  { %v1970_v50 = vmul.f32 %v1897_v1, %v7849_v61  ;;  %v1907_v54 = vpop.permute.xlu0 %1906  ;;  %v2607_v61 = vadd.f32 %v8048_v35, %v2587_v34 }
 0x7e6   :  { %v1972_v22 = vmul.f32 %v7847_v37, %v1907_v54 }
 0x7e7   :  { %v1990_v17 = vadd.f32 %v8039_v46, %v1970_v50  ;;  %v2623_v2 = vmax.f32 %v2607_v61, 0.0 }
 0x7e8   :  { %v1992_v48 = vadd.f32 %v8039_v46, %v1972_v22  ;;  %v2515_v47 = vpop.permute.xlu1 %2514 }
 0x7e9   :  { %v2006_v58 = vmax.f32 %v1990_v17, 0.0  ;;  %v2588_v62 = vmul.f32 %v2515_v47, %v7884_v42  ;;  %v2525_v1 = vpop.permute.xlu0 %2524  ;;  %v2625_v42 = vmax.f32 %v2609_v16, 0.0 }
 0x7ea   :  { %v2008_v52 = vmax.f32 %v1992_v48, 0.0  ;;  %v2590_v44 = vmul.f32 %v7882_v7, %v2525_v1 }
 0x7eb   :  { %v2021_v14 = vpack.c.bf16 %v2006_v58, %v2005_v5  ;;  %v2608_v37 = vadd.f32 %v8048_v35, %v2588_v62 }
 0x7ec   :  { %v2610_v54 = vadd.f32 %v8048_v35, %v2590_v44  ;;  %v1922_v50 = vpop.permute.xlu1 %1921  ;;  %v2022_v22 = vpack.c.bf16 %v2008_v52, %v2007_v13 }
 0x7ed   :  { %v2624_v33 = vmax.f32 %v2608_v37, 0.0  ;;  %v1975_v34 = vmul.f32 %v7852_v19, %v1922_v50  ;;  %v1927_v17 = vpop.permute.xlu0 %1926 }
 0x7ee   :  { %v2626_v47 = vmax.f32 %v2610_v54, 0.0  ;;  %v1976_v24 = vmul.f32 %v7856_v43, %v1927_v17 }
 0x7ef   :  { %v1995_v55 = vadd.f32 %v8039_v46, %v1975_v34  ;;  %v2639_v48 = vpack.c.bf16 %v2624_v33, %v2623_v2 }
 0x7f0   :  { %v1996_v7 = vadd.f32 %v8039_v46, %v1976_v24  ;;  %v1912_v5 = vpop.permute.xlu1 %1911  ;;  %v2640_v58 = vpack.c.bf16 %v2626_v47, %v2625_v42 }
 0x7f1   :  { %v2011_v62 = vmax.f32 %v1995_v55, 0.0  ;;  %v1973_v1 = vmul.f32 %v1912_v5, %v7854_v0  ;;  %v1917_v52 = vpop.permute.xlu0 %1916  ;;  %4211 = vmatprep.mubr.bf16.mxu1 %v2639_v48 }
 0x7f2   :  { %v2012_v13 = vmax.f32 %v1996_v7, 0.0  ;;  %v1974_v19 = vmul.f32 %v1917_v52, %v7858_v57  ;;  %4212 = vmatmul.mubr.bf16.vlgmr.msra.gmra.mrb[96].mxu1 %v2021_v14 }
 0x7f3   :  { %v1993_v16 = vadd.f32 %v8039_v46, %v1973_v1  ;;  %4219 = vmatprep.mubr.bf16.mxu1 %v2640_v58 }
 0x7f4   :  { %v1994_v43 = vadd.f32 %v8039_v46, %v1974_v19  ;;  %v2540_v61 = vpop.permute.xlu1 %2539  ;;  %v2024_v33 = vpack.c.bf16 %v2012_v13, %v2011_v62 }
 0x7f5   :  { %v2009_v44 = vmax.f32 %v1993_v16, 0.0  ;;  %v2593_v37 = vmul.f32 %v7888_v29, %v2540_v61  ;;  %v2545_v54 = vpop.permute.xlu0 %2544 }
 0x7f6   :  { %v2010_v50 = vmax.f32 %v1994_v43, 0.0  ;;  %v2594_v0 = vmul.f32 %v7894_v40, %v2545_v54 }
 0x7f7   :  { %v2613_v2 = vadd.f32 %v8048_v35, %v2593_v37 }
 0x7f8   :  { %v2614_v34 = vadd.f32 %v8048_v35, %v2594_v0  ;;  %v2530_v57 = vpop.permute.xlu1 %2529  ;;  %v2023_v14 = vpack.c.bf16 %v2010_v50, %v2009_v44 }
 0x7f9   :  { %v2629_v17 = vmax.f32 %v2613_v2, 0.0  ;;  %v2591_v42 = vmul.f32 %v2530_v57, %v7891_v49  ;;  %v2535_v47 = vpop.permute.xlu0 %2534 }
 0x7fa   :  { %v2630_v24 = vmax.f32 %v2614_v34, 0.0  ;;  %v2592_v55 = vmul.f32 %v2535_v47, %v7896_v32  ;;  %4220 = vmatmul.mubr.bf16.gmra.mrb[100].mxu1 %v2022_v22 }
 0x7fb   :  { %v2611_v29 = vadd.f32 %v8048_v35, %v2591_v42 }
 0x7fc   :  { %v2612_v48 = vadd.f32 %v8048_v35, %v2592_v55  ;;  %v1942_v7 = vpop.permute.xlu1 %1941  ;;  %v2642_v40 = vpack.c.bf16 %v2630_v24, %v2629_v17 }
 0x7fd   :  { %v2627_v5 = vmax.f32 %v2611_v29, 0.0  ;;  %v1979_v58 = vmul.f32 %v7860_v12, %v1942_v7  ;;  %v1947_v62 = vpop.permute.xlu0 %1946 }
 0x7fe   :  { %v2628_v1 = vmax.f32 %v2612_v48, 0.0  ;;  %v1980_v52 = vmul.f32 %v7864_v6, %v1947_v62 }
 0x7ff   :  { %v1999_v49 = vadd.f32 %v8039_v46, %v1979_v58 }
 0x800   :  { %v2000_v13 = vadd.f32 %v8039_v46, %v1980_v52  ;;  %v1932_v19 = vpop.permute.xlu1 %1931  ;;  %v2641_v32 = vpack.c.bf16 %v2628_v1, %v2627_v5 }
 0x801   :  { %v2015_v22 = vmax.f32 %v1999_v49, 0.0  ;;  %v1977_v16 = vmul.f32 %v1932_v19, %v7862_v10  ;;  %v1937_v43 = vpop.permute.xlu0 %1936 }
 0x802   :  { %v2016_v61 = vmax.f32 %v2000_v13, 0.0  ;;  %v1978_v44 = vmul.f32 %v1937_v43, %v7866_v18  ;;  %4227 = vmatprep.mubr.bf16.mxu1 %v2641_v32 }
 0x803   :  { %v1997_v12 = vadd.f32 %v8039_v46, %v1977_v16  ;;  %4228 = vmatmul.mubr.bf16.gmra.mrb[104].mxu1 %v2023_v14 }
 0x804   :  { %v1998_v37 = vadd.f32 %v8039_v46, %v1978_v44  ;;  %4235 = vmatprep.mubr.bf16.mxu1 %v2642_v40  ;;  %v2560_v6 = vpop.permute.xlu1 %2559  ;;  %v2026_v54 = vpack.c.bf16 %v2016_v61, %v2015_v22 }
 0x805   :  { %v2013_v50 = vmax.f32 %v1997_v12, 0.0  ;;  %v2597_v0 = vmul.f32 %v7900_v3, %v2560_v6  ;;  %v2565_v2 = vpop.permute.xlu0 %2564 }
 0x806   :  { %v2014_v34 = vmax.f32 %v1998_v37, 0.0  ;;  %v2598_v10 = vmul.f32 %v7906_v39, %v2565_v2 }
 0x807   :  { %v2617_v57 = vadd.f32 %v8048_v35, %v2597_v0 }
 0x808   :  { %v2618_v18 = vadd.f32 %v8048_v35, %v2598_v10  ;;  %v2550_v17 = vpop.permute.xlu1 %2549  ;;  %v2025_v42 = vpack.c.bf16 %v2014_v34, %v2013_v50 }
 0x809   :  { %v2633_v47 = vmax.f32 %v2617_v57, 0.0  ;;  %v2595_v14 = vmul.f32 %v2550_v17, %v7903_v25  ;;  %v2555_v24 = vpop.permute.xlu0 %2554 }
 0x80a   :  { %v2634_v55 = vmax.f32 %v2618_v18, 0.0  ;;  %v2596_v29 = vmul.f32 %v2555_v24, %v7908_v26  ;;  %v8099_v26 = vld [vmem:[%s8516_s9 + $0x2] ss:$0 sm:$0xff] }
 0x80b   :  { %v2615_v48 = vadd.f32 %v8048_v35, %v2595_v14  ;;  %4236 = vmatmul.mubr.bf16.gmra.mrb[108].mxu1 %v2024_v33 }
 0x80c   :  { %v2616_v3 = vadd.f32 %v8048_v35, %v2596_v29  ;;  %v2570_v7 = vpop.permute.xlu1 %2569  ;;  %v2644_v39 = vpack.c.bf16 %v2634_v55, %v2633_v47 }
 0x80d   :  { %v2631_v40 = vmax.f32 %v2615_v48, 0.0  ;;  %v2599_v5 = vmul.f32 %v2570_v7, %v7915_v15  ;;  %v2575_v58 = vpop.permute.xlu0 %2574 }
 0x80e   :  { %v2632_v62 = vmax.f32 %v2616_v3, 0.0  ;;  %v2600_v1 = vmul.f32 %v2575_v58, %v7920_v36 }
 0x80f   :  { %v2619_v25 = vadd.f32 %v8048_v35, %v2599_v5 }
 0x810   :  { %v2620_v52 = vadd.f32 %v8048_v35, %v2600_v1  ;;  %v3138_v33 = vpop.permute.xlu1 %3137  ;;  %v2643_v49 = vpack.c.bf16 %v2632_v62, %v2631_v40 }
 0x811   :  { %v2635_v13 = vmax.f32 %v2619_v25, 0.0  ;;  %v3207_v19 = vmul.f32 %v7934_v9, %v3138_v33  ;;  %v3143_v32 = vpop.permute.xlu0 %3142  ;;  %v8108_v9 = vld [vmem:[%s8516_s9 + $0x3] ss:$0 sm:$0xff]  ;;  %v8724_v33 = vld [vmem:[#allocation56_spill] sm:$0xff]  ;;  %s6333_s9 = smov 119  }
 0x812   :  { %v2636_v15 = vmax.f32 %v2620_v52, 0.0  ;;  %v3208_v22 = vmul.f32 %v7940_v8, %v3143_v32  ;;  %4243 = vmatprep.mubr.bf16.mxu1 %v2643_v49 }
 0x813   :  { %v3227_v36 = vadd.f32 %v8099_v26, %v3207_v19  ;;  %4244 = vmatmul.mubr.bf16.gmra.mrb[112].mxu1 %v2025_v42 }
 0x814   :  { %v3228_v16 = vadd.f32 %v8099_v26, %v3208_v22  ;;  %4251 = vmatprep.mubr.bf16.mxu1 %v2644_v39  ;;  %v3128_v43 = vpop.permute.xlu1 %3127  ;;  %v2645_v61 = vpack.c.bf16 %v2636_v15, %v2635_v13  ;;  %v8725_v22 = vld [vmem:[#allocation54_spill] sm:$0xff] }
 0x815   :  { %v3243_v44 = vmax.f32 %v3227_v36, 0.0  ;;  %v3761_v12 = vpop.permute.xlu0 %3760  ;;  %v3205_v18 = vmul.f32 %v3128_v43, %v7937_v27  ;;  %v8726_v43 = vld [vmem:[#allocation45_spill] sm:$0xff] }
 0x816   :  { %v3244_v37 = vmax.f32 %v3228_v16, 0.0  ;;  %v3826_v6 = vmul.f32 %v7930_v45, %v3761_v12 }
 0x817   :  { %v3225_v24 = vadd.f32 %v8099_v26, %v3205_v18 }
 0x818   :  { %v3756_v8 = vpop.permute.xlu1 %3755  ;;  %v8111_v50 = vpack.c.bf16 %v3244_v37, %v3243_v44  ;;  %v3846_v0 = vadd.f32 %v8108_v9, %v3826_v6  ;;  %v8727_v37 = vld [vmem:[#allocation40_spill] sm:$0xff] }
 0x819   :  { %v3825_v2 = vmul.f32 %v7924_v41, %v3756_v8  ;;  %v3163_v34 = vpop.permute.xlu0 %3162  ;;  %v3241_v7 = vmax.f32 %v3225_v24, 0.0 }
 0x81a   :  { %v3862_v17 = vmax.f32 %v3846_v0, 0.0 }
 0x81b   :  { %v3845_v10 = vadd.f32 %v8108_v9, %v3825_v2  ;;  %4252 = vmatmul.mubr.bf16.gmra.mrb[116].mxu1 %v2026_v54  ;;  %v3212_v54 = vmul.f32 %v7964_v56, %v3163_v34 }
 0x81c   :  { %v3746_v57 = vpop.permute.xlu1 %3745  ;;  %4259 = vmatprep.mubr.bf16.mxu1 %v2645_v61 }
 0x81d   :  { %v3861_v42 = vmax.f32 %v3845_v10, 0.0  ;;  %v3153_v47 = vpop.permute.xlu0 %3152  ;;  %v3823_v55 = vmul.f32 %v3746_v57, %v7927_v38  ;;  %v3232_v38 = vadd.f32 %v8099_v26, %v3212_v54  ;;  %v8728_v10 = vld [vmem:[#allocation39_spill] sm:$0xff] }
 0x81e   :  { %v3210_v25 = vmul.f32 %v3153_v47, %v7966_v23 }
 0x81f   :  { %v3876_v14 = vpack.c.bf16 %v3862_v17, %v3861_v42  ;;  %v3843_v27 = vadd.f32 %v8108_v9, %v3823_v55  ;;  %v3248_v32 = vmax.f32 %v3232_v38, 0.0  ;;  %v8729_v55 = vld [vmem:[#allocation44_spill] sm:$0xff] }
 0x820   :  { %v3133_v45 = vpop.permute.xlu1 %3132 }
 0x821   :  { %v3206_v29 = vmul.f32 %v3133_v45, %v7942_v31  ;;  %v3781_v41 = vpop.permute.xlu0 %3780  ;;  %v3859_v31 = vmax.f32 %v3843_v27, 0.0 }
 0x822   :  { %v3830_v36 = vmul.f32 %v8725_v22, %v3781_v41 }
 0x823   :  { %v3226_v48 = vadd.f32 %v8099_v26, %v3206_v29 }
 0x824   :  { %v3751_v3 = vpop.permute.xlu1 %3750  ;;  %v3850_v2 = vadd.f32 %v8108_v9, %v3830_v36 }
 0x825   :  { %v3242_v39 = vmax.f32 %v3226_v48, 0.0  ;;  %v3824_v40 = vmul.f32 %v3751_v3, %v7932_v30  ;;  %v3771_v5 = vpop.permute.xlu0 %3770  ;;  %v3230_v30 = vadd.f32 %v8099_v26, %v3210_v25 }
 0x826   :  { %v3828_v6 = vmul.f32 %v3771_v5, %v8727_v37  ;;  %v3866_v24 = vmax.f32 %v3850_v2, 0.0 }
 0x827   :  { %v3257_v58 = vpack.c.bf16 %v3242_v39, %v3241_v7  ;;  %v3844_v62 = vadd.f32 %v8108_v9, %v3824_v40  ;;  %v3246_v0 = vmax.f32 %v3230_v30, 0.0  ;;  %v8730_v40 = vld [vmem:[#allocation51_spill] sm:$0xff] }
 0x828   :  { %v3158_v1 = vpop.permute.xlu1 %3157  ;;  %v3848_v47 = vadd.f32 %v8108_v9, %v3828_v6 }
 0x829   :  { %v3860_v52 = vmax.f32 %v3844_v62, 0.0  ;;  %v3211_v56 = vmul.f32 %v8724_v33, %v3158_v1  ;;  %v3183_v49 = vpop.permute.xlu0 %3182 }
 0x82a   :  { %v3864_v7 = vmax.f32 %v3848_v47, 0.0 }
 0x82b   :  { %v3231_v13 = vadd.f32 %v8099_v26, %v3211_v56  ;;  %v3875_v19 = vpack.c.bf16 %v3860_v52, %v3859_v31 }
 0x82c   :  { %v3148_v15 = vpop.permute.xlu1 %3147 }
 0x82d   :  { %v3247_v16 = vmax.f32 %v3231_v13, 0.0  ;;  %v3209_v61 = vmul.f32 %v3148_v15, %v8726_v43  ;;  %4308 = vmatprep.mubr.bf16.mxu0 %v3875_v19  ;;  %v3173_v44 = vpop.permute.xlu0 %3172 }
 0x82e   :  { %4309 = vmatmul.mubr.bf16.vlgmr.msra.gmra.mrb[128].mxu0 %v3257_v58  ;;  %v3214_v5 = vmul.f32 %v3173_v44, %v8730_v40  ;;  %v8734_v40 = vld [vmem:[#allocation15_spill] sm:$0xff] }
 0x82f   :  { %v3229_v23 = vadd.f32 %v8099_v26, %v3209_v61  ;;  %4316 = vmatprep.mubr.bf16.mxu0 %v3876_v14  ;;  %v3260_v12 = vpack.c.bf16 %v3248_v32, %v3247_v16  ;;  %v3216_v14 = vmul.f32 %v8729_v55, %v3183_v49 }
 0x830   :  { %v3776_v8 = vpop.permute.xlu1 %3775  ;;  %v3234_v33 = vadd.f32 %v8099_v26, %v3214_v5 }
 0x831   :  { %v3245_v34 = vmax.f32 %v3229_v23, 0.0  ;;  %v3829_v57 = vmul.f32 %v8728_v10, %v3776_v8  ;;  %v3801_v18 = vpop.permute.xlu0 %3800  ;;  %v3236_v39 = vadd.f32 %v8099_v26, %v3216_v14  ;;  %v8732_v14 = vld [vmem:[#allocation50_spill] sm:$0xff] }
 0x832   :  { %v3250_v30 = vmax.f32 %v3234_v33, 0.0 }
 0x833   :  { %v3849_v17 = vadd.f32 %v8108_v9, %v3829_v57  ;;  %v3259_v42 = vpack.c.bf16 %v3246_v0, %v3245_v34 }
 0x834   :  { %v3766_v45 = vpop.permute.xlu1 %3765 }
 0x835   :  { %v3865_v29 = vmax.f32 %v3849_v17, 0.0  ;;  %v3827_v41 = vmul.f32 %v3766_v45, %v7951_v51  ;;  %v3791_v48 = vpop.permute.xlu0 %3790  ;;  %v8731_v51 = vld [vmem:[#allocation53_spill] sm:$0xff] }
 0x836   :  { %4317 = vmatmul.mubr.bf16.gmra.mrb[132].mxu0 %v8111_v50  ;;  %v3834_v25 = vmul.f32 %v8731_v51, %v3801_v18  ;;  %v3252_v50 = vmax.f32 %v3236_v39, 0.0  ;;  %v3832_v22 = vmul.f32 %v3791_v48, %v7980_v59 }
 0x837   :  { %v3847_v54 = vadd.f32 %v8108_v9, %v3827_v41  ;;  %v3878_v3 = vpack.c.bf16 %v3866_v24, %v3865_v29 }
 0x838   :  { %v3178_v27 = vpop.permute.xlu1 %3177  ;;  %v3854_v32 = vadd.f32 %v8108_v9, %v3834_v25  ;;  %v3852_v37 = vadd.f32 %v8108_v9, %v3832_v22  ;;  %v8738_v22 = vld [vmem:[#allocation49_spill] sm:$0xff] }
 0x839   :  { %v3863_v58 = vmax.f32 %v3847_v54, 0.0  ;;  %v3215_v62 = vmul.f32 %v7982_v21, %v3178_v27  ;;  %v1957_v38 = vpop.permute.xlu0 %1956 }
 0x83a   :  { %v3870_v44 = vmax.f32 %v3854_v32, 0.0  ;;  %v1982_v6 = vmul.f32 %v1957_v38, %v7874_v63  ;;  %v3868_v57 = vmax.f32 %v3852_v37, 0.0  ;;  %v8737_v32 = vld [vmem:[#allocation34_spill] sm:$0xff] }
 0x83b   :  { %v3235_v1 = vadd.f32 %v8099_v26, %v3215_v62  ;;  %v3877_v31 = vpack.c.bf16 %v3864_v7, %v3863_v58  ;;  %v8733_v7 = vld [vmem:[#allocation59_spill] sm:$0xff]  ;;  %v8735_v62 = vld [vmem:[#allocation57_spill] sm:$0xff] }
 0x83c   :  { %v3168_v52 = vpop.permute.xlu1 %3167  ;;  %v2002_v18 = vadd.f32 %v8039_v46, %v1982_v6 }
 0x83d   :  { %v3251_v56 = vmax.f32 %v3235_v1, 0.0  ;;  %v3213_v49 = vmul.f32 %v3168_v52, %v7985_v28  ;;  %4324 = vmatprep.mubr.bf16.mxu0 %v3877_v31  ;;  %v2585_v13 = vpop.permute.xlu0 %2584  ;;  %v8736_v52 = vld [vmem:[#allocation60_spill] sm:$0xff] }
 0x83e   :  { %4325 = vmatmul.mubr.bf16.gmra.mrb[136].mxu0 %v3259_v42  ;;  %v2602_v34 = vmul.f32 %v7918_v4, %v2585_v13 }
 0x83f   :  { %v3233_v19 = vadd.f32 %v8099_v26, %v3213_v49  ;;  %4332 = vmatprep.mubr.bf16.mxu0 %v3878_v3  ;;  %v3262_v21 = vpack.c.bf16 %v3252_v50, %v3251_v56 }
 0x840   :  { %v3796_v15 = vpop.permute.xlu1 %3795  ;;  %v2622_v45 = vadd.f32 %v8048_v35, %v2602_v34 }
 0x841   :  { %v3249_v36 = vmax.f32 %v3233_v19, 0.0  ;;  %v3833_v16 = vmul.f32 %v7972_v11, %v3796_v15  ;;  %v3193_v43 = vpop.permute.xlu0 %3192 }
 0x842   :  { %v3218_v24 = vmul.f32 %v3193_v43, %v8014_v60 }
 0x843   :  { %v3853_v61 = vadd.f32 %v8108_v9, %v3833_v16  ;;  %v3261_v28 = vpack.c.bf16 %v3250_v30, %v3249_v36 }
 0x844   :  { %v3786_v23 = vpop.permute.xlu1 %3785  ;;  %v3238_v3 = vadd.f32 %v8099_v26, %v3218_v24 }
 0x845   :  { %v3869_v8 = vmax.f32 %v3853_v61, 0.0  ;;  %v3831_v0 = vmul.f32 %v3786_v23, %v7975_v53  ;;  %v3811_v11 = vpop.permute.xlu0 %3810  ;;  %v8739_v23 = vld [vmem:[#allocation17_spill] sm:$0xff] }
 0x846   :  { %4333 = vmatmul.mubr.bf16.gmra.mrb[140].mxu0 %v3260_v12  ;;  %v2018_v12 = vmax.f32 %v2002_v18, 0.0  ;;  %v3836_v27 = vmul.f32 %v3811_v11, %v8733_v7 }
 0x847   :  { %v3851_v2 = vadd.f32 %v8108_v9, %v3831_v0  ;;  %v3880_v59 = vpack.c.bf16 %v3870_v44, %v3869_v8  ;;  %v8740_v8 = vld [vmem:[#allocation46_spill] sm:$0xff] }
 0x848   :  { %v1952_v10 = vpop.permute.xlu1 %1951  ;;  %v3856_v51 = vadd.f32 %v8108_v9, %v3836_v27 }
 0x849   :  { %v3867_v17 = vmax.f32 %v3851_v2, 0.0  ;;  %v1981_v42 = vmul.f32 %v1952_v10, %v7870_v20  ;;  %v3821_v29 = vpop.permute.xlu0 %3820  ;;  %v2638_v20 = vmax.f32 %v2622_v45, 0.0 }
 0x84a   :  { %v3838_v38 = vmul.f32 %v8735_v62, %v3821_v29  ;;  %v3872_v19 = vmax.f32 %v3856_v51, 0.0 }
 0x84b   :  { %v2001_v47 = vadd.f32 %v8039_v46, %v1981_v42  ;;  %v3879_v63 = vpack.c.bf16 %v3868_v57, %v3867_v17  ;;  %v8741_v57 = vld [vmem:[#allocation61_spill] sm:$0xff] }
 0x84c   :  { %v2580_v53 = vpop.permute.xlu1 %2579  ;;  %v3858_v49 = vadd.f32 %v8108_v9, %v3838_v38 }
 0x84d   :  { %v2017_v55 = vmax.f32 %v2001_v47, 0.0  ;;  %v2601_v4 = vmul.f32 %v8732_v14, %v2580_v53  ;;  %4340 = vmatprep.mubr.bf16.mxu0 %v3879_v63  ;;  %v1967_v1 = vpop.permute.xlu0 %1966 }
 0x84e   :  { %4341 = vmatmul.mubr.bf16.gmra.mrb[144].mxu0 %v3261_v28  ;;  %v1984_v15 = vmul.f32 %v8737_v32, %v1967_v1  ;;  %v3874_v28 = vmax.f32 %v3858_v49, 0.0 }
 0x84f   :  { %v2621_v41 = vadd.f32 %v8048_v35, %v2601_v4  ;;  %4348 = vmatprep.mubr.bf16.mxu0 %v3880_v59  ;;  %v2027_v48 = vpack.c.bf16 %v2018_v12, %v2017_v55  ;;  %v3254_v35 = vmax.f32 %v3238_v3, 0.0 }
 0x850   :  { %v3188_v54 = vpop.permute.xlu1 %3187 }
 0x851   :  { %v2637_v39 = vmax.f32 %v2621_v41, 0.0  ;;  %v3217_v5 = vmul.f32 %v3188_v54, %v8734_v40  ;;  %4260 = vmatmul.mubr.bf16.gmra.mrb[120].mxu1 %v2027_v48  ;;  %v3203_v16 = vpop.permute.xlu0 %3202 }
 0x852   :  { %v3220_v37 = vmul.f32 %v8739_v23, %v3203_v16 }
 0x853   :  { %v3237_v60 = vadd.f32 %v8099_v26, %v3217_v5  ;;  %v2646_v58 = vpack.c.bf16 %v2638_v20, %v2637_v39 }
 0x854   :  { %v3806_v31 = vpop.permute.xlu1 %3805  ;;  %v3240_v10 = vadd.f32 %v8099_v26, %v3220_v37 }
 0x855   :  { %v3253_v25 = vmax.f32 %v3237_v60, 0.0  ;;  %v3835_v50 = vmul.f32 %v3806_v31, %v8736_v52  ;;  %4267 = vmatprep.mubr.bf16.mxu1 %v2646_v58 }
 0x856   :  { %4349 = vmatmul.mubr.bf16.gmra.mrb[148].mxu0 %v3262_v21  ;;  %v2004_v21 = vadd.f32 %v8039_v46, %v1984_v15  ;;  %v3256_v47 = vmax.f32 %v3240_v10, 0.0 }
 0x857   :  { %v3855_v33 = vadd.f32 %v8108_v9, %v3835_v50  ;;  %v3263_v56 = vpack.c.bf16 %v3254_v35, %v3253_v25 }
 0x858   :  { %v3816_v13 = vpop.permute.xlu1 %3815  ;;  %v2020_v11 = vmax.f32 %v2004_v21, 0.0 }
 0x859   :  { %v3871_v30 = vmax.f32 %v3855_v33, 0.0  ;;  %v3837_v36 = vmul.f32 %v8738_v22, %v3816_v13 }
 0x85b   :  { %v3857_v43 = vadd.f32 %v8108_v9, %v3837_v36  ;;  %v3881_v61 = vpack.c.bf16 %v3872_v19, %v3871_v30 }
 0x85c   :  { %v1962_v44 = vpop.permute.xlu1 %1961 }
 0x85d   :  { %v3873_v6 = vmax.f32 %v3857_v43, 0.0  ;;  %v1983_v0 = vmul.f32 %v8740_v8, %v1962_v44  ;;  %4356 = vmatprep.mubr.bf16.mxu0 %v3881_v61 }
 0x85e   :  { %4357 = vmatmul.mubr.bf16.gmra.mrb[152].mxu0 %v3263_v56 }
 0x85f   :  { %v2003_v2 = vadd.f32 %v8039_v46, %v1983_v0  ;;  %v3882_v59 = vpack.c.bf16 %v3874_v28, %v3873_v6 }
 0x860   :  { %v3198_v34 = vpop.permute.xlu1 %3197 }
 0x861   :  { %v2019_v9 = vmax.f32 %v2003_v2, 0.0  ;;  %v3219_v18 = vmul.f32 %v8741_v57, %v3198_v34  ;;  %4364 = vmatprep.mubr.bf16.mxu0 %v3882_v59 }
 0x863   :  { %v3239_v17 = vadd.f32 %v8099_v26, %v3219_v18  ;;  %v2028_v42 = vpack.c.bf16 %v2020_v11, %v2019_v9 }
 0x865   :  { %v3255_v63 = vmax.f32 %v3239_v17, 0.0  ;;  %4268 = vmatmul.mubr.bf16.gmra.mrb[124].mxu1 %v2028_v42 }
 0x867   :  { %v3264_v45 = vpack.c.bf16 %v3256_v47, %v3255_v63 }
 0x869   :  { %4365 = vmatmul.mubr.bf16.gmra.mrb[156].mxu0 %v3264_v45 }
 0x8c5   :  { %v5369_v53 = vpop.f32.mrb[96].mxu1 }
 0x8c6   :  { %v5370_v12 = vpop.f32.mrb[97].mxu1 }
 0x8c7   :  { %v5371_v46 = vadd.f32 %v5370_v12, %v5369_v53  ;;  %v5372_v24 = vpop.f32.mrb[98].mxu1 }
 0x8c8   :  { %v5373_v55 = vpop.f32.mrb[99].mxu1 }
 0x8c9   :  { %v5374_v14 = vadd.f32 %v5373_v55, %v5372_v24 }
 0x8cd   :  { %v5375_v4 = vpop.f32.mrb[100].mxu1 }
 0x8ce   :  { %v5376_v29 = vpop.f32.mrb[101].mxu1 }
 0x8cf   :  { %v5377_v41 = vadd.f32 %v5376_v29, %v5375_v4  ;;  %v5378_v48 = vpop.f32.mrb[102].mxu1 }
 0x8d0   :  { %v5379_v20 = vpop.f32.mrb[103].mxu1 }
 0x8d1   :  { %v5380_v54 = vadd.f32 %v5379_v20, %v5378_v48 }
 0x8d6   :  { %v5381_v3 = vpop.f32.mrb[104].mxu1 }
 0x8d7   :  { %v5382_v26 = vpop.f32.mrb[105].mxu1 }
 0x8d8   :  { %v5383_v7 = vadd.f32 %v5382_v26, %v5381_v3  ;;  %v5384_v27 = vpop.f32.mrb[106].mxu1 }
 0x8d9   :  { %v5385_v39 = vpop.f32.mrb[107].mxu1 }
 0x8da   :  { %v5386_v40 = vadd.f32 %v5385_v39, %v5384_v27 }
 0x8de   :  { %v5387_v5 = vpop.f32.mrb[108].mxu1 }
 0x8df   :  { %v5388_v60 = vpop.f32.mrb[109].mxu1 }
 0x8e0   :  { %v8185_v58 = vadd.f32 %v5388_v60, %v5387_v5  ;;  %v5390_v62 = vpop.f32.mrb[110].mxu1 }
 0x8e1   :  { %v5391_v38 = vpop.f32.mrb[111].mxu1 }
 0x8e2   :  { %v8187_v1 = vadd.f32 %v5391_v38, %v5390_v62 }
 0x8e6   :  { %v5393_v31 = vpop.f32.mrb[112].mxu1 }
 0x8e7   :  { %v5394_v35 = vpop.f32.mrb[113].mxu1 }
 0x8e8   :  { %v8189_v51 = vadd.f32 %v5394_v35, %v5393_v31  ;;  %v5396_v25 = vpop.f32.mrb[114].mxu1 }
 0x8e9   :  { %v5397_v52 = vpop.f32.mrb[115].mxu1 }
 0x8ea   :  { %v8191_v50 = vadd.f32 %v5397_v52, %v5396_v25 }
 0x8ee   :  { %v5399_v33 = vpop.f32.mrb[116].mxu1 }
 0x8ef   :  { %v5400_v56 = vpop.f32.mrb[117].mxu1 }
 0x8f0   :  { %v8193_v49 = vadd.f32 %v5400_v56, %v5399_v33  ;;  %v5402_v13 = vpop.f32.mrb[118].mxu1 }
 0x8f1   :  { %v5403_v19 = vpop.f32.mrb[119].mxu1 }
 0x8f2   :  { %v8195_v32 = vadd.f32 %v5403_v19, %v5402_v13 }
 0x901   :  { %v5433_v15 = vpop.f32.mrb[128].mxu0 }
 0x902   :  { %v5434_v30 = vpop.f32.mrb[129].mxu0 }
 0x903   :  { %v5435_v22 = vadd.f32 %v5434_v30, %v5433_v15  ;;  %v5436_v36 = vpop.f32.mrb[130].mxu0 }
 0x904   :  { %v5437_v16 = vpop.f32.mrb[131].mxu0 }
 0x905   :  { %v4311_v43 = vadd.f32 %v5435_v22, %v5371_v46  ;;  %v5438_v61 = vadd.f32 %v5437_v16, %v5436_v36 }
 0x907   :  { %v8197_v28 = vadd.f32 %v5438_v61, %v5374_v14  ;;  %4390 = vrot.lane.b32.xlu1 %v4311_v43, %s6333_s9 }
 0x909   :  { %v4706_v44 = vpack.c.bf16 %v8197_v28, %v4311_v43  ;;  %4392 = vrot.lane.b32.xlu0 %v8197_v28, %s6333_s9  ;;  %v5439_v21 = vpop.f32.mrb[132].mxu0 }
 0x90a   :  { %v5440_v23 = vpop.f32.mrb[133].mxu0 }
 0x90b   :  { %v5441_v37 = vadd.f32 %v5440_v23, %v5439_v21  ;;  %4471 = vperm.xlu1 %5691, %v4311_v43   ;;  %v5442_v6 = vpop.f32.mrb[134].mxu0  ;;  %5625 = vmatprep.subr.bf16.mxu0 %v4706_v44 }
 0x90c   :  { %5657 = vmatprep.subr.bf16.mxu1 %v4706_v44  ;;  %v5443_v8 = vpop.f32.mrb[135].mxu0  ;;  %5626 = vmatpush3.bf16.msra.mxu0 %v4706_v44 }
 0x90d   :  { %v8203_v0 = vadd.f32 %v5441_v37, %v5377_v41  ;;  %v5444_v2 = vadd.f32 %v5443_v8, %v5442_v6  ;;  %5665 = vmatpush3.bf16.msra.mxu1 %v4706_v44 }
 0x90f   :  { %v8205_v59 = vadd.f32 %v5444_v2, %v5380_v54  ;;  %4394 = vrot.lane.b32.xlu1 %v8203_v0, %s6333_s9 }
 0x911   :  { %v4707_v34 = vpack.c.bf16 %v8205_v59, %v8203_v0  ;;  %4396 = vrot.lane.b32.xlu0 %v8205_v59, %s6333_s9  ;;  %v5445_v11 = vpop.f32.mrb[136].mxu0 }
 0x912   :  { %v5446_v10 = vpop.f32.mrb[137].mxu0 }
 0x913   :  { %v5447_v9 = vadd.f32 %v5446_v10, %v5445_v11  ;;  %v5448_v57 = vpop.f32.mrb[138].mxu0  ;;  %5627 = vmatprep.subr.bf16.mxu0 %v4707_v34  ;;  %5658 = vmatprep.subr.bf16.mxu1 %v4707_v34 }
 0x914   :  { %v5449_v18 = vpop.f32.mrb[139].mxu0  ;;  %5628 = vmatpush3.bf16.msra.mxu0 %v4707_v34  ;;  %5666 = vmatpush3.bf16.msra.mxu1 %v4707_v34 }
 0x915   :  { %v4327_v17 = vadd.f32 %v5447_v9, %v5383_v7  ;;  %v5450_v42 = vadd.f32 %v5449_v18, %v5448_v57 }
 0x917   :  { %v4330_v47 = vadd.f32 %v5450_v42, %v5386_v40  ;;  %4398 = vrot.lane.b32.xlu1 %v4327_v17, %s6333_s9 }
 0x919   :  { %v4708_v63 = vpack.c.bf16 %v4330_v47, %v4327_v17  ;;  %v5451_v45 = vpop.f32.mrb[140].mxu0  ;;  %4400 = vrot.lane.b32.xlu0 %v4330_v47, %s6333_s9 }
 0x91a   :  { %v5452_v53 = vpop.f32.mrb[141].mxu0 }
 0x91b   :  { %v5453_v12 = vadd.f32 %v5452_v53, %v5451_v45  ;;  %v5454_v46 = vpop.f32.mrb[142].mxu0  ;;  %4487 = vperm.xlu1 %5691, %v4327_v17   ;;  %5629 = vmatprep.subr.bf16.mxu0 %v4708_v63 }
 0x91c   :  { %5659 = vmatprep.subr.bf16.mxu1 %v4708_v63  ;;  %v5455_v24 = vpop.f32.mrb[143].mxu0  ;;  %5630 = vmatpush3.bf16.msra.mxu0 %v4708_v63 }
 0x91d   :  { %v4335_v55 = vadd.f32 %v5453_v12, %v8185_v58  ;;  %v5456_v14 = vadd.f32 %v5455_v24, %v5454_v46  ;;  %5667 = vmatpush3.bf16.msra.mxu1 %v4708_v63  ;;  %4491 = vperm.xlu0 %5692, %v4330_v47  }
 0x91f   :  { %v4338_v4 = vadd.f32 %v5456_v14, %v8187_v1  ;;  %4402 = vrot.lane.b32.xlu1 %v4335_v55, %s6333_s9 }
 0x921   :  { %v4709_v29 = vpack.c.bf16 %v4338_v4, %v4335_v55  ;;  %4404 = vrot.lane.b32.xlu0 %v4338_v4, %s6333_s9  ;;  %v5457_v41 = vpop.f32.mrb[144].mxu0 }
 0x922   :  { %v5458_v48 = vpop.f32.mrb[145].mxu0 }
 0x923   :  { %v5459_v20 = vadd.f32 %v5458_v48, %v5457_v41  ;;  %4495 = vperm.xlu1 %5691, %v4335_v55   ;;  %v5460_v54 = vpop.f32.mrb[146].mxu0  ;;  %5631 = vmatprep.subr.bf16.mxu0 %v4709_v29 }
 0x924   :  { %5660 = vmatprep.subr.bf16.mxu1 %v4709_v29  ;;  %v5405_v3 = vpop.f32.mrb[120].mxu1  ;;  %v5461_v26 = vpop.f32.mrb[147].mxu0  ;;  %5632 = vmatpush3.bf16.msra.mxu0 %v4709_v29 }
 0x925   :  { %v4343_v7 = vadd.f32 %v5459_v20, %v8189_v51  ;;  %v5462_v27 = vadd.f32 %v5461_v26, %v5460_v54  ;;  %5668 = vmatpush3.bf16.msra.mxu1 %v4709_v29  ;;  %4499 = vperm.xlu0 %5692, %v4338_v4   ;;  %v5406_v39 = vpop.f32.mrb[121].mxu1 }
 0x926   :  { %v5407_v40 = vadd.f32 %v5406_v39, %v5405_v3  ;;  %v5408_v5 = vpop.f32.mrb[122].mxu1 }
 0x927   :  { %v4346_v60 = vadd.f32 %v5462_v27, %v8191_v50  ;;  %4406 = vrot.lane.b32.xlu1 %v4343_v7, %s6333_s9  ;;  %v5409_v58 = vpop.f32.mrb[123].mxu1 }
 0x928   :  { %v5410_v62 = vadd.f32 %v5409_v58, %v5408_v5 }
 0x929   :  { %v4710_v38 = vpack.c.bf16 %v4346_v60, %v4343_v7  ;;  %v5463_v1 = vpop.f32.mrb[148].mxu0  ;;  %4408 = vrot.lane.b32.xlu0 %v4346_v60, %s6333_s9 }
 0x92a   :  { %v5464_v31 = vpop.f32.mrb[149].mxu0 }
 0x92b   :  { %v5465_v35 = vadd.f32 %v5464_v31, %v5463_v1  ;;  %v5466_v25 = vpop.f32.mrb[150].mxu0  ;;  %4503 = vperm.xlu1 %5691, %v4343_v7   ;;  %5633 = vmatprep.subr.bf16.mxu0 %v4710_v38 }
 0x92c   :  { %5661 = vmatprep.subr.bf16.mxu1 %v4710_v38  ;;  %v5467_v51 = vpop.f32.mrb[151].mxu0  ;;  %5634 = vmatpush3.bf16.msra.mxu0 %v4710_v38 }
 0x92d   :  { %v4351_v52 = vadd.f32 %v5465_v35, %v8193_v49  ;;  %v5468_v33 = vadd.f32 %v5467_v51, %v5466_v25  ;;  %5669 = vmatpush3.bf16.msra.mxu1 %v4710_v38  ;;  %4507 = vperm.xlu0 %5692, %v4346_v60  }
 0x92f   :  { %v4354_v50 = vadd.f32 %v5468_v33, %v8195_v32  ;;  %4410 = vrot.lane.b32.xlu1 %v4351_v52, %s6333_s9 }
 0x931   :  { %v4711_v56 = vpack.c.bf16 %v4354_v50, %v4351_v52  ;;  %4412 = vrot.lane.b32.xlu0 %v4354_v50, %s6333_s9  ;;  %v5469_v13 = vpop.f32.mrb[152].mxu0 }
 0x932   :  { %v5470_v19 = vpop.f32.mrb[153].mxu0 }
 0x933   :  { %v5471_v15 = vadd.f32 %v5470_v19, %v5469_v13  ;;  %4511 = vperm.xlu1 %5691, %v4351_v52   ;;  %v5472_v30 = vpop.f32.mrb[154].mxu0  ;;  %5635 = vmatprep.subr.bf16.mxu0 %v4711_v56  ;;  %v4590_v52 = vld [vmem:[%s8508_s1 + $0x20] sm:$0xff] }
 0x934   :  { %5662 = vmatprep.subr.bf16.mxu1 %v4711_v56  ;;  %v5473_v22 = vpop.f32.mrb[155].mxu0  ;;  %5636 = vmatpush3.bf16.msra.mxu0 %v4711_v56 }
 0x935   :  { %v4359_v49 = vadd.f32 %v5471_v15, %v5407_v40  ;;  %v5474_v36 = vadd.f32 %v5473_v22, %v5472_v30  ;;  %5670 = vmatpush3.bf16.msra.mxu1 %v4711_v56  ;;  %4515 = vperm.xlu0 %5692, %v4354_v50   ;;  %v4591_v15 = vld [vmem:[%s8508_s1 + $0x28] sm:$0xff] }
 0x937   :  { %v4362_v16 = vadd.f32 %v5474_v36, %v5410_v62  ;;  %4414 = vrot.lane.b32.xlu1 %v4359_v49, %s6333_s9  ;;  %v8742_v62 = vld [vmem:[#allocation14_spill] sm:$0xff] }
 0x938   :  { %v5411_v32 = vpop.f32.mrb[124].mxu1 }
 0x939   :  { %v4712_v43 = vpack.c.bf16 %v4362_v16, %v4359_v49  ;;  %4416 = vrot.lane.b32.xlu0 %v4362_v16, %s6333_s9  ;;  %v5412_v61 = vpop.f32.mrb[125].mxu1 }
 0x93a   :  { %v5413_v44 = vadd.f32 %v5412_v61, %v5411_v32  ;;  %v5414_v21 = vpop.f32.mrb[126].mxu1 }
 0x93b   :  { %v5415_v23 = vpop.f32.mrb[127].mxu1  ;;  %5637 = vmatprep.subr.bf16.mxu0 %v4712_v43  ;;  %5663 = vmatprep.subr.bf16.mxu1 %v4712_v43 }
 0x93c   :  { %v5416_v37 = vadd.f32 %v5415_v23, %v5414_v21  ;;  %v5475_v6 = vpop.f32.mrb[156].mxu0  ;;  %5638 = vmatpush3.bf16.msra.mxu0 %v4712_v43  ;;  %5671 = vmatpush3.bf16.msra.mxu1 %v4712_v43  ;;  %v4593_v21 = vld [vmem:[%s8508_s1 + $0x38] sm:$0xff] }
 0x93d   :  { %v5476_v8 = vpop.f32.mrb[157].mxu0 }
 0x93e   :  { %v5477_v2 = vadd.f32 %v5476_v8, %v5475_v6  ;;  %v5478_v34 = vpop.f32.mrb[158].mxu0 }
 0x93f   :  { %v5479_v11 = vpop.f32.mrb[159].mxu0 }
 0x940   :  { %v4367_v10 = vadd.f32 %v5477_v2, %v5413_v44  ;;  %v5480_v9 = vadd.f32 %v5479_v11, %v5478_v34  ;;  %v4594_v2 = vld [vmem:[%s8508_s1 + $0x40] sm:$0xff] }
 0x942   :  { %v4370_v57 = vadd.f32 %v5480_v9, %v5416_v37  ;;  %4418 = vrot.lane.b32.xlu1 %v4367_v10, %s6333_s9 }
 0x944   :  { %v4713_v18 = vpack.c.bf16 %v4370_v57, %v4367_v10  ;;  %4420 = vrot.lane.b32.xlu0 %v4370_v57, %s6333_s9 }
 0x946   :  { %4519 = vperm.xlu1 %5691, %v4359_v49   ;;  %5639 = vmatprep.subr.bf16.mxu0 %v4713_v18 }
 0x947   :  { %5664 = vmatprep.subr.bf16.mxu1 %v4713_v18  ;;  %5640 = vmatpush3.bf16.msra.mxu0 %v4713_v18 }
 0x948   :  { %5672 = vmatpush3.bf16.msra.mxu1 %v4713_v18  ;;  %4475 = vperm.xlu0 %5692, %v8197_v28  }
 0x94a   :  { %4479 = vperm.xlu1 %5691, %v8203_v0  }
 0x94c   :  { %4523 = vperm.xlu0 %5692, %v4362_v16   ;;  %v4592_v16 = vld [vmem:[%s8508_s1 + $0x30] sm:$0xff] }
 0x94e   :  { %4527 = vperm.xlu1 %5691, %v4367_v10  }
 0x950   :  { %4483 = vperm.xlu0 %5692, %v8205_v59  }
 0x954   :  { %4531 = vperm.xlu0 %5692, %v4370_v57   ;;  %v4595_v57 = vld [vmem:[%s8508_s1 + $0x48] sm:$0xff] }
 0x979   :  { %v4391_v17 = vpop.permute.xlu1 %4390 }
 0x97a   :  { %4438 = vxpose.xlu1.b32.start [1/16] (narrow) %v4391_v17, 8 }
 0x97b   :  { %v4393_v42 = vpop.permute.xlu0 %4392 }
 0x97e   :  { %4439 = vxpose.xlu1.b32.cont [2/16] (narrow) %v4393_v42, 8 }
 0x983   :  { %v4397_v45 = vpop.permute.xlu0 %4396 }
 0x98a   :  { %v8234_v47 = vpop.permute.xlu1 %4471 }
 0x98b   :  { %v4401_v28 = vpop.permute.xlu0 %4400 }
 0x98e   :  { %v4395_v63 = vpop.permute.xlu1 %4394 }
 0x98f   :  { %4440 = vxpose.xlu1.b32.cont [3/16] (narrow) %v4395_v63, 8 }
 0x992   :  { %v4399_v53 = vpop.permute.xlu1 %4398 }
 0x993   :  { %4441 = vxpose.xlu1.b32.cont [4/16] (narrow) %v4397_v45, 8  ;;  %v4596_v45 = vld [vmem:[%s8508_s1 + $0x50] sm:$0xff] }
 0x997   :  { %4442 = vxpose.xlu1.b32.cont [5/16] (narrow) %v4399_v53, 8 }
 0x99a   :  { %v4488_v12 = vpop.permute.xlu1 %4487 }
 0x99b   :  { %4443 = vxpose.xlu1.b32.cont [6/16] (narrow) %v4401_v28, 8 }
 0x99c   :  { %v4492_v0 = vpop.permute.xlu0 %4491 }
 0x99e   :  { %v4403_v46 = vpop.permute.xlu1 %4402 }
 0x99f   :  { %4444 = vxpose.xlu1.b32.cont [7/16] (narrow) %v4403_v46, 8 }
 0x9a0   :  { %v4405_v59 = vpop.permute.xlu0 %4404 }
 0x9a2   :  { %v4496_v24 = vpop.permute.xlu1 %4495 }
 0x9a3   :  { %4445 = vxpose.xlu1.b32.cont [8/16] (narrow) %v4405_v59, 8  ;;  %v4597_v59 = vld [vmem:[%s8508_s1 + $0x58] sm:$0xff] }
 0x9a4   :  { %v4500_v55 = vpop.permute.xlu0 %4499 }
 0x9a6   :  { %v4407_v14 = vpop.permute.xlu1 %4406 }
 0x9a7   :  { %4446 = vxpose.xlu1.b32.cont [9/16] (narrow) %v4407_v14, 8 }
 0x9a8   :  { %v4409_v4 = vpop.permute.xlu0 %4408 }
 0x9aa   :  { %v4504_v29 = vpop.permute.xlu1 %4503 }
 0x9ab   :  { %4447 = vxpose.xlu1.b32.cont [10/16] (narrow) %v4409_v4, 8  ;;  %v4586_v4 = vld [vmem:[%s8508_s1] sm:$0xff] }
 0x9ac   :  { %v4508_v41 = vpop.permute.xlu0 %4507 }
 0x9ae   :  { %v4411_v48 = vpop.permute.xlu1 %4410 }
 0x9af   :  { %4448 = vxpose.xlu1.b32.cont [11/16] (narrow) %v4411_v48, 8 }
 0x9b0   :  { %v4413_v20 = vpop.permute.xlu0 %4412 }
 0x9b2   :  { %v4512_v54 = vpop.permute.xlu1 %4511 }
 0x9b3   :  { %4449 = vxpose.xlu1.b32.cont [12/16] (narrow) %v4413_v20, 8 }
 0x9b4   :  { %v4516_v3 = vpop.permute.xlu0 %4515 }
 0x9b6   :  { %v4415_v26 = vpop.permute.xlu1 %4414 }
 0x9b7   :  { %4450 = vxpose.xlu1.b32.cont [13/16] (narrow) %v4415_v26, 8 }
 0x9b8   :  { %v4417_v7 = vpop.permute.xlu0 %4416 }
 0x9ba   :  { %v4419_v27 = vpop.permute.xlu1 %4418 }
 0x9bb   :  { %4451 = vxpose.xlu1.b32.cont [14/16] (narrow) %v4417_v7, 8 }
 0x9bc   :  { %v4421_v39 = vpop.permute.xlu0 %4420 }
 0x9bf   :  { %4452 = vxpose.xlu1.b32.cont [15/16] (narrow) %v4419_v27, 8 }
 0x9c3   :  { %4453 = vxpose.xlu1.b32.end [16/16] (narrow) %v4421_v39, 8 }
 0x9c5   :  { %v4520_v40 = vpop.permute.xlu1 %4519 }
 0x9c7   :  { %v4476_v53 = vpop.permute.xlu0 %4475 }
 0x9c9   :  { %v8236_v5 = vpop.permute.xlu1 %4479 }
 0x9cd   :  { %v8238_v60 = vpop.permute.xlu1 %4527 }
 0xa07   :  { %v4454_v58 = vpop.trf.xlu1 }
 0xa08   :  { %v8241_v38 = vrot.slane %v4454_v58, %v8742_v62 }
 0xa0a   :  { %v4542_v1 = vadd.f32 %v8241_v38, %v4488_v12  ;;  %v4543_v31 = vadd.f32 %v8241_v38, %v4492_v0  ;;  %v4544_v51 = vadd.f32 %v8241_v38, %v4496_v24  ;;  %v4545_v19 = vadd.f32 %v8241_v38, %v4500_v55 }
 0xa0b   :  { %v4546_v36 = vadd.f32 %v8241_v38, %v4504_v29  ;;  %v4547_v44 = vadd.f32 %v8241_v38, %v4508_v41  ;;  %v4548_v8 = vadd.f32 %v8241_v38, %v4512_v54  ;;  %v4549_v9 = vadd.f32 %v8241_v38, %v4516_v3  ;;  %v4524_v29 = vpop.permute.xlu0 %4523  ;;  %v4587_v3 = vld [vmem:[%s8508_s1 + $0x8] sm:$0xff] }
 0xa0c   :  { %v4558_v35 = vmul.f32 0.2, %v4542_v1  ;;  %v4559_v25 = vmul.f32 0.2, %v4543_v31  ;;  %v4560_v13 = vmul.f32 0.2, %v4544_v51  ;;  %v4538_v63 = vadd.f32 %v8241_v38, %v8234_v47 }
 0xa0d   :  { %v4561_v49 = vmul.f32 0.2, %v4545_v19  ;;  %v4562_v61 = vmul.f32 0.2, %v4546_v36  ;;  %v4563_v6 = vmul.f32 0.2, %v4547_v44  ;;  %v4539_v46 = vadd.f32 %v8241_v38, %v4476_v53 }
 0xa0e   :  { %v4574_v33 = vmax.f32 %v4542_v1, %v4558_v35  ;;  %v4575_v56 = vmax.f32 %v4543_v31, %v4559_v25  ;;  %v4576_v22 = vmax.f32 %v4544_v51, %v4560_v13  ;;  %v4564_v10 = vmul.f32 0.2, %v4548_v8  ;;  %v4599_v25 = vld [vmem:[%s8508_s1 + $0x68] sm:$0xff] }
 0xa0f   :  { %v4577_v43 = vmax.f32 %v4545_v19, %v4561_v49  ;;  %v4578_v37 = vmax.f32 %v4546_v36, %v4562_v61  ;;  %v4579_v11 = vmax.f32 %v4547_v44, %v4563_v6  ;;  %v4565_v42 = vmul.f32 0.2, %v4549_v9  ;;  %v4484_v58 = vpop.permute.xlu0 %4483  ;;  %v4589_v36 = vld [vmem:[%s8508_s1 + $0x18] sm:$0xff]  ;;  %v4600_v61 = vld [vmem:[%s8508_s1 + $0x70] sm:$0xff] }
 0xa10   :  { %v8249_v50 = vadd.f32 %v4590_v52, %v4574_v33  ;;  %v8256_v30 = vadd.f32 %v4591_v15, %v4575_v56  ;;  %v8263_v32 = vadd.f32 %v4592_v16, %v4576_v22  ;;  %v4580_v17 = vmax.f32 %v4548_v8, %v4564_v10  ;;  %v4588_v56 = vld [vmem:[%s8508_s1 + $0x10] sm:$0xff] }
 0xa11   :  { %v8270_v23 = vadd.f32 %v4593_v21, %v4577_v43  ;;  %v8277_v34 = vadd.f32 %v4594_v2, %v4578_v37  ;;  %v8284_v18 = vadd.f32 %v4595_v57, %v4579_v11  ;;  %v4581_v12 = vmax.f32 %v4549_v9, %v4565_v42 }
 0xa12   :  { %4626 = vmax.xlane.f32.xlu0 %v8249_v50  ;;  %v8292_v28 = vadd.f32 %v4596_v45, %v4580_v17  ;;  %v4554_v0 = vmul.f32 0.2, %v4538_v63  ;;  %v4555_v55 = vmul.f32 0.2, %v4539_v46  ;;  %v4550_v14 = vadd.f32 %v8241_v38, %v4520_v40  ;;  %v4598_v40 = vld [vmem:[%s8508_s1 + $0x60] sm:$0xff] }
 0xa13   :  { %v8299_v47 = vadd.f32 %v4597_v59, %v4581_v12  ;;  %v4551_v54 = vadd.f32 %v8241_v38, %v4524_v29  ;;  %v4540_v39 = vadd.f32 %v8241_v38, %v8236_v5  ;;  %v4541_v35 = vadd.f32 %v8241_v38, %v4484_v58  ;;  %v4532_v13 = vpop.permute.xlu0 %4531 }
 0xa14   :  { %v4570_v24 = vmax.f32 %v4538_v63, %v4554_v0  ;;  %v4571_v48 = vmax.f32 %v4539_v46, %v4555_v55  ;;  %v4566_v20 = vmul.f32 0.2, %v4550_v14  ;;  %v4552_v33 = vadd.f32 %v8241_v38, %v8238_v60 }
 0xa15   :  { %v4567_v27 = vmul.f32 0.2, %v4551_v54  ;;  %v4556_v31 = vmul.f32 0.2, %v4540_v39  ;;  %v4557_v52 = vmul.f32 0.2, %v4541_v35  ;;  %v4553_v49 = vadd.f32 %v8241_v38, %v4532_v13 }
 0xa16   :  { %4628 = vmax.xlane.f32.xlu0 %v8256_v30  ;;  %v8306_v41 = vadd.f32 %v4586_v4, %v4570_v24  ;;  %v8313_v26 = vadd.f32 %v4587_v3, %v4571_v48  ;;  %v4582_v7 = vmax.f32 %v4550_v14, %v4566_v20  ;;  %v4568_v22 = vmul.f32 0.2, %v4552_v33  ;;  %v4601_v38 = vld [vmem:[%s8508_s1 + $0x78] sm:$0xff] }
 0xa17   :  { %v4583_v1 = vmax.f32 %v4551_v54, %v4567_v27  ;;  %v4572_v51 = vmax.f32 %v4540_v39, %v4556_v31  ;;  %v4573_v15 = vmax.f32 %v4541_v35, %v4557_v52  ;;  %v4569_v43 = vmul.f32 0.2, %v4553_v49 }
 0xa18   :  { %v8321_v62 = vadd.f32 %v4598_v40, %v4582_v7  ;;  %v4584_v16 = vmax.f32 %v4552_v33, %v4568_v22 }
 0xa19   :  { %v8328_v5 = vadd.f32 %v4599_v25, %v4583_v1  ;;  %v8336_v19 = vadd.f32 %v4588_v56, %v4572_v51  ;;  %v8343_v60 = vadd.f32 %v4589_v36, %v4573_v15  ;;  %v4585_v21 = vmax.f32 %v4553_v49, %v4569_v43 }
 0xa1a   :  { %4630 = vmax.xlane.f32.xlu0 %v8263_v32  ;;  %v8349_v44 = vadd.f32 %v4600_v61, %v4584_v16 }
 0xa1b   :  { %v8355_v37 = vadd.f32 %v4601_v38, %v4585_v21 }
 0xa1e   :  { %4632 = vmax.xlane.f32.xlu0 %v8270_v23 }
 0xa22   :  { %4634 = vmax.xlane.f32.xlu0 %v8277_v34 }
 0xa26   :  { %4636 = vmax.xlane.f32.xlu0 %v8284_v18 }
 0xa2a   :  { %4638 = vmax.xlane.f32.xlu0 %v8292_v28 }
 0xa2e   :  { %4640 = vmax.xlane.f32.xlu0 %v8299_v47 }
 0xa32   :  { %4618 = vmax.xlane.f32.xlu0 %v8306_v41 }
 0xa36   :  { %4620 = vmax.xlane.f32.xlu0 %v8313_v26 }
 0xa3a   :  { %4642 = vmax.xlane.f32.xlu0 %v8321_v62 }
 0xa3e   :  { %4644 = vmax.xlane.f32.xlu0 %v8328_v5 }
 0xa42   :  { %4622 = vmax.xlane.f32.xlu0 %v8336_v19 }
 0xa46   :  { %4624 = vmax.xlane.f32.xlu0 %v8343_v60 }
 0xa4a   :  { %4646 = vmax.xlane.f32.xlu0 %v8349_v44 }
 0xa4e   :  { %4648 = vmax.xlane.f32.xlu0 %v8355_v37 }
 0xa9f   :  { %v4627_v6 = vpop.xlane.xlu0 %4626 }
 0xaa0   :  { %v4654_v8 = vsub.f32 %v8249_v50, %v4627_v6 }
 0xaa2   :  { %v4674_v2 = vmul.f32 1.442695, %v4654_v8 }
 0xaa3   :  { %v4629_v11 = vpop.xlane.xlu0 %4628 }
 0xaa4   :  { %v4655_v10 = vsub.f32 %v8256_v30, %v4629_v11  ;;  %6097 = vpow2.f32 %v4674_v2 }
 0xaa6   :  { %v4676_v9 = vmul.f32 1.442695, %v4655_v10 }
 0xaa7   :  { %v4631_v57 = vpop.xlane.xlu0 %4630 }
 0xaa8   :  { %6099 = vpow2.f32 %v4676_v9  ;;  %v4656_v17 = vsub.f32 %v8263_v32, %v4631_v57 }
 0xaaa   :  { %v4678_v42 = vmul.f32 1.442695, %v4656_v17 }
 0xaab   :  { %v4633_v63 = vpop.xlane.xlu0 %4632 }
 0xaac   :  { %v4657_v45 = vsub.f32 %v8270_v23, %v4633_v63  ;;  %6101 = vpow2.f32 %v4678_v42 }
 0xaae   :  { %v4680_v53 = vmul.f32 1.442695, %v4657_v45  ;;  %v6098_v0 = vpop.eup %6097 }
 0xaaf   :  { %v4635_v12 = vpop.xlane.xlu0 %4634 }
 0xab0   :  { %6103 = vpow2.f32 %v4680_v53  ;;  %v4658_v50 = vsub.f32 %v8277_v34, %v4635_v12 }
 0xab2   :  { %v6100_v46 = vpop.eup %6099  ;;  %v4682_v59 = vmul.f32 1.442695, %v4658_v50 }
 0xab3   :  { %v4637_v30 = vpop.xlane.xlu0 %4636  ;;  %v4700_v24 = vpack.c.bf16 %v6100_v46, %v6098_v0 }
 0xab4   :  { %v4659_v55 = vsub.f32 %v8284_v18, %v4637_v30  ;;  %6105 = vpow2.f32 %v4682_v59 }
 0xab5   :  { %5645 = vmatprep.mubr.bf16.mxu1 %v4700_v24 }
 0xab6   :  { %v4684_v14 = vmul.f32 1.442695, %v4659_v55  ;;  %v6102_v4 = vpop.eup %6101 }
 0xab7   :  { %v4639_v32 = vpop.xlane.xlu0 %4638 }
 0xab8   :  { %6107 = vpow2.f32 %v4684_v14  ;;  %v4660_v23 = vsub.f32 %v8292_v28, %v4639_v32 }
 0xaba   :  { %v6104_v29 = vpop.eup %6103  ;;  %v4686_v48 = vmul.f32 1.442695, %v4660_v23 }
 0xabb   :  { %v4641_v20 = vpop.xlane.xlu0 %4640  ;;  %v4701_v54 = vpack.c.bf16 %v6104_v29, %v6102_v4 }
 0xabc   :  { %v4661_v34 = vsub.f32 %v8299_v47, %v4641_v20  ;;  %6109 = vpow2.f32 %v4686_v48 }
 0xabd   :  { %5646 = vmatmul.mubr.bf16.vlgmr.msra.gmra.mrb[128].mxu1 %v4701_v54 }
 0xabe   :  { %v4688_v3 = vmul.f32 1.442695, %v4661_v34  ;;  %v6106_v27 = vpop.eup %6105 }
 0xabf   :  { %v4619_v7 = vpop.xlane.xlu0 %4618 }
 0xac0   :  { %6111 = vpow2.f32 %v4688_v3  ;;  %v4650_v18 = vsub.f32 %v8306_v41, %v4619_v7 }
 0xac2   :  { %v6108_v39 = vpop.eup %6107  ;;  %v4666_v40 = vmul.f32 1.442695, %v4650_v18 }
 0xac3   :  { %v4621_v58 = vpop.xlane.xlu0 %4620  ;;  %v4702_v1 = vpack.c.bf16 %v6108_v39, %v6106_v27 }
 0xac4   :  { %v4651_v28 = vsub.f32 %v8313_v26, %v4621_v58  ;;  %6113 = vpow2.f32 %v4666_v40 }
 0xac5   :  { %5649 = vmatprep.mubr.bf16.mxu1 %v4702_v1 }
 0xac6   :  { %v4668_v31 = vmul.f32 1.442695, %v4651_v28  ;;  %v6110_v25 = vpop.eup %6109 }
 0xac7   :  { %v4643_v35 = vpop.xlane.xlu0 %4642 }
 0xac8   :  { %6115 = vpow2.f32 %v4668_v31  ;;  %v4662_v47 = vsub.f32 %v8321_v62, %v4643_v35 }
 0xaca   :  { %v6112_v51 = vpop.eup %6111  ;;  %v4690_v52 = vmul.f32 1.442695, %v4662_v47 }
 0xacb   :  { %v4645_v33 = vpop.xlane.xlu0 %4644  ;;  %v4703_v56 = vpack.c.bf16 %v6112_v51, %v6110_v25  ;;  %v8425_v25 = vld [vmem:[%s8518_s11] ss:$0 sm:$0xff] }
 0xacc   :  { %v4663_v41 = vsub.f32 %v8328_v5, %v4645_v33  ;;  %6117 = vpow2.f32 %v4690_v52 }
 0xacd   :  { %5650 = vmatmul.mubr.bf16.gmra.mrb[132].mxu1 %v4703_v56 }
 0xace   :  { %v4692_v13 = vmul.f32 1.442695, %v4663_v41  ;;  %v6114_v22 = vpop.eup %6113 }
 0xacf   :  { %v4623_v15 = vpop.xlane.xlu0 %4622 }
 0xad0   :  { %6119 = vpow2.f32 %v4692_v13  ;;  %v4652_v26 = vsub.f32 %v8336_v19, %v4623_v15 }
 0xad2   :  { %v6116_v49 = vpop.eup %6115  ;;  %v4670_v36 = vmul.f32 1.442695, %v4652_v26 }
 0xad3   :  { %v4625_v16 = vpop.xlane.xlu0 %4624  ;;  %v4698_v43 = vpack.c.bf16 %v6116_v49, %v6114_v22 }
 0xad4   :  { %v4653_v62 = vsub.f32 %v8343_v60, %v4625_v16  ;;  %6121 = vpow2.f32 %v4670_v36 }
 0xad5   :  { %5641 = vmatprep.mubr.bf16.mxu0 %v4698_v43 }
 0xad6   :  { %v4672_v61 = vmul.f32 1.442695, %v4653_v62  ;;  %v6118_v38 = vpop.eup %6117 }
 0xad7   :  { %v4647_v21 = vpop.xlane.xlu0 %4646 }
 0xad8   :  { %6123 = vpow2.f32 %v4672_v61  ;;  %v4664_v5 = vsub.f32 %v8349_v44, %v4647_v21  ;;  %v6334_v44 = vmov 8  }
 0xad9   :  { %5694 = vset.pattern.permute.xlu0 %v6334_v44  ;;  %5693 = vset.pattern.permute.xlu1 %v6334_v44 }
 0xada   :  { %v6120_v6 = vpop.eup %6119  ;;  %v4694_v8 = vmul.f32 1.442695, %v4664_v5 }
 0xadb   :  { %v4649_v2 = vpop.xlane.xlu0 %4648  ;;  %v4704_v11 = vpack.c.bf16 %v6120_v6, %v6118_v38 }
 0xadc   :  { %v4665_v19 = vsub.f32 %v8355_v37, %v4649_v2  ;;  %6125 = vpow2.f32 %v4694_v8 }
 0xadd   :  { %5653 = vmatprep.mubr.bf16.mxu1 %v4704_v11 }
 0xade   :  { %v4696_v10 = vmul.f32 1.442695, %v4665_v19  ;;  %v6122_v9 = vpop.eup %6121 }
 0xae0   :  { %6127 = vpow2.f32 %v4696_v10 }
 0xae2   :  { %v6124_v60 = vpop.eup %6123 }
 0xae3   :  { %v4699_v57 = vpack.c.bf16 %v6124_v60, %v6122_v9 }
 0xae5   :  { %5642 = vmatmul.mubr.bf16.vlgmr.msra.gmra.mrb[160].mxu0 %v4699_v57 }
 0xae6   :  { %v6126_v17 = vpop.eup %6125 }
 0xaea   :  { %v6128_v42 = vpop.eup %6127 }
 0xaeb   :  { %v4705_v63 = vpack.c.bf16 %v6128_v42, %v6126_v17 }
 0xaed   :  { %5654 = vmatmul.mubr.bf16.gmra.mrb[136].mxu1 %v4705_v63 }
 0xb90   :  { %v8374_v45 = vpop.f32.mrb[128].mxu1 }
 0xb91   :  { %6129 = vrcp.f32 %v8374_v45  ;;  %v8377_v37 = vpop.f32.mrb[129].mxu1 }
 0xb92   :  { %v8379_v53 = vpop.f32.mrb[130].mxu1 }
 0xb93   :  { %v8381_v12 = vpop.f32.mrb[131].mxu1 }
 0xb9b   :  { %v6130_v50 = vpop.eup %6129 }
 0xb9c   :  { %4859 = vperm.xlu0 %5694, %v6130_v50  }
 0xba0   :  { %v8383_v0 = vpop.f32.mrb[132].mxu1 }
 0xba1   :  { %v8385_v46 = vpop.f32.mrb[133].mxu1 }
 0xba2   :  { %v8387_v59 = vpop.f32.mrb[134].mxu1 }
 0xba3   :  { %v8389_v30 = vpop.f32.mrb[135].mxu1 }
 0xbb8   :  { %v8391_v24 = vpop.f32.mrb[160].mxu0 }
 0xbb9   :  { %6131 = vrcp.f32 %v8391_v24  ;;  %v8394_v55 = vpop.f32.mrb[161].mxu0 }
 0xbba   :  { %6133 = vrcp.f32 %v8394_v55  ;;  %v8397_v14 = vpop.f32.mrb[162].mxu0 }
 0xbbb   :  { %v8399_v32 = vpop.f32.mrb[163].mxu0  ;;  %6135 = vrcp.f32 %v8397_v14 }
 0xbbc   :  { %6137 = vrcp.f32 %v8377_v37 }
 0xbbd   :  { %6139 = vrcp.f32 %v8379_v53 }
 0xbbe   :  { %6141 = vrcp.f32 %v8383_v0 }
 0xbbf   :  { %6143 = vrcp.f32 %v8399_v32 }
 0xbc0   :  { %v8403_v23 = vpop.f32.mrb[136].mxu1  ;;  %6145 = vrcp.f32 %v8385_v46 }
 0xbc1   :  { %v8406_v4 = vpop.f32.mrb[137].mxu1  ;;  %6147 = vrcp.f32 %v8381_v12 }
 0xbc2   :  { %v8409_v29 = vpop.f32.mrb[138].mxu1  ;;  %6149 = vrcp.f32 %v8406_v4 }
 0xbc3   :  { %v6132_v48 = vpop.eup %6131  ;;  %v8411_v20 = vpop.f32.mrb[139].mxu1  ;;  %6151 = vrcp.f32 %v8387_v59 }
 0xbc4   :  { %v6134_v54 = vpop.eup %6133  ;;  %4839 = vperm.xlu1 %5693, %v6132_v48   ;;  %6153 = vrcp.f32 %v8403_v23 }
 0xbc5   :  { %4829 = vperm.xlu0 %5694, %v6134_v54   ;;  %v6136_v34 = vpop.eup %6135  ;;  %6155 = vrcp.f32 %v8389_v30 }
 0xbc6   :  { %v6138_v3 = vpop.eup %6137  ;;  %6157 = vrcp.f32 %v8411_v20 }
 0xbc7   :  { %v6140_v7 = vpop.eup %6139  ;;  %6159 = vrcp.f32 %v8409_v29 }
 0xbc8   :  { %4844 = vperm.xlu1 %5693, %v6136_v34   ;;  %v6142_v18 = vpop.eup %6141 }
 0xbc9   :  { %4849 = vperm.xlu0 %5694, %v6138_v3   ;;  %v6144_v27 = vpop.eup %6143 }
 0xbca   :  { %v6146_v39 = vpop.eup %6145 }
 0xbcb   :  { %v6148_v40 = vpop.eup %6147 }
 0xbcc   :  { %4864 = vperm.xlu1 %5693, %v6140_v7   ;;  %v6150_v58 = vpop.eup %6149 }
 0xbcd   :  { %4879 = vperm.xlu0 %5694, %v6142_v18   ;;  %v6152_v1 = vpop.eup %6151 }
 0xbce   :  { %v6154_v28 = vpop.eup %6153 }
 0xbcf   :  { %v6156_v31 = vpop.eup %6155 }
 0xbd0   :  { %4834 = vperm.xlu1 %5693, %v6144_v27   ;;  %v6158_v35 = vpop.eup %6157 }
 0xbd1   :  { %4869 = vperm.xlu0 %5694, %v6146_v39   ;;  %v6160_v47 = vpop.eup %6159 }
 0xbd4   :  { %4854 = vperm.xlu1 %5693, %v6148_v40  }
 0xbd5   :  { %4889 = vperm.xlu0 %5694, %v6150_v58  }
 0xbd8   :  { %4884 = vperm.xlu1 %5693, %v6152_v1  }
 0xbd9   :  { %4899 = vperm.xlu0 %5694, %v6154_v28  }
 0xbdc   :  { %4874 = vperm.xlu1 %5693, %v6156_v31  }
 0xbe0   :  { %4894 = vperm.xlu1 %5693, %v6158_v35  }
 0xbe4   :  { %4904 = vperm.xlu1 %5693, %v6160_v47  }
 0xc1b   :  { %v4860_v51 = vpop.permute.xlu0 %4859 }
 0xc1c   :  { %v4913_v52 = vmul.f32 %v8374_v45, %v4860_v51 }
 0xc1e   :  { %v4935_v33 = vadd.f32 %v8425_v25, %v4913_v52 }
 0xc20   :  { %v5215_v56 = vmul.f32 -1.442695, %v4935_v33 }
 0xc22   :  { %6161 = vpow2.f32 %v5215_v56 }
 0xc2c   :  { %v6162_v41 = vpop.eup %6161 }
 0xc2d   :  { %v4999_v13 = vadd.f32 1.0, %v6162_v41 }
 0xc2f   :  { %6163 = vrcp.f32 %v4999_v13 }
 0xc39   :  { %v6164_v15 = vpop.eup %6163 }
 0xc3a   :  { %v5047_v26 = vmul.f32 256.0, %v6164_v15 }
 0xc3c   :  { %5063 = vst [vmem:[%s8519_s12 + $0x30] sm:$0xff] %v5047_v26 }
 0xc43   :  { %v4840_v22 = vpop.permute.xlu1 %4839 }
 0xc44   :  { %v4909_v49 = vmul.f32 %v8391_v24, %v4840_v22  ;;  %v4830_v36 = vpop.permute.xlu0 %4829 }
 0xc45   :  { %v4907_v16 = vmul.f32 %v4830_v36, %v8394_v55 }
 0xc46   :  { %v4931_v43 = vadd.f32 %v8425_v25, %v4909_v49 }
 0xc47   :  { %v4929_v62 = vadd.f32 %v8425_v25, %v4907_v16  ;;  %v4845_v61 = vpop.permute.xlu1 %4844 }
 0xc48   :  { %v5211_v21 = vmul.f32 -1.442695, %v4931_v43  ;;  %v4910_v5 = vmul.f32 %v8397_v14, %v4845_v61  ;;  %v4850_v38 = vpop.permute.xlu0 %4849 }
 0xc49   :  { %v5209_v6 = vmul.f32 -1.442695, %v4929_v62  ;;  %v4911_v8 = vmul.f32 %v4850_v38, %v8377_v37 }
 0xc4a   :  { %6165 = vpow2.f32 %v5211_v21  ;;  %v4932_v2 = vadd.f32 %v8425_v25, %v4910_v5 }
 0xc4b   :  { %6167 = vpow2.f32 %v5209_v6  ;;  %v4933_v11 = vadd.f32 %v8425_v25, %v4911_v8  ;;  %v4865_v19 = vpop.permute.xlu1 %4864 }
 0xc4c   :  { %v5212_v10 = vmul.f32 -1.442695, %v4932_v2  ;;  %v4914_v9 = vmul.f32 %v8379_v53, %v4865_v19  ;;  %v4880_v60 = vpop.permute.xlu0 %4879 }
 0xc4d   :  { %v5213_v57 = vmul.f32 -1.442695, %v4933_v11  ;;  %v4917_v17 = vmul.f32 %v8383_v0, %v4880_v60 }
 0xc4e   :  { %6169 = vpow2.f32 %v5212_v10  ;;  %v4936_v42 = vadd.f32 %v8425_v25, %v4914_v9 }
 0xc4f   :  { %6171 = vpow2.f32 %v5213_v57  ;;  %v4939_v63 = vadd.f32 %v8425_v25, %v4917_v17  ;;  %v4835_v44 = vpop.permute.xlu1 %4834 }
 0xc50   :  { %v5216_v45 = vmul.f32 -1.442695, %v4936_v42  ;;  %v4908_v37 = vmul.f32 %v4835_v44, %v8399_v32  ;;  %v4870_v50 = vpop.permute.xlu0 %4869 }
 0xc51   :  { %v5219_v24 = vmul.f32 -1.442695, %v4939_v63  ;;  %v4915_v55 = vmul.f32 %v4870_v50, %v8385_v46 }
 0xc52   :  { %6173 = vpow2.f32 %v5216_v45  ;;  %v4930_v53 = vadd.f32 %v8425_v25, %v4908_v37 }
 0xc53   :  { %6175 = vpow2.f32 %v5219_v24  ;;  %v4937_v0 = vadd.f32 %v8425_v25, %v4915_v55  ;;  %v4855_v14 = vpop.permute.xlu1 %4854 }
 0xc54   :  { %v6166_v48 = vpop.eup %6165  ;;  %v5210_v54 = vmul.f32 -1.442695, %v4930_v53  ;;  %v4912_v34 = vmul.f32 %v4855_v14, %v8381_v12  ;;  %v4890_v3 = vpop.permute.xlu0 %4889 }
 0xc55   :  { %v6168_v7 = vpop.eup %6167  ;;  %v4995_v18 = vadd.f32 1.0, %v6166_v48  ;;  %v5217_v27 = vmul.f32 -1.442695, %v4937_v0  ;;  %v4919_v32 = vmul.f32 %v4890_v3, %v8406_v4 }
 0xc56   :  { %v4993_v39 = vadd.f32 1.0, %v6168_v7  ;;  %6177 = vpow2.f32 %v5210_v54  ;;  %v4934_v46 = vadd.f32 %v8425_v25, %v4912_v34 }
 0xc57   :  { %6179 = vrcp.f32 %v4995_v18  ;;  %v4941_v40 = vadd.f32 %v8425_v25, %v4919_v32  ;;  %v4885_v58 = vpop.permute.xlu1 %4884 }
 0xc58   :  { %v6170_v1 = vpop.eup %6169  ;;  %6181 = vrcp.f32 %v4993_v39  ;;  %v5214_v28 = vmul.f32 -1.442695, %v4934_v46  ;;  %v4918_v31 = vmul.f32 %v8387_v59, %v4885_v58  ;;  %v4900_v12 = vpop.permute.xlu0 %4899 }
 0xc59   :  { %v6172_v35 = vpop.eup %6171  ;;  %v4996_v47 = vadd.f32 1.0, %v6170_v1  ;;  %6183 = vpow2.f32 %v5217_v27  ;;  %v5221_v51 = vmul.f32 -1.442695, %v4941_v40  ;;  %v4921_v4 = vmul.f32 %v8403_v23, %v4900_v12 }
 0xc5a   :  { %v4997_v52 = vadd.f32 1.0, %v6172_v35  ;;  %6185 = vpow2.f32 %v5214_v28  ;;  %v4940_v33 = vadd.f32 %v8425_v25, %v4918_v31 }
 0xc5b   :  { %6187 = vrcp.f32 %v4996_v47  ;;  %v4943_v56 = vadd.f32 %v8425_v25, %v4921_v4  ;;  %v4875_v41 = vpop.permute.xlu1 %4874 }
 0xc5c   :  { %v6174_v13 = vpop.eup %6173  ;;  %6189 = vrcp.f32 %v4997_v52  ;;  %v5220_v15 = vmul.f32 -1.442695, %v4940_v33  ;;  %v4916_v59 = vmul.f32 %v4875_v41, %v8389_v30 }
 0xc5d   :  { %v6176_v26 = vpop.eup %6175  ;;  %v5000_v22 = vadd.f32 1.0, %v6174_v13  ;;  %6191 = vpow2.f32 %v5221_v51  ;;  %v5223_v49 = vmul.f32 -1.442695, %v4943_v56 }
 0xc5e   :  { %v5003_v36 = vadd.f32 1.0, %v6176_v26  ;;  %6193 = vpow2.f32 %v5220_v15  ;;  %v4938_v23 = vadd.f32 %v8425_v25, %v4916_v59 }
 0xc5f   :  { %6195 = vrcp.f32 %v5000_v22  ;;  %v4895_v16 = vpop.permute.xlu1 %4894 }
 0xc60   :  { %v6178_v43 = vpop.eup %6177  ;;  %6197 = vrcp.f32 %v5003_v36  ;;  %v5218_v62 = vmul.f32 -1.442695, %v4938_v23  ;;  %v4920_v61 = vmul.f32 %v4895_v16, %v8411_v20 }
 0xc61   :  { %v6180_v21 = vpop.eup %6179  ;;  %v4994_v5 = vadd.f32 1.0, %v6178_v43  ;;  %6199 = vpow2.f32 %v5223_v49 }
 0xc62   :  { %v6182_v38 = vpop.eup %6181  ;;  %v5043_v30 = vmul.f32 256.0, %v6180_v21  ;;  %6201 = vpow2.f32 %v5218_v62  ;;  %v4942_v6 = vadd.f32 %v8425_v25, %v4920_v61 }
 0xc63   :  { %v6184_v8 = vpop.eup %6183  ;;  %v5041_v2 = vmul.f32 256.0, %v6182_v38  ;;  %6203 = vrcp.f32 %v4994_v5  ;;  %v4905_v11 = vpop.permute.xlu1 %4904 }
 0xc64   :  { %v6186_v19 = vpop.eup %6185  ;;  %5059 = vst [vmem:[%s8519_s12 + $0x10] sm:$0xff] %v5043_v30  ;;  %v5001_v10 = vadd.f32 1.0, %v6184_v8  ;;  %v5222_v9 = vmul.f32 -1.442695, %v4942_v6  ;;  %v4922_v20 = vmul.f32 %v8409_v29, %v4905_v11 }
 0xc65   :  { %v6188_v60 = vpop.eup %6187  ;;  %5057 = vst [vmem:[%s8519_s12] sm:$0xff] %v5041_v2  ;;  %v4998_v57 = vadd.f32 1.0, %v6186_v19 }
 0xc66   :  { %v6190_v17 = vpop.eup %6189  ;;  %v5044_v42 = vmul.f32 256.0, %v6188_v60  ;;  %6205 = vrcp.f32 %v5001_v10  ;;  %v4944_v63 = vadd.f32 %v8425_v25, %v4922_v20 }
 0xc67   :  { %v6192_v44 = vpop.eup %6191  ;;  %v5045_v45 = vmul.f32 256.0, %v6190_v17  ;;  %6207 = vrcp.f32 %v4998_v57 }
 0xc68   :  { %v6194_v37 = vpop.eup %6193  ;;  %5060 = vst [vmem:[%s8519_s12 + $0x18] sm:$0xff] %v5044_v42  ;;  %v5005_v29 = vadd.f32 1.0, %v6192_v44  ;;  %6209 = vpow2.f32 %v5222_v9  ;;  %v5224_v50 = vmul.f32 -1.442695, %v4944_v63 }
 0xc69   :  { %v6196_v24 = vpop.eup %6195  ;;  %5061 = vst [vmem:[%s8519_s12 + $0x20] sm:$0xff] %v5045_v45  ;;  %v5004_v55 = vadd.f32 1.0, %v6194_v37 }
 0xc6a   :  { %v6198_v53 = vpop.eup %6197  ;;  %v5048_v0 = vmul.f32 256.0, %v6196_v24  ;;  %6211 = vrcp.f32 %v5005_v29 }
 0xc6b   :  { %v6200_v25 = vpop.eup %6199  ;;  %v5051_v14 = vmul.f32 256.0, %v6198_v53  ;;  %6213 = vrcp.f32 %v5004_v55 }
 0xc6c   :  { %v6202_v48 = vpop.eup %6201  ;;  %5064 = vst [vmem:[%s8519_s12 + $0x38] sm:$0xff] %v5048_v0  ;;  %v5007_v54 = vadd.f32 1.0, %v6200_v25  ;;  %6215 = vpow2.f32 %v5224_v50 }
 0xc6d   :  { %v6204_v34 = vpop.eup %6203  ;;  %5067 = vst [vmem:[%s8519_s12 + $0x50] sm:$0xff] %v5051_v14  ;;  %v5002_v3 = vadd.f32 1.0, %v6202_v48 }
 0xc6e   :  { %v5042_v7 = vmul.f32 256.0, %v6204_v34  ;;  %6217 = vrcp.f32 %v5007_v54 }
 0xc6f   :  { %6219 = vrcp.f32 %v5002_v3 }
 0xc70   :  { %v6206_v18 = vpop.eup %6205  ;;  %5058 = vst [vmem:[%s8519_s12 + $0x8] sm:$0xff] %v5042_v7 }
 0xc71   :  { %v6208_v27 = vpop.eup %6207  ;;  %v5049_v32 = vmul.f32 256.0, %v6206_v18 }
 0xc72   :  { %v6210_v39 = vpop.eup %6209  ;;  %v5046_v46 = vmul.f32 256.0, %v6208_v27 }
 0xc73   :  { %5065 = vst [vmem:[%s8519_s12 + $0x40] sm:$0xff] %v5049_v32  ;;  %v5006_v40 = vadd.f32 1.0, %v6210_v39 }
 0xc74   :  { %v6212_v58 = vpop.eup %6211  ;;  %5062 = vst [vmem:[%s8519_s12 + $0x28] sm:$0xff] %v5046_v46 }
 0xc75   :  { %v6214_v1 = vpop.eup %6213  ;;  %v5053_v28 = vmul.f32 256.0, %v6212_v58  ;;  %6221 = vrcp.f32 %v5006_v40 }
 0xc76   :  { %v6216_v31 = vpop.eup %6215  ;;  %v5052_v12 = vmul.f32 256.0, %v6214_v1 }
 0xc77   :  { %5069 = vst [vmem:[%s8519_s12 + $0x60] sm:$0xff] %v5053_v28  ;;  %v5008_v35 = vadd.f32 1.0, %v6216_v31 }
 0xc78   :  { %v6218_v47 = vpop.eup %6217  ;;  %5068 = vst [vmem:[%s8519_s12 + $0x58] sm:$0xff] %v5052_v12 }
 0xc79   :  { %v6220_v51 = vpop.eup %6219  ;;  %v5055_v4 = vmul.f32 256.0, %v6218_v47  ;;  %6223 = vrcp.f32 %v5008_v35 }
 0xc7a   :  { %v5050_v52 = vmul.f32 256.0, %v6220_v51 }
 0xc7b   :  { %5071 = vst [vmem:[%s8519_s12 + $0x70] sm:$0xff] %v5055_v4 }
 0xc7c   :  { %5066 = vst [vmem:[%s8519_s12 + $0x48] sm:$0xff] %v5050_v52 }
 0xc7f   :  { %v6222_v33 = vpop.eup %6221 }
 0xc80   :  { %v5054_v56 = vmul.f32 256.0, %v6222_v33 }
 0xc82   :  { %5070 = vst [vmem:[%s8519_s12 + $0x68] sm:$0xff] %v5054_v56 }
 0xc83   :  { %v6224_v41 = vpop.eup %6223 }
 0xc84   :  { %v5056_v13 = vmul.f32 256.0, %v6224_v41 }
 0xc86   :  { %5072 = vst [vmem:[%s8519_s12 + $0x78] sm:$0xff] %v5056_v13 }
 0xc87   :  { %5077 = vsyncpa [#allocation5], 1 }
 0xc88   :  { %5078 = vsyncpa [#allocation7], 1 }
 0xc89   :  { %5079 = vsyncpa [#allocation10], 1 }

</bundles_post_ra>
